<compile_context>
chip_gen: v6e
topology: v6e:2x2x1
jax: 0.10.0
libtpu: 0.0.40
codegen_flags: <defaults>
</compile_context>

<pallas_src>
from functools import partial

import jax
import jax.numpy as jnp
import numpy as np
from jax.experimental import pallas as pl
from jax.experimental.pallas import tpu as pltpu


# ----------------------------------------------------------------------------
# Small helpers
# ----------------------------------------------------------------------------
def _pick_band(out_h, out_w, target_m=256):
    """Row-band size so each tap matmul has M = band*out_w near `target_m`
    (v6e/v7x MXU is 2x256^2; v5e is happy at 128) while dividing out_h."""
    band = max(1, min(out_h, -(-target_m // out_w)))
    while out_h % band:
        band -= 1
    return band


def _vmem_limit(block_bytes):
    """Explicit scoped-VMEM request: double-buffered blocks + slack, floored
    at the common 32 MiB default and capped at v7x's 64 MiB physical VMEM."""
    return int(min(max(2 * block_bytes + (4 << 20), 32 << 20), 64 << 20))


# ----------------------------------------------------------------------------
# Kernel bodies
# ----------------------------------------------------------------------------
def _conv3x3_s2_kernel(x00_ref, x01_ref, x10_ref, x11_ref, w_ref, b_ref, o_ref,
                       *, out_h, out_w, band):
    """3x3 / stride-2 / pad-1 conv + bias + ReLU for one batch element.

    The padded input arrives as 4 parity phases (xp[p::2, q::2]), so every tap
    window is a unit-stride slice.  A band of `band` output rows is flattened
    to (band*out_w, cin) and the 9 tap matmuls accumulate in f32 on the MXU
    (bf16 operands) -- one large-M matmul per tap per band instead of one per
    output row.
    """
    phases = ((x00_ref, x01_ref), (x10_ref, x11_ref))
    cin = w_ref.shape[1]
    cout = w_ref.shape[2]
    taps = [w_ref[k] for k in range(9)]          # hoisted (loop-invariant)
    bias = b_ref[...]                            # (1, cout) f32, hoisted

    def band_body(bi, carry):
        r0 = bi * band
        acc = jnp.zeros((band * out_w, cout), jnp.float32)
        for i in range(3):
            for j in range(3):
                xr = phases[i % 2][j % 2]
                blk = xr[pl.ds(r0 + i // 2, band), j // 2:j // 2 + out_w, :]
                acc = acc + jnp.dot(blk.reshape(band * out_w, cin),
                                    taps[3 * i + j],
                                    preferred_element_type=jnp.float32)
        out = jnp.maximum(acc + bias, 0.0).astype(o_ref.dtype)
        o_ref[pl.ds(r0, band)] = out.reshape(band, out_w, cout)
        return carry

    nbands = out_h // band
    if nbands == 1:
        band_body(0, 0)
    else:
        jax.lax.fori_loop(0, nbands, band_body, 0, unroll=nbands <= 4)


def _decoder_fused_kernel(xp_ref, w3_ref, b3_ref, w4_ref, b4_ref, o_ref,
                          *, out_h, out_w, band):
    """Fused decoder for one batch element:
         hidden = relu(conv3x3_s1(x, w3) + b3); logits = hidden @ w4 + b4.
    The (band*out_w, FC_DIM) hidden activation stays in VMEM/registers and the
    lane-sparse num_class classifier matmul + store run once per band.

    TODO(synk): for production FC_DIM (2048+) add a K grid axis with a f32
                VMEM accumulator (pl.when init/finalize) and double-buffer w3
                chunks -- w3 is not VMEM-resident at that size.
    """
    cf = w3_ref.shape[2]
    n_class = w4_ref.shape[1]
    taps = [w3_ref[k] for k in range(9)]
    b3 = b3_ref[...]
    w4 = w4_ref[...]
    b4 = b4_ref[...]

    def band_body(bi, carry):
        r0 = bi * band
        acc = jnp.zeros((band * out_w, cf), jnp.float32)
        for i in range(3):
            for j in range(3):
                blk = xp_ref[pl.ds(r0 + i, band), j:j + out_w, :]
                acc = acc + jnp.dot(blk.reshape(band * out_w, cf),
                                    taps[3 * i + j],
                                    preferred_element_type=jnp.float32)
        hidden = jnp.maximum(acc + b3, 0.0).astype(w4.dtype)
        logits = jnp.dot(hidden, w4, preferred_element_type=jnp.float32) + b4
        o_ref[pl.ds(r0, band)] = (
            logits.reshape(band, out_w, n_class).astype(o_ref.dtype))
        return carry

    nbands = out_h // band
    if nbands == 1:
        band_body(0, 0)
    else:
        jax.lax.fori_loop(0, nbands, band_body, 0, unroll=nbands <= 4)


def _upsample_softmax_kernel(lf_ref, ah_ref, awt_ref, o_ref,
                             ups_sc, m_sc, d_sc):
    """Fused bilinear upsample (align_corners=False) + class softmax, NCHW out.

    lf_ref  : (C, Hf, Wf)  bf16 feature-resolution logits (class-major)
    ah_ref  : (TH, Hf)     bf16 rows of the height interpolation matrix
    awt_ref : (Wf, W)      bf16 transposed width interpolation matrix
    o_ref   : (C, TH, W)   f32 NCHW output tile (lane dim = W, lane-dense)
    ups_sc  : (C, TH, W)   f32 VMEM scratch for the streamed class tiles
    m_sc,d_sc: (TH, W)     f32 running max / softmax denominator

    Streaming softmax: classes are processed with fori_loop passes so only a
    couple of (TH, W) tiles are live at a time (no O(C) vreg pressure).
    """
    n_class = lf_ref.shape[0]
    ah = ah_ref[...]
    awt = awt_ref[...]

    m_sc[...] = jnp.full_like(m_sc, -jnp.inf)

    def interp_body(c, carry):                    # pass 1: upsample + running max
        t = jnp.dot(ah, lf_ref[c], preferred_element_type=jnp.float32)
        u = jnp.dot(t.astype(awt.dtype), awt, preferred_element_type=jnp.float32)
        ups_sc[c] = u
        m_sc[...] = jnp.maximum(m_sc[...], u)
        return carry
    jax.lax.fori_loop(0, n_class, interp_body, 0)

    d_sc[...] = jnp.zeros_like(d_sc)

    def exp_body(c, carry):                       # pass 2: exp + denominator
        e = jnp.exp(ups_sc[c] - m_sc[...])
        ups_sc[c] = e
        d_sc[...] = d_sc[...] + e
        return carry
    jax.lax.fori_loop(0, n_class, exp_body, 0)

    # Exact reciprocal: probabilities sum to 1 to f32 rounding (matches
    # PyTorch softmax; approx reciprocal previously broke the tolerance).
    inv = 1.0 / d_sc[...]

    def store_body(c, carry):                     # pass 3: normalize + store
        o_ref[c] = (ups_sc[c] * inv).astype(o_ref.dtype)
        return carry
    jax.lax.fori_loop(0, n_class, store_body, 0)


# ----------------------------------------------------------------------------
# pallas_call wrappers
# ----------------------------------------------------------------------------
def conv3x3_s2_pallas(x_nhwc, w, b):
    """x: (N,H,W,Cin) bf16; w: (9,Cin,Cout) bf16; b: (1,Cout) f32.
    Returns relu(conv3x3(x, stride=2, pad=1) + b) as (N, H//2, W//2, Cout)."""
    n, h, wd, cin = x_nhwc.shape
    assert h % 2 == 0 and wd % 2 == 0
    cout = w.shape[2]
    out_h, out_w = h // 2, wd // 2
    band = _pick_band(out_h, out_w)
    xp = jnp.pad(x_nhwc, ((0, 0), (1, 1), (1, 1), (0, 0)))
    # parity phases xp[:, p::2, q::2, :]: ~1x activation traffic vs 9x im2col.
    phases = [xp[:, p::2, q::2, :] for p in (0, 1) for q in (0, 1)]
    hq, wq = phases[0].shape[1], phases[0].shape[2]
    blk_bytes = (4 * hq * wq * cin * 2 + 9 * cin * cout * 2 + cout * 4
                 + out_h * out_w * cout * 2)
    phase_spec = pl.BlockSpec((None, hq, wq, cin), lambda nb: (nb, 0, 0, 0))
    return pl.pallas_call(
        partial(_conv3x3_s2_kernel, out_h=out_h, out_w=out_w, band=band),
        out_shape=jax.ShapeDtypeStruct((n, out_h, out_w, cout), x_nhwc.dtype),
        grid=(n,),
        in_specs=[phase_spec] * 4 + [
            pl.BlockSpec((9, cin, cout), lambda nb: (0, 0, 0)),
            pl.BlockSpec((1, cout), lambda nb: (0, 0)),
        ],
        out_specs=pl.BlockSpec((None, out_h, out_w, cout),
                               lambda nb: (nb, 0, 0, 0)),
        compiler_params=pltpu.CompilerParams(
            dimension_semantics=("parallel",),
            vmem_limit_bytes=_vmem_limit(blk_bytes)),
    )(*phases, w, b)


def decoder_fused_pallas(feat_nhwc, w3, b3, w4, b4):
    """Fused decoder: logits = relu(conv3x3_s1(feat, w3) + b3) @ w4 + b4.
    feat: (N,Hf,Wf,Cf) bf16 -> logits (N, Hf, Wf, num_class) bf16."""
    n, hf, wf, cf = feat_nhwc.shape
    n_class = w4.shape[1]
    band = _pick_band(hf, wf)
    xp = jnp.pad(feat_nhwc, ((0, 0), (1, 1), (1, 1), (0, 0)))
    blk_bytes = ((hf + 2) * (wf + 2) * cf * 2 + 9 * cf * cf * 2 + cf * 4
                 + cf * n_class * 2 + n_class * 4 + hf * wf * n_class * 2)
    return pl.pallas_call(
        partial(_decoder_fused_kernel, out_h=hf, out_w=wf, band=band),
        out_shape=jax.ShapeDtypeStruct((n, hf, wf, n_class), jnp.bfloat16),
        grid=(n,),
        in_specs=[
            pl.BlockSpec((None, hf + 2, wf + 2, cf), lambda nb: (nb, 0, 0, 0)),
            pl.BlockSpec((9, cf, cf), lambda nb: (0, 0, 0)),
            pl.BlockSpec((1, cf), lambda nb: (0, 0)),
            pl.BlockSpec((cf, n_class), lambda nb: (0, 0)),
            pl.BlockSpec((1, n_class), lambda nb: (0, 0)),
        ],
        out_specs=pl.BlockSpec((None, hf, wf, n_class),
                               lambda nb: (nb, 0, 0, 0)),
        compiler_params=pltpu.CompilerParams(
            dimension_semantics=("parallel",),
            vmem_limit_bytes=_vmem_limit(blk_bytes)),
    )(xp, w3, b3, w4, b4)


def upsample_softmax_pallas(logits_nchw, ah, awt):
    """logits: (N,C,Hf,Wf) bf16; ah: (H,Hf) bf16; awt: (Wf,W) bf16.
    Returns softmax over C of the bilinear upsample as (N, C, H, W) f32."""
    n, c, hf, wf = logits_nchw.shape
    h = ah.shape[0]
    w = awt.shape[1]
    # Row-band capped at 32 so the (C, th, W) output block + streaming scratch
    # stay inside v7x's 64 MiB VMEM at production class counts.
    th = h if h <= 32 else 32
    while h % th:
        th -= 1
    blk_bytes = (c * hf * wf * 2 + th * hf * 2 + wf * w * 2
                 + c * th * w * 4                       # output block (f32)
                 + c * th * w * 4 + 2 * th * w * 4)     # scratch
    return pl.pallas_call(
        _upsample_softmax_kernel,
        out_shape=jax.ShapeDtypeStruct((n, c, h, w), jnp.float32),
        grid=(n, h // th),
        in_specs=[
            pl.BlockSpec((None, c, hf, wf), lambda nb, r: (nb, 0, 0, 0)),
            pl.BlockSpec((th, hf), lambda nb, r: (r, 0)),
            pl.BlockSpec((wf, w), lambda nb, r: (0, 0)),
        ],
        out_specs=pl.BlockSpec((None, c, th, w), lambda nb, r: (nb, 0, r, 0)),
        scratch_shapes=[
            pltpu.VMEM((c, th, w), jnp.float32),
            pltpu.VMEM((th, w), jnp.float32),
            pltpu.VMEM((th, w), jnp.float32),
        ],
        compiler_params=pltpu.CompilerParams(
            dimension_semantics=("parallel", "parallel"),
            vmem_limit_bytes=_vmem_limit(blk_bytes)),
    )(logits_nchw, ah, awt)


# ----------------------------------------------------------------------------
# Glue: bilinear interpolation matrices, parameter init
# ----------------------------------------------------------------------------
def bilinear_matrix(n_out, n_in):
    """PyTorch F.interpolate(mode='bilinear', align_corners=False) 1-D weights."""
    a = np.zeros((n_out, n_in), dtype=np.float32)
    scale = n_in / n_out
    for o in range(n_out):
        src = (o + 0.5) * scale - 0.5
        src = max(src, 0.0)
        i0 = min(int(np.floor(src)), n_in - 1)
        i1 = min(i0 + 1, n_in - 1)
        w1 = src - i0
        a[o, i0] += 1.0 - w1
        a[o, i1] += w1
    return jnp.asarray(a)


def init_params(key, c_in, c_mid, fc_dim, num_class):
    ks = jax.random.split(key, 8)
    s = 0.1

    def winit(k, shape):
        # bf16 weights feed the MXU; accumulation stays f32 inside the kernels.
        return (jax.random.normal(k, shape, jnp.float32) * s).astype(jnp.bfloat16)

    def binit(k, nch):
        return jax.random.normal(k, (1, nch), jnp.float32) * s

    return {
        # encoder conv1: 3x3 s2, c_in -> c_mid  (weight layout: (tap, Cin, Cout))
        "w1": winit(ks[0], (9, c_in, c_mid)), "b1": binit(ks[1], c_mid),
        # encoder conv2: 3x3 s2, c_mid -> fc_dim
        "w2": winit(ks[2], (9, c_mid, fc_dim)), "b2": binit(ks[3], fc_dim),
        # decoder cbr: 3x3 s1, fc_dim -> fc_dim
        "w3": winit(ks[4], (9, fc_dim, fc_dim)), "b3": binit(ks[5], fc_dim),
        # decoder conv_last: 1x1, fc_dim -> num_class
        "w4": winit(ks[6], (fc_dim, num_class)), "b4": binit(ks[7], num_class),
    }


# ----------------------------------------------------------------------------
# Full forward (eval mode of Generalized_SEMSEG)
# ----------------------------------------------------------------------------
def generalized_semseg_forward(data_nchw, params, ah_bf, awt_bf):
    # NCHW -> NHWC only for the 3-channel input (cheap); the expensive
    # full-resolution NHWC->NCHW output transpose is produced directly by the
    # fused upsample+softmax kernel's out_spec instead.
    x = jnp.transpose(data_nchw, (0, 2, 3, 1)).astype(jnp.bfloat16)

    # --- encoder (stand-in conv stack) ---
    h = conv3x3_s2_pallas(x, params["w1"], params["b1"])
    h = conv3x3_s2_pallas(h, params["w2"], params["b2"])

    # --- decoder: fused conv3x3+ReLU + 1x1 classifier (bf16 logits) ---
    logits = decoder_fused_pallas(h, params["w3"], params["b3"],
                                  params["w4"], params["b4"])
    # class-major layout for the upsample/softmax kernel; feature resolution
    # (16x smaller than output), so this XLA transpose is negligible.
    logits_nchw = jnp.transpose(logits, (0, 3, 1, 2))

    # --- fused bilinear upsample (align_corners=False) + softmax, NCHW out ---
    pred = upsample_softmax_pallas(logits_nchw, ah_bf, awt_bf)
    return {"pred_semseg": pred}


# ----------------------------------------------------------------------------
# Pure-JAX reference (mirrors the kernels' bf16 casts; differs only by MXU
# accumulation order)
# ----------------------------------------------------------------------------
def _reference_forward(data_nchw, params, ah_bf, awt_bf):
    x = jnp.transpose(data_nchw, (0, 2, 3, 1)).astype(jnp.bfloat16)

    def conv3x3(x_bf, w_taps, b, stride):
        cin, cout = w_taps.shape[1], w_taps.shape[2]
        w_hwio = w_taps.reshape(3, 3, cin, cout).astype(jnp.float32)
        y = jax.lax.conv_general_dilated(
            x_bf.astype(jnp.float32), w_hwio, window_strides=(stride, stride),
            padding=((1, 1), (1, 1)),
            dimension_numbers=("NHWC", "HWIO", "NHWC"))
        return jnp.maximum(y + b.reshape(1, 1, 1, -1), 0.0).astype(jnp.bfloat16)

    h1 = conv3x3(x, params["w1"], params["b1"], 2)
    h2 = conv3x3(h1, params["w2"], params["b2"], 2)
    hid = conv3x3(h2, params["w3"], params["b3"], 1)
    logits = (jnp.einsum("nhwc,ck->nhwk", hid.astype(jnp.float32),
                         params["w4"].astype(jnp.float32))
              + params["b4"].reshape(1, 1, 1, -1)).astype(jnp.bfloat16)
    lf = jnp.transpose(logits, (0, 3, 1, 2))                      # (N,C,Hf,Wf)
    t = jnp.einsum("ab,ncbw->ncaw", ah_bf.astype(jnp.float32),
                   lf.astype(jnp.float32)).astype(jnp.bfloat16)
    up = jnp.einsum("ncaw,wd->ncad", t.astype(jnp.float32),
                    awt_bf.astype(jnp.float32))
    return jax.nn.softmax(up, axis=1)


if __name__ == "__main__":
    # small, conv-consistent shapes: batch=2, RGB input, 16x16 spatial
    N, C_IN, H, W = 2, 3, 16, 16
    C_MID, FC_DIM, NUM_CLASS = 16, 32, 8

    key = jax.random.PRNGKey(0)
    k_data, k_params = jax.random.split(key)
    data = jax.random.normal(k_data, (N, C_IN, H, W), jnp.float32)
    params = init_params(k_params, C_IN, C_MID, FC_DIM, NUM_CLASS)

    # feature map after two stride-2 convs is H/4 x W/4
    ah_bf = bilinear_matrix(H, H // 4).astype(jnp.bfloat16)       # (H, H/4)
    awt_bf = bilinear_matrix(W, W // 4).T.astype(jnp.bfloat16)    # (W/4, W)

    fwd = jax.jit(generalized_semseg_forward)
    out = fwd(data, params, ah_bf, awt_bf)
    pred = jax.block_until_ready(out["pred_semseg"])

    assert pred.shape == (N, NUM_CLASS, H, W), pred.shape
    assert bool(jnp.all(jnp.isfinite(pred)))
    # exact-reciprocal softmax: probabilities sum to 1 at every pixel
    sums = jnp.sum(pred, axis=1)
    assert bool(jnp.allclose(sums, 1.0, atol=1e-3)), \
        float(jnp.max(jnp.abs(sums - 1.0)))

    # compare against a pure-JAX reference with identical bf16 casts
    ref = _reference_forward(data, params, ah_bf, awt_bf)
    err = float(jnp.max(jnp.abs(pred - ref)))
    assert err < 5e-3, err

    print("KERNEL_OK")
</pallas_src>

<mosaic_0001>
module attributes {stable_mosaic.version = 11 : i64} {
  func.func @_conv3x3_s2_kernel(%arg0: i32, %arg1: memref<1x9x9x3xbf16, #tpu.memory_space<vmem>>, %arg2: memref<1x9x9x3xbf16, #tpu.memory_space<vmem>>, %arg3: memref<1x9x9x3xbf16, #tpu.memory_space<vmem>>, %arg4: memref<1x9x9x3xbf16, #tpu.memory_space<vmem>>, %arg5: memref<9x3x16xbf16, #tpu.memory_space<vmem>>, %arg6: memref<1x16xf32, #tpu.memory_space<vmem>>, %arg7: memref<1x8x8x16xbf16, #tpu.memory_space<vmem>>) attributes {dimension_semantics = [#tpu.dimension_semantics<parallel>], iteration_bounds = array<i64: 2>, scalar_prefetch = 0 : i64, scratch_operands = 0 : i64, tpu.core_type = #tpu.core_type<tc>, window_params = [{transform_indices = @transform_0, window_bounds = array<i64: 1, 9, 9, 3>}, {transform_indices = @transform_1, window_bounds = array<i64: 1, 9, 9, 3>}, {transform_indices = @transform_2, window_bounds = array<i64: 1, 9, 9, 3>}, {transform_indices = @transform_3, window_bounds = array<i64: 1, 9, 9, 3>}, {pipeline_mode = #tpu.pipeline_mode<synchronous>, transform_indices = @transform_4, window_bounds = array<i64: 9, 3, 16>}, {pipeline_mode = #tpu.pipeline_mode<synchronous>, transform_indices = @transform_5, window_bounds = array<i64: 1, 16>}, {transform_indices = @transform_6, window_bounds = array<i64: 1, 8, 8, 16>}]} {
    %c0 = arith.constant 0 : index
    %c0_0 = arith.constant 0 : index
    %c0_1 = arith.constant 0 : index
    %0 = vector.load %arg5[%c0, %c0_0, %c0_1] : memref<9x3x16xbf16, #tpu.memory_space<vmem>>, vector<1x3x16xbf16>
    %1 = vector.shape_cast %0 : vector<1x3x16xbf16> to vector<3x16xbf16>
    %c1 = arith.constant 1 : index
    %c0_2 = arith.constant 0 : index
    %c0_3 = arith.constant 0 : index
    %2 = vector.load %arg5[%c1, %c0_2, %c0_3] : memref<9x3x16xbf16, #tpu.memory_space<vmem>>, vector<1x3x16xbf16>
    %3 = vector.shape_cast %2 : vector<1x3x16xbf16> to vector<3x16xbf16>
    %c2 = arith.constant 2 : index
    %c0_4 = arith.constant 0 : index
    %c0_5 = arith.constant 0 : index
    %4 = vector.load %arg5[%c2, %c0_4, %c0_5] : memref<9x3x16xbf16, #tpu.memory_space<vmem>>, vector<1x3x16xbf16>
    %5 = vector.shape_cast %4 : vector<1x3x16xbf16> to vector<3x16xbf16>
    %c3 = arith.constant 3 : index
    %c0_6 = arith.constant 0 : index
    %c0_7 = arith.constant 0 : index
    %6 = vector.load %arg5[%c3, %c0_6, %c0_7] : memref<9x3x16xbf16, #tpu.memory_space<vmem>>, vector<1x3x16xbf16>
    %7 = vector.shape_cast %6 : vector<1x3x16xbf16> to vector<3x16xbf16>
    %c4 = arith.constant 4 : index
    %c0_8 = arith.constant 0 : index
    %c0_9 = arith.constant 0 : index
    %8 = vector.load %arg5[%c4, %c0_8, %c0_9] : memref<9x3x16xbf16, #tpu.memory_space<vmem>>, vector<1x3x16xbf16>
    %9 = vector.shape_cast %8 : vector<1x3x16xbf16> to vector<3x16xbf16>
    %c5 = arith.constant 5 : index
    %c0_10 = arith.constant 0 : index
    %c0_11 = arith.constant 0 : index
    %10 = vector.load %arg5[%c5, %c0_10, %c0_11] : memref<9x3x16xbf16, #tpu.memory_space<vmem>>, vector<1x3x16xbf16>
    %11 = vector.shape_cast %10 : vector<1x3x16xbf16> to vector<3x16xbf16>
    %c6 = arith.constant 6 : index
    %c0_12 = arith.constant 0 : index
    %c0_13 = arith.constant 0 : index
    %12 = vector.load %arg5[%c6, %c0_12, %c0_13] : memref<9x3x16xbf16, #tpu.memory_space<vmem>>, vector<1x3x16xbf16>
    %13 = vector.shape_cast %12 : vector<1x3x16xbf16> to vector<3x16xbf16>
    %c7 = arith.constant 7 : index
    %c0_14 = arith.constant 0 : index
    %c0_15 = arith.constant 0 : index
    %14 = vector.load %arg5[%c7, %c0_14, %c0_15] : memref<9x3x16xbf16, #tpu.memory_space<vmem>>, vector<1x3x16xbf16>
    %15 = vector.shape_cast %14 : vector<1x3x16xbf16> to vector<3x16xbf16>
    %c8 = arith.constant 8 : index
    %c0_16 = arith.constant 0 : index
    %c0_17 = arith.constant 0 : index
    %16 = vector.load %arg5[%c8, %c0_16, %c0_17] : memref<9x3x16xbf16, #tpu.memory_space<vmem>>, vector<1x3x16xbf16>
    %17 = vector.shape_cast %16 : vector<1x3x16xbf16> to vector<3x16xbf16>
    %c0_18 = arith.constant 0 : index
    %c0_19 = arith.constant 0 : index
    %18 = vector.load %arg6[%c0_18, %c0_19] : memref<1x16xf32, #tpu.memory_space<vmem>>, vector<1x16xf32>
    %cst = arith.constant 0.000000e+00 : f32
    %19 = vector.broadcast %cst : f32 to vector<64x16xf32>
    %c0_20 = arith.constant 0 : index
    %c0_21 = arith.constant 0 : index
    %c0_22 = arith.constant 0 : index
    %c0_23 = arith.constant 0 : index
    %20 = vector.load %arg1[%c0_20, %c0_21, %c0_22, %c0_23] : memref<1x9x9x3xbf16, #tpu.memory_space<vmem>>, vector<1x8x8x3xbf16>
    %21 = vector.shape_cast %20 : vector<1x8x8x3xbf16> to vector<8x8x3xbf16>
    %22 = vector.shape_cast %21 : vector<8x8x3xbf16> to vector<64x3xbf16>
    %cst_24 = arith.constant dense<0.000000e+00> : vector<64x16xf32>
    %23 = tpu.matmul %22, %1, %cst_24 {dimension_numbers = #tpu.dot_dimension_numbers<[1], [0], [0], [1], [0, 0, 1, 1], [], []>} : vector<64x3xbf16>, vector<3x16xbf16>, vector<64x16xf32> -> vector<64x16xf32>
    %24 = arith.addf %19, %23 : vector<64x16xf32>
    %c0_25 = arith.constant 0 : index
    %c0_26 = arith.constant 0 : index
    %c0_27 = arith.constant 0 : index
    %c0_28 = arith.constant 0 : index
    %25 = vector.load %arg2[%c0_25, %c0_26, %c0_27, %c0_28] : memref<1x9x9x3xbf16, #tpu.memory_space<vmem>>, vector<1x8x8x3xbf16>
    %26 = vector.shape_cast %25 : vector<1x8x8x3xbf16> to vector<8x8x3xbf16>
    %27 = vector.shape_cast %26 : vector<8x8x3xbf16> to vector<64x3xbf16>
    %cst_29 = arith.constant dense<0.000000e+00> : vector<64x16xf32>
    %28 = tpu.matmul %27, %3, %cst_29 {dimension_numbers = #tpu.dot_dimension_numbers<[1], [0], [0], [1], [0, 0, 1, 1], [], []>} : vector<64x3xbf16>, vector<3x16xbf16>, vector<64x16xf32> -> vector<64x16xf32>
    %29 = arith.addf %24, %28 : vector<64x16xf32>
    %c0_30 = arith.constant 0 : index
    %c0_31 = arith.constant 0 : index
    %c1_32 = arith.constant 1 : index
    %c0_33 = arith.constant 0 : index
    %30 = vector.load %arg1[%c0_30, %c0_31, %c1_32, %c0_33] : memref<1x9x9x3xbf16, #tpu.memory_space<vmem>>, vector<1x8x8x3xbf16>
    %31 = vector.shape_cast %30 : vector<1x8x8x3xbf16> to vector<8x8x3xbf16>
    %32 = vector.shape_cast %31 : vector<8x8x3xbf16> to vector<64x3xbf16>
    %cst_34 = arith.constant dense<0.000000e+00> : vector<64x16xf32>
    %33 = tpu.matmul %32, %5, %cst_34 {dimension_numbers = #tpu.dot_dimension_numbers<[1], [0], [0], [1], [0, 0, 1, 1], [], []>} : vector<64x3xbf16>, vector<3x16xbf16>, vector<64x16xf32> -> vector<64x16xf32>
    %34 = arith.addf %29, %33 : vector<64x16xf32>
    %c0_35 = arith.constant 0 : index
    %c0_36 = arith.constant 0 : index
    %c0_37 = arith.constant 0 : index
    %c0_38 = arith.constant 0 : index
    %35 = vector.load %arg3[%c0_35, %c0_36, %c0_37, %c0_38] : memref<1x9x9x3xbf16, #tpu.memory_space<vmem>>, vector<1x8x8x3xbf16>
    %36 = vector.shape_cast %35 : vector<1x8x8x3xbf16> to vector<8x8x3xbf16>
    %37 = vector.shape_cast %36 : vector<8x8x3xbf16> to vector<64x3xbf16>
    %cst_39 = arith.constant dense<0.000000e+00> : vector<64x16xf32>
    %38 = tpu.matmul %37, %7, %cst_39 {dimension_numbers = #tpu.dot_dimension_numbers<[1], [0], [0], [1], [0, 0, 1, 1], [], []>} : vector<64x3xbf16>, vector<3x16xbf16>, vector<64x16xf32> -> vector<64x16xf32>
    %39 = arith.addf %34, %38 : vector<64x16xf32>
    %c0_40 = arith.constant 0 : index
    %c0_41 = arith.constant 0 : index
    %c0_42 = arith.constant 0 : index
    %c0_43 = arith.constant 0 : index
    %40 = vector.load %arg4[%c0_40, %c0_41, %c0_42, %c0_43] : memref<1x9x9x3xbf16, #tpu.memory_space<vmem>>, vector<1x8x8x3xbf16>
    %41 = vector.shape_cast %40 : vector<1x8x8x3xbf16> to vector<8x8x3xbf16>
    %42 = vector.shape_cast %41 : vector<8x8x3xbf16> to vector<64x3xbf16>
    %cst_44 = arith.constant dense<0.000000e+00> : vector<64x16xf32>
    %43 = tpu.matmul %42, %9, %cst_44 {dimension_numbers = #tpu.dot_dimension_numbers<[1], [0], [0], [1], [0, 0, 1, 1], [], []>} : vector<64x3xbf16>, vector<3x16xbf16>, vector<64x16xf32> -> vector<64x16xf32>
    %44 = arith.addf %39, %43 : vector<64x16xf32>
    %c0_45 = arith.constant 0 : index
    %c0_46 = arith.constant 0 : index
    %c1_47 = arith.constant 1 : index
    %c0_48 = arith.constant 0 : index
    %45 = vector.load %arg3[%c0_45, %c0_46, %c1_47, %c0_48] : memref<1x9x9x3xbf16, #tpu.memory_space<vmem>>, vector<1x8x8x3xbf16>
    %46 = vector.shape_cast %45 : vector<1x8x8x3xbf16> to vector<8x8x3xbf16>
    %47 = vector.shape_cast %46 : vector<8x8x3xbf16> to vector<64x3xbf16>
    %cst_49 = arith.constant dense<0.000000e+00> : vector<64x16xf32>
    %48 = tpu.matmul %47, %11, %cst_49 {dimension_numbers = #tpu.dot_dimension_numbers<[1], [0], [0], [1], [0, 0, 1, 1], [], []>} : vector<64x3xbf16>, vector<3x16xbf16>, vector<64x16xf32> -> vector<64x16xf32>
    %49 = arith.addf %44, %48 : vector<64x16xf32>
    %c0_50 = arith.constant 0 : index
    %c1_51 = arith.constant 1 : index
    %c0_52 = arith.constant 0 : index
    %c0_53 = arith.constant 0 : index
    %50 = vector.load %arg1[%c0_50, %c1_51, %c0_52, %c0_53] : memref<1x9x9x3xbf16, #tpu.memory_space<vmem>>, vector<1x8x8x3xbf16>
    %51 = vector.shape_cast %50 : vector<1x8x8x3xbf16> to vector<8x8x3xbf16>
    %52 = vector.shape_cast %51 : vector<8x8x3xbf16> to vector<64x3xbf16>
    %cst_54 = arith.constant dense<0.000000e+00> : vector<64x16xf32>
    %53 = tpu.matmul %52, %13, %cst_54 {dimension_numbers = #tpu.dot_dimension_numbers<[1], [0], [0], [1], [0, 0, 1, 1], [], []>} : vector<64x3xbf16>, vector<3x16xbf16>, vector<64x16xf32> -> vector<64x16xf32>
    %54 = arith.addf %49, %53 : vector<64x16xf32>
    %c0_55 = arith.constant 0 : index
    %c1_56 = arith.constant 1 : index
    %c0_57 = arith.constant 0 : index
    %c0_58 = arith.constant 0 : index
    %55 = vector.load %arg2[%c0_55, %c1_56, %c0_57, %c0_58] : memref<1x9x9x3xbf16, #tpu.memory_space<vmem>>, vector<1x8x8x3xbf16>
    %56 = vector.shape_cast %55 : vector<1x8x8x3xbf16> to vector<8x8x3xbf16>
    %57 = vector.shape_cast %56 : vector<8x8x3xbf16> to vector<64x3xbf16>
    %cst_59 = arith.constant dense<0.000000e+00> : vector<64x16xf32>
    %58 = tpu.matmul %57, %15, %cst_59 {dimension_numbers = #tpu.dot_dimension_numbers<[1], [0], [0], [1], [0, 0, 1, 1], [], []>} : vector<64x3xbf16>, vector<3x16xbf16>, vector<64x16xf32> -> vector<64x16xf32>
    %59 = arith.addf %54, %58 : vector<64x16xf32>
    %c0_60 = arith.constant 0 : index
    %c1_61 = arith.constant 1 : index
    %c1_62 = arith.constant 1 : index
    %c0_63 = arith.constant 0 : index
    %60 = vector.load %arg1[%c0_60, %c1_61, %c1_62, %c0_63] : memref<1x9x9x3xbf16, #tpu.memory_space<vmem>>, vector<1x8x8x3xbf16>
    %61 = vector.shape_cast %60 : vector<1x8x8x3xbf16> to vector<8x8x3xbf16>
    %62 = vector.shape_cast %61 : vector<8x8x3xbf16> to vector<64x3xbf16>
    %cst_64 = arith.constant dense<0.000000e+00> : vector<64x16xf32>
    %63 = tpu.matmul %62, %17, %cst_64 {dimension_numbers = #tpu.dot_dimension_numbers<[1], [0], [0], [1], [0, 0, 1, 1], [], []>} : vector<64x3xbf16>, vector<3x16xbf16>, vector<64x16xf32> -> vector<64x16xf32>
    %64 = arith.addf %59, %63 : vector<64x16xf32>
    %65 = vector.broadcast %18 : vector<1x16xf32> to vector<64x16xf32>
    %66 = arith.addf %64, %65 : vector<64x16xf32>
    %cst_65 = arith.constant 0.000000e+00 : f32
    %67 = vector.broadcast %cst_65 : f32 to vector<64x16xf32>
    %68 = arith.maximumf %66, %67 : vector<64x16xf32>
    %69 = arith.truncf %68 : vector<64x16xf32> to vector<64x16xbf16>
    %70 = vector.shape_cast %69 : vector<64x16xbf16> to vector<8x8x16xbf16>
    %c0_66 = arith.constant 0 : index
    %c0_67 = arith.constant 0 : index
    %c0_68 = arith.constant 0 : index
    %c0_69 = arith.constant 0 : index
    %71 = vector.load %arg7[%c0_66, %c0_67, %c0_68, %c0_69] : memref<1x8x8x16xbf16, #tpu.memory_space<vmem>>, vector<1x8x8x16xbf16>
    %72 = vector.shape_cast %71 : vector<1x8x8x16xbf16> to vector<8x8x16xbf16>
    %73 = vector.shape_cast %70 : vector<8x8x16xbf16> to vector<1x8x8x16xbf16>
    tpu.vector_store %arg7[%c0_66, %c0_67, %c0_68, %c0_69], %73 {strides = array<i32>} : memref<1x8x8x16xbf16, #tpu.memory_space<vmem>>, vector<1x8x8x16xbf16>,
    return
  }
  func.func @transform_0(%arg0: i32) -> (i32, i32, i32, i32) {
    %c0_i32 = arith.constant 0 : i32
    %c0_i32_0 = arith.constant 0 : i32
    %c0_i32_1 = arith.constant 0 : i32
    %c0_i32_2 = arith.constant 0 : i32
    return %arg0, %c0_i32, %c0_i32_0, %c0_i32_1 : i32, i32, i32, i32
  }
  func.func @transform_1(%arg0: i32) -> (i32, i32, i32, i32) {
    %c0_i32 = arith.constant 0 : i32
    %c0_i32_0 = arith.constant 0 : i32
    %c0_i32_1 = arith.constant 0 : i32
    %c0_i32_2 = arith.constant 0 : i32
    return %arg0, %c0_i32, %c0_i32_0, %c0_i32_1 : i32, i32, i32, i32
  }
  func.func @transform_2(%arg0: i32) -> (i32, i32, i32, i32) {
    %c0_i32 = arith.constant 0 : i32
    %c0_i32_0 = arith.constant 0 : i32
    %c0_i32_1 = arith.constant 0 : i32
    %c0_i32_2 = arith.constant 0 : i32
    return %arg0, %c0_i32, %c0_i32_0, %c0_i32_1 : i32, i32, i32, i32
  }
  func.func @transform_3(%arg0: i32) -> (i32, i32, i32, i32) {
    %c0_i32 = arith.constant 0 : i32
    %c0_i32_0 = arith.constant 0 : i32
    %c0_i32_1 = arith.constant 0 : i32
    %c0_i32_2 = arith.constant 0 : i32
    return %arg0, %c0_i32, %c0_i32_0, %c0_i32_1 : i32, i32, i32, i32
  }
  func.func @transform_4(%arg0: i32) -> (i32, i32, i32) {
    %c0_i32 = arith.constant 0 : i32
    %c0_i32_0 = arith.constant 0 : i32
    %c0_i32_1 = arith.constant 0 : i32
    %c0_i32_2 = arith.constant 0 : i32
    return %c0_i32, %c0_i32_0, %c0_i32_1 : i32, i32, i32
  }
  func.func @transform_5(%arg0: i32) -> (i32, i32) {
    %c0_i32 = arith.constant 0 : i32
    %c0_i32_0 = arith.constant 0 : i32
    %c0_i32_1 = arith.constant 0 : i32
    return %c0_i32, %c0_i32_0 : i32, i32
  }
  func.func @transform_6(%arg0: i32) -> (i32, i32, i32, i32) {
    %c0_i32 = arith.constant 0 : i32
    %c0_i32_0 = arith.constant 0 : i32
    %c0_i32_1 = arith.constant 0 : i32
    %c0_i32_2 = arith.constant 0 : i32
    return %arg0, %c0_i32, %c0_i32_0, %c0_i32_1 : i32, i32, i32, i32
  }
}

module attributes {stable_mosaic.version = 11 : i64} {
  func.func @_decoder_fused_kernel(%arg0: i32, %arg1: memref<1x6x6x32xbf16, #tpu.memory_space<vmem>>, %arg2: memref<9x32x32xbf16, #tpu.memory_space<vmem>>, %arg3: memref<1x32xf32, #tpu.memory_space<vmem>>, %arg4: memref<32x8xbf16, #tpu.memory_space<vmem>>, %arg5: memref<1x8xf32, #tpu.memory_space<vmem>>, %arg6: memref<1x4x4x8xbf16, #tpu.memory_space<vmem>>) attributes {dimension_semantics = [#tpu.dimension_semantics<parallel>], iteration_bounds = array<i64: 2>, scalar_prefetch = 0 : i64, scratch_operands = 0 : i64, tpu.core_type = #tpu.core_type<tc>, window_params = [{transform_indices = @transform_0, window_bounds = array<i64: 1, 6, 6, 32>}, {pipeline_mode = #tpu.pipeline_mode<synchronous>, transform_indices = @transform_1, window_bounds = array<i64: 9, 32, 32>}, {pipeline_mode = #tpu.pipeline_mode<synchronous>, transform_indices = @transform_2, window_bounds = array<i64: 1, 32>}, {pipeline_mode = #tpu.pipeline_mode<synchronous>, transform_indices = @transform_3, window_bounds = array<i64: 32, 8>}, {pipeline_mode = #tpu.pipeline_mode<synchronous>, transform_indices = @transform_4, window_bounds = array<i64: 1, 8>}, {transform_indices = @transform_5, window_bounds = array<i64: 1, 4, 4, 8>}]} {
    %c0 = arith.constant 0 : index
    %c0_0 = arith.constant 0 : index
    %c0_1 = arith.constant 0 : index
    %0 = vector.load %arg2[%c0, %c0_0, %c0_1] : memref<9x32x32xbf16, #tpu.memory_space<vmem>>, vector<1x32x32xbf16>
    %1 = vector.shape_cast %0 : vector<1x32x32xbf16> to vector<32x32xbf16>
    %c1 = arith.constant 1 : index
    %c0_2 = arith.constant 0 : index
    %c0_3 = arith.constant 0 : index
    %2 = vector.load %arg2[%c1, %c0_2, %c0_3] : memref<9x32x32xbf16, #tpu.memory_space<vmem>>, vector<1x32x32xbf16>
    %3 = vector.shape_cast %2 : vector<1x32x32xbf16> to vector<32x32xbf16>
    %c2 = arith.constant 2 : index
    %c0_4 = arith.constant 0 : index
    %c0_5 = arith.constant 0 : index
    %4 = vector.load %arg2[%c2, %c0_4, %c0_5] : memref<9x32x32xbf16, #tpu.memory_space<vmem>>, vector<1x32x32xbf16>
    %5 = vector.shape_cast %4 : vector<1x32x32xbf16> to vector<32x32xbf16>
    %c3 = arith.constant 3 : index
    %c0_6 = arith.constant 0 : index
    %c0_7 = arith.constant 0 : index
    %6 = vector.load %arg2[%c3, %c0_6, %c0_7] : memref<9x32x32xbf16, #tpu.memory_space<vmem>>, vector<1x32x32xbf16>
    %7 = vector.shape_cast %6 : vector<1x32x32xbf16> to vector<32x32xbf16>
    %c4 = arith.constant 4 : index
    %c0_8 = arith.constant 0 : index
    %c0_9 = arith.constant 0 : index
    %8 = vector.load %arg2[%c4, %c0_8, %c0_9] : memref<9x32x32xbf16, #tpu.memory_space<vmem>>, vector<1x32x32xbf16>
    %9 = vector.shape_cast %8 : vector<1x32x32xbf16> to vector<32x32xbf16>
    %c5 = arith.constant 5 : index
    %c0_10 = arith.constant 0 : index
    %c0_11 = arith.constant 0 : index
    %10 = vector.load %arg2[%c5, %c0_10, %c0_11] : memref<9x32x32xbf16, #tpu.memory_space<vmem>>, vector<1x32x32xbf16>
    %11 = vector.shape_cast %10 : vector<1x32x32xbf16> to vector<32x32xbf16>
    %c6 = arith.constant 6 : index
    %c0_12 = arith.constant 0 : index
    %c0_13 = arith.constant 0 : index
    %12 = vector.load %arg2[%c6, %c0_12, %c0_13] : memref<9x32x32xbf16, #tpu.memory_space<vmem>>, vector<1x32x32xbf16>
    %13 = vector.shape_cast %12 : vector<1x32x32xbf16> to vector<32x32xbf16>
    %c7 = arith.constant 7 : index
    %c0_14 = arith.constant 0 : index
    %c0_15 = arith.constant 0 : index
    %14 = vector.load %arg2[%c7, %c0_14, %c0_15] : memref<9x32x32xbf16, #tpu.memory_space<vmem>>, vector<1x32x32xbf16>
    %15 = vector.shape_cast %14 : vector<1x32x32xbf16> to vector<32x32xbf16>
    %c8 = arith.constant 8 : index
    %c0_16 = arith.constant 0 : index
    %c0_17 = arith.constant 0 : index
    %16 = vector.load %arg2[%c8, %c0_16, %c0_17] : memref<9x32x32xbf16, #tpu.memory_space<vmem>>, vector<1x32x32xbf16>
    %17 = vector.shape_cast %16 : vector<1x32x32xbf16> to vector<32x32xbf16>
    %c0_18 = arith.constant 0 : index
    %c0_19 = arith.constant 0 : index
    %18 = vector.load %arg3[%c0_18, %c0_19] : memref<1x32xf32, #tpu.memory_space<vmem>>, vector<1x32xf32>
    %c0_20 = arith.constant 0 : index
    %c0_21 = arith.constant 0 : index
    %19 = vector.load %arg4[%c0_20, %c0_21] : memref<32x8xbf16, #tpu.memory_space<vmem>>, vector<32x8xbf16>
    %c0_22 = arith.constant 0 : index
    %c0_23 = arith.constant 0 : index
    %20 = vector.load %arg5[%c0_22, %c0_23] : memref<1x8xf32, #tpu.memory_space<vmem>>, vector<1x8xf32>
    %cst = arith.constant 0.000000e+00 : f32
    %21 = vector.broadcast %cst : f32 to vector<16x32xf32>
    %c0_24 = arith.constant 0 : index
    %c0_25 = arith.constant 0 : index
    %c0_26 = arith.constant 0 : index
    %c0_27 = arith.constant 0 : index
    %22 = vector.load %arg1[%c0_24, %c0_25, %c0_26, %c0_27] : memref<1x6x6x32xbf16, #tpu.memory_space<vmem>>, vector<1x4x4x32xbf16>
    %23 = vector.shape_cast %22 : vector<1x4x4x32xbf16> to vector<4x4x32xbf16>
    %24 = vector.shape_cast %23 : vector<4x4x32xbf16> to vector<16x32xbf16>
    %cst_28 = arith.constant dense<0.000000e+00> : vector<16x32xf32>
    %25 = tpu.matmul %24, %1, %cst_28 {dimension_numbers = #tpu.dot_dimension_numbers<[1], [0], [0], [1], [0, 0, 1, 1], [], []>} : vector<16x32xbf16>, vector<32x32xbf16>, vector<16x32xf32> -> vector<16x32xf32>
    %26 = arith.addf %21, %25 : vector<16x32xf32>
    %c0_29 = arith.constant 0 : index
    %c0_30 = arith.constant 0 : index
    %c1_31 = arith.constant 1 : index
    %c0_32 = arith.constant 0 : index
    %27 = vector.load %arg1[%c0_29, %c0_30, %c1_31, %c0_32] : memref<1x6x6x32xbf16, #tpu.memory_space<vmem>>, vector<1x4x4x32xbf16>
    %28 = vector.shape_cast %27 : vector<1x4x4x32xbf16> to vector<4x4x32xbf16>
    %29 = vector.shape_cast %28 : vector<4x4x32xbf16> to vector<16x32xbf16>
    %cst_33 = arith.constant dense<0.000000e+00> : vector<16x32xf32>
    %30 = tpu.matmul %29, %3, %cst_33 {dimension_numbers = #tpu.dot_dimension_numbers<[1], [0], [0], [1], [0, 0, 1, 1], [], []>} : vector<16x32xbf16>, vector<32x32xbf16>, vector<16x32xf32> -> vector<16x32xf32>
    %31 = arith.addf %26, %30 : vector<16x32xf32>
    %c0_34 = arith.constant 0 : index
    %c0_35 = arith.constant 0 : index
    %c2_36 = arith.constant 2 : index
    %c0_37 = arith.constant 0 : index
    %32 = vector.load %arg1[%c0_34, %c0_35, %c2_36, %c0_37] : memref<1x6x6x32xbf16, #tpu.memory_space<vmem>>, vector<1x4x4x32xbf16>
    %33 = vector.shape_cast %32 : vector<1x4x4x32xbf16> to vector<4x4x32xbf16>
    %34 = vector.shape_cast %33 : vector<4x4x32xbf16> to vector<16x32xbf16>
    %cst_38 = arith.constant dense<0.000000e+00> : vector<16x32xf32>
    %35 = tpu.matmul %34, %5, %cst_38 {dimension_numbers = #tpu.dot_dimension_numbers<[1], [0], [0], [1], [0, 0, 1, 1], [], []>} : vector<16x32xbf16>, vector<32x32xbf16>, vector<16x32xf32> -> vector<16x32xf32>
    %36 = arith.addf %31, %35 : vector<16x32xf32>
    %c0_39 = arith.constant 0 : index
    %c1_40 = arith.constant 1 : index
    %c0_41 = arith.constant 0 : index
    %c0_42 = arith.constant 0 : index
    %37 = vector.load %arg1[%c0_39, %c1_40, %c0_41, %c0_42] : memref<1x6x6x32xbf16, #tpu.memory_space<vmem>>, vector<1x4x4x32xbf16>
    %38 = vector.shape_cast %37 : vector<1x4x4x32xbf16> to vector<4x4x32xbf16>
    %39 = vector.shape_cast %38 : vector<4x4x32xbf16> to vector<16x32xbf16>
    %cst_43 = arith.constant dense<0.000000e+00> : vector<16x32xf32>
    %40 = tpu.matmul %39, %7, %cst_43 {dimension_numbers = #tpu.dot_dimension_numbers<[1], [0], [0], [1], [0, 0, 1, 1], [], []>} : vector<16x32xbf16>, vector<32x32xbf16>, vector<16x32xf32> -> vector<16x32xf32>
    %41 = arith.addf %36, %40 : vector<16x32xf32>
    %c0_44 = arith.constant 0 : index
    %c1_45 = arith.constant 1 : index
    %c1_46 = arith.constant 1 : index
    %c0_47 = arith.constant 0 : index
    %42 = vector.load %arg1[%c0_44, %c1_45, %c1_46, %c0_47] : memref<1x6x6x32xbf16, #tpu.memory_space<vmem>>, vector<1x4x4x32xbf16>
    %43 = vector.shape_cast %42 : vector<1x4x4x32xbf16> to vector<4x4x32xbf16>
    %44 = vector.shape_cast %43 : vector<4x4x32xbf16> to vector<16x32xbf16>
    %cst_48 = arith.constant dense<0.000000e+00> : vector<16x32xf32>
    %45 = tpu.matmul %44, %9, %cst_48 {dimension_numbers = #tpu.dot_dimension_numbers<[1], [0], [0], [1], [0, 0, 1, 1], [], []>} : vector<16x32xbf16>, vector<32x32xbf16>, vector<16x32xf32> -> vector<16x32xf32>
    %46 = arith.addf %41, %45 : vector<16x32xf32>
    %c0_49 = arith.constant 0 : index
    %c1_50 = arith.constant 1 : index
    %c2_51 = arith.constant 2 : index
    %c0_52 = arith.constant 0 : index
    %47 = vector.load %arg1[%c0_49, %c1_50, %c2_51, %c0_52] : memref<1x6x6x32xbf16, #tpu.memory_space<vmem>>, vector<1x4x4x32xbf16>
    %48 = vector.shape_cast %47 : vector<1x4x4x32xbf16> to vector<4x4x32xbf16>
    %49 = vector.shape_cast %48 : vector<4x4x32xbf16> to vector<16x32xbf16>
    %cst_53 = arith.constant dense<0.000000e+00> : vector<16x32xf32>
    %50 = tpu.matmul %49, %11, %cst_53 {dimension_numbers = #tpu.dot_dimension_numbers<[1], [0], [0], [1], [0, 0, 1, 1], [], []>} : vector<16x32xbf16>, vector<32x32xbf16>, vector<16x32xf32> -> vector<16x32xf32>
    %51 = arith.addf %46, %50 : vector<16x32xf32>
    %c0_54 = arith.constant 0 : index
    %c2_55 = arith.constant 2 : index
    %c0_56 = arith.constant 0 : index
    %c0_57 = arith.constant 0 : index
    %52 = vector.load %arg1[%c0_54, %c2_55, %c0_56, %c0_57] : memref<1x6x6x32xbf16, #tpu.memory_space<vmem>>, vector<1x4x4x32xbf16>
    %53 = vector.shape_cast %52 : vector<1x4x4x32xbf16> to vector<4x4x32xbf16>
    %54 = vector.shape_cast %53 : vector<4x4x32xbf16> to vector<16x32xbf16>
    %cst_58 = arith.constant dense<0.000000e+00> : vector<16x32xf32>
    %55 = tpu.matmul %54, %13, %cst_58 {dimension_numbers = #tpu.dot_dimension_numbers<[1], [0], [0], [1], [0, 0, 1, 1], [], []>} : vector<16x32xbf16>, vector<32x32xbf16>, vector<16x32xf32> -> vector<16x32xf32>
    %56 = arith.addf %51, %55 : vector<16x32xf32>
    %c0_59 = arith.constant 0 : index
    %c2_60 = arith.constant 2 : index
    %c1_61 = arith.constant 1 : index
    %c0_62 = arith.constant 0 : index
    %57 = vector.load %arg1[%c0_59, %c2_60, %c1_61, %c0_62] : memref<1x6x6x32xbf16, #tpu.memory_space<vmem>>, vector<1x4x4x32xbf16>
    %58 = vector.shape_cast %57 : vector<1x4x4x32xbf16> to vector<4x4x32xbf16>
    %59 = vector.shape_cast %58 : vector<4x4x32xbf16> to vector<16x32xbf16>
    %cst_63 = arith.constant dense<0.000000e+00> : vector<16x32xf32>
    %60 = tpu.matmul %59, %15, %cst_63 {dimension_numbers = #tpu.dot_dimension_numbers<[1], [0], [0], [1], [0, 0, 1, 1], [], []>} : vector<16x32xbf16>, vector<32x32xbf16>, vector<16x32xf32> -> vector<16x32xf32>
    %61 = arith.addf %56, %60 : vector<16x32xf32>
    %c0_64 = arith.constant 0 : index
    %c2_65 = arith.constant 2 : index
    %c2_66 = arith.constant 2 : index
    %c0_67 = arith.constant 0 : index
    %62 = vector.load %arg1[%c0_64, %c2_65, %c2_66, %c0_67] : memref<1x6x6x32xbf16, #tpu.memory_space<vmem>>, vector<1x4x4x32xbf16>
    %63 = vector.shape_cast %62 : vector<1x4x4x32xbf16> to vector<4x4x32xbf16>
    %64 = vector.shape_cast %63 : vector<4x4x32xbf16> to vector<16x32xbf16>
    %cst_68 = arith.constant dense<0.000000e+00> : vector<16x32xf32>
    %65 = tpu.matmul %64, %17, %cst_68 {dimension_numbers = #tpu.dot_dimension_numbers<[1], [0], [0], [1], [0, 0, 1, 1], [], []>} : vector<16x32xbf16>, vector<32x32xbf16>, vector<16x32xf32> -> vector<16x32xf32>
    %66 = arith.addf %61, %65 : vector<16x32xf32>
    %67 = vector.broadcast %18 : vector<1x32xf32> to vector<16x32xf32>
    %68 = arith.addf %66, %67 : vector<16x32xf32>
    %cst_69 = arith.constant 0.000000e+00 : f32
    %69 = vector.broadcast %cst_69 : f32 to vector<16x32xf32>
    %70 = arith.maximumf %68, %69 : vector<16x32xf32>
    %71 = arith.truncf %70 : vector<16x32xf32> to vector<16x32xbf16>
    %cst_70 = arith.constant dense<0.000000e+00> : vector<16x8xf32>
    %72 = tpu.matmul %71, %19, %cst_70 {dimension_numbers = #tpu.dot_dimension_numbers<[1], [0], [0], [1], [0, 0, 1, 1], [], []>} : vector<16x32xbf16>, vector<32x8xbf16>, vector<16x8xf32> -> vector<16x8xf32>
    %73 = vector.broadcast %20 : vector<1x8xf32> to vector<16x8xf32>
    %74 = arith.addf %72, %73 : vector<16x8xf32>
    %75 = vector.shape_cast %74 : vector<16x8xf32> to vector<4x4x8xf32>
    %76 = arith.truncf %75 : vector<4x4x8xf32> to vector<4x4x8xbf16>
    %c0_71 = arith.constant 0 : index
    %c0_72 = arith.constant 0 : index
    %c0_73 = arith.constant 0 : index
    %c0_74 = arith.constant 0 : index
    %77 = vector.load %arg6[%c0_71, %c0_72, %c0_73, %c0_74] : memref<1x4x4x8xbf16, #tpu.memory_space<vmem>>, vector<1x4x4x8xbf16>
    %78 = vector.shape_cast %77 : vector<1x4x4x8xbf16> to vector<4x4x8xbf16>
    %79 = vector.shape_cast %76 : vector<4x4x8xbf16> to vector<1x4x4x8xbf16>
    tpu.vector_store %arg6[%c0_71, %c0_72, %c0_73, %c0_74], %79 {strides = array<i32>} : memref<1x4x4x8xbf16, #tpu.memory_space<vmem>>, vector<1x4x4x8xbf16>,
    return
  }
  func.func @transform_0(%arg0: i32) -> (i32, i32, i32, i32) {
    %c0_i32 = arith.constant 0 : i32
    %c0_i32_0 = arith.constant 0 : i32
    %c0_i32_1 = arith.constant 0 : i32
    %c0_i32_2 = arith.constant 0 : i32
    return %arg0, %c0_i32, %c0_i32_0, %c0_i32_1 : i32, i32, i32, i32
  }
  func.func @transform_1(%arg0: i32) -> (i32, i32, i32) {
    %c0_i32 = arith.constant 0 : i32
    %c0_i32_0 = arith.constant 0 : i32
    %c0_i32_1 = arith.constant 0 : i32
    %c0_i32_2 = arith.constant 0 : i32
    return %c0_i32, %c0_i32_0, %c0_i32_1 : i32, i32, i32
  }
  func.func @transform_2(%arg0: i32) -> (i32, i32) {
    %c0_i32 = arith.constant 0 : i32
    %c0_i32_0 = arith.constant 0 : i32
    %c0_i32_1 = arith.constant 0 : i32
    return %c0_i32, %c0_i32_0 : i32, i32
  }
  func.func @transform_3(%arg0: i32) -> (i32, i32) {
    %c0_i32 = arith.constant 0 : i32
    %c0_i32_0 = arith.constant 0 : i32
    %c0_i32_1 = arith.constant 0 : i32
    return %c0_i32, %c0_i32_0 : i32, i32
  }
  func.func @transform_4(%arg0: i32) -> (i32, i32) {
    %c0_i32 = arith.constant 0 : i32
    %c0_i32_0 = arith.constant 0 : i32
    %c0_i32_1 = arith.constant 0 : i32
    return %c0_i32, %c0_i32_0 : i32, i32
  }
  func.func @transform_5(%arg0: i32) -> (i32, i32, i32, i32) {
    %c0_i32 = arith.constant 0 : i32
    %c0_i32_0 = arith.constant 0 : i32
    %c0_i32_1 = arith.constant 0 : i32
    %c0_i32_2 = arith.constant 0 : i32
    return %arg0, %c0_i32, %c0_i32_0, %c0_i32_1 : i32, i32, i32, i32
  }
}

module attributes {stable_mosaic.version = 11 : i64} {
  func.func @_conv3x3_s2_kernel(%arg0: i32, %arg1: memref<1x5x5x16xbf16, #tpu.memory_space<vmem>>, %arg2: memref<1x5x5x16xbf16, #tpu.memory_space<vmem>>, %arg3: memref<1x5x5x16xbf16, #tpu.memory_space<vmem>>, %arg4: memref<1x5x5x16xbf16, #tpu.memory_space<vmem>>, %arg5: memref<9x16x32xbf16, #tpu.memory_space<vmem>>, %arg6: memref<1x32xf32, #tpu.memory_space<vmem>>, %arg7: memref<1x4x4x32xbf16, #tpu.memory_space<vmem>>) attributes {dimension_semantics = [#tpu.dimension_semantics<parallel>], iteration_bounds = array<i64: 2>, scalar_prefetch = 0 : i64, scratch_operands = 0 : i64, tpu.core_type = #tpu.core_type<tc>, window_params = [{transform_indices = @transform_0, window_bounds = array<i64: 1, 5, 5, 16>}, {transform_indices = @transform_1, window_bounds = array<i64: 1, 5, 5, 16>}, {transform_indices = @transform_2, window_bounds = array<i64: 1, 5, 5, 16>}, {transform_indices = @transform_3, window_bounds = array<i64: 1, 5, 5, 16>}, {pipeline_mode = #tpu.pipeline_mode<synchronous>, transform_indices = @transform_4, window_bounds = array<i64: 9, 16, 32>}, {pipeline_mode = #tpu.pipeline_mode<synchronous>, transform_indices = @transform_5, window_bounds = array<i64: 1, 32>}, {transform_indices = @transform_6, window_bounds = array<i64: 1, 4, 4, 32>}]} {
    %c0 = arith.constant 0 : index
    %c0_0 = arith.constant 0 : index
    %c0_1 = arith.constant 0 : index
    %0 = vector.load %arg5[%c0, %c0_0, %c0_1] : memref<9x16x32xbf16, #tpu.memory_space<vmem>>, vector<1x16x32xbf16>
    %1 = vector.shape_cast %0 : vector<1x16x32xbf16> to vector<16x32xbf16>
    %c1 = arith.constant 1 : index
    %c0_2 = arith.constant 0 : index
    %c0_3 = arith.constant 0 : index
    %2 = vector.load %arg5[%c1, %c0_2, %c0_3] : memref<9x16x32xbf16, #tpu.memory_space<vmem>>, vector<1x16x32xbf16>
    %3 = vector.shape_cast %2 : vector<1x16x32xbf16> to vector<16x32xbf16>
    %c2 = arith.constant 2 : index
    %c0_4 = arith.constant 0 : index
    %c0_5 = arith.constant 0 : index
    %4 = vector.load %arg5[%c2, %c0_4, %c0_5] : memref<9x16x32xbf16, #tpu.memory_space<vmem>>, vector<1x16x32xbf16>
    %5 = vector.shape_cast %4 : vector<1x16x32xbf16> to vector<16x32xbf16>
    %c3 = arith.constant 3 : index
    %c0_6 = arith.constant 0 : index
    %c0_7 = arith.constant 0 : index
    %6 = vector.load %arg5[%c3, %c0_6, %c0_7] : memref<9x16x32xbf16, #tpu.memory_space<vmem>>, vector<1x16x32xbf16>
    %7 = vector.shape_cast %6 : vector<1x16x32xbf16> to vector<16x32xbf16>
    %c4 = arith.constant 4 : index
    %c0_8 = arith.constant 0 : index
    %c0_9 = arith.constant 0 : index
    %8 = vector.load %arg5[%c4, %c0_8, %c0_9] : memref<9x16x32xbf16, #tpu.memory_space<vmem>>, vector<1x16x32xbf16>
    %9 = vector.shape_cast %8 : vector<1x16x32xbf16> to vector<16x32xbf16>
    %c5 = arith.constant 5 : index
    %c0_10 = arith.constant 0 : index
    %c0_11 = arith.constant 0 : index
    %10 = vector.load %arg5[%c5, %c0_10, %c0_11] : memref<9x16x32xbf16, #tpu.memory_space<vmem>>, vector<1x16x32xbf16>
    %11 = vector.shape_cast %10 : vector<1x16x32xbf16> to vector<16x32xbf16>
    %c6 = arith.constant 6 : index
    %c0_12 = arith.constant 0 : index
    %c0_13 = arith.constant 0 : index
    %12 = vector.load %arg5[%c6, %c0_12, %c0_13] : memref<9x16x32xbf16, #tpu.memory_space<vmem>>, vector<1x16x32xbf16>
    %13 = vector.shape_cast %12 : vector<1x16x32xbf16> to vector<16x32xbf16>
    %c7 = arith.constant 7 : index
    %c0_14 = arith.constant 0 : index
    %c0_15 = arith.constant 0 : index
    %14 = vector.load %arg5[%c7, %c0_14, %c0_15] : memref<9x16x32xbf16, #tpu.memory_space<vmem>>, vector<1x16x32xbf16>
    %15 = vector.shape_cast %14 : vector<1x16x32xbf16> to vector<16x32xbf16>
    %c8 = arith.constant 8 : index
    %c0_16 = arith.constant 0 : index
    %c0_17 = arith.constant 0 : index
    %16 = vector.load %arg5[%c8, %c0_16, %c0_17] : memref<9x16x32xbf16, #tpu.memory_space<vmem>>, vector<1x16x32xbf16>
    %17 = vector.shape_cast %16 : vector<1x16x32xbf16> to vector<16x32xbf16>
    %c0_18 = arith.constant 0 : index
    %c0_19 = arith.constant 0 : index
    %18 = vector.load %arg6[%c0_18, %c0_19] : memref<1x32xf32, #tpu.memory_space<vmem>>, vector<1x32xf32>
    %cst = arith.constant 0.000000e+00 : f32
    %19 = vector.broadcast %cst : f32 to vector<16x32xf32>
    %c0_20 = arith.constant 0 : index
    %c0_21 = arith.constant 0 : index
    %c0_22 = arith.constant 0 : index
    %c0_23 = arith.constant 0 : index
    %20 = vector.load %arg1[%c0_20, %c0_21, %c0_22, %c0_23] : memref<1x5x5x16xbf16, #tpu.memory_space<vmem>>, vector<1x4x4x16xbf16>
    %21 = vector.shape_cast %20 : vector<1x4x4x16xbf16> to vector<4x4x16xbf16>
    %22 = vector.shape_cast %21 : vector<4x4x16xbf16> to vector<16x16xbf16>
    %cst_24 = arith.constant dense<0.000000e+00> : vector<16x32xf32>
    %23 = tpu.matmul %22, %1, %cst_24 {dimension_numbers = #tpu.dot_dimension_numbers<[1], [0], [0], [1], [0, 0, 1, 1], [], []>} : vector<16x16xbf16>, vector<16x32xbf16>, vector<16x32xf32> -> vector<16x32xf32>
    %24 = arith.addf %19, %23 : vector<16x32xf32>
    %c0_25 = arith.constant 0 : index
    %c0_26 = arith.constant 0 : index
    %c0_27 = arith.constant 0 : index
    %c0_28 = arith.constant 0 : index
    %25 = vector.load %arg2[%c0_25, %c0_26, %c0_27, %c0_28] : memref<1x5x5x16xbf16, #tpu.memory_space<vmem>>, vector<1x4x4x16xbf16>
    %26 = vector.shape_cast %25 : vector<1x4x4x16xbf16> to vector<4x4x16xbf16>
    %27 = vector.shape_cast %26 : vector<4x4x16xbf16> to vector<16x16xbf16>
    %cst_29 = arith.constant dense<0.000000e+00> : vector<16x32xf32>
    %28 = tpu.matmul %27, %3, %cst_29 {dimension_numbers = #tpu.dot_dimension_numbers<[1], [0], [0], [1], [0, 0, 1, 1], [], []>} : vector<16x16xbf16>, vector<16x32xbf16>, vector<16x32xf32> -> vector<16x32xf32>
    %29 = arith.addf %24, %28 : vector<16x32xf32>
    %c0_30 = arith.constant 0 : index
    %c0_31 = arith.constant 0 : index
    %c1_32 = arith.constant 1 : index
    %c0_33 = arith.constant 0 : index
    %30 = vector.load %arg1[%c0_30, %c0_31, %c1_32, %c0_33] : memref<1x5x5x16xbf16, #tpu.memory_space<vmem>>, vector<1x4x4x16xbf16>
    %31 = vector.shape_cast %30 : vector<1x4x4x16xbf16> to vector<4x4x16xbf16>
    %32 = vector.shape_cast %31 : vector<4x4x16xbf16> to vector<16x16xbf16>
    %cst_34 = arith.constant dense<0.000000e+00> : vector<16x32xf32>
    %33 = tpu.matmul %32, %5, %cst_34 {dimension_numbers = #tpu.dot_dimension_numbers<[1], [0], [0], [1], [0, 0, 1, 1], [], []>} : vector<16x16xbf16>, vector<16x32xbf16>, vector<16x32xf32> -> vector<16x32xf32>
    %34 = arith.addf %29, %33 : vector<16x32xf32>
    %c0_35 = arith.constant 0 : index
    %c0_36 = arith.constant 0 : index
    %c0_37 = arith.constant 0 : index
    %c0_38 = arith.constant 0 : index
    %35 = vector.load %arg3[%c0_35, %c0_36, %c0_37, %c0_38] : memref<1x5x5x16xbf16, #tpu.memory_space<vmem>>, vector<1x4x4x16xbf16>
    %36 = vector.shape_cast %35 : vector<1x4x4x16xbf16> to vector<4x4x16xbf16>
    %37 = vector.shape_cast %36 : vector<4x4x16xbf16> to vector<16x16xbf16>
    %cst_39 = arith.constant dense<0.000000e+00> : vector<16x32xf32>
    %38 = tpu.matmul %37, %7, %cst_39 {dimension_numbers = #tpu.dot_dimension_numbers<[1], [0], [0], [1], [0, 0, 1, 1], [], []>} : vector<16x16xbf16>, vector<16x32xbf16>, vector<16x32xf32> -> vector<16x32xf32>
    %39 = arith.addf %34, %38 : vector<16x32xf32>
    %c0_40 = arith.constant 0 : index
    %c0_41 = arith.constant 0 : index
    %c0_42 = arith.constant 0 : index
    %c0_43 = arith.constant 0 : index
    %40 = vector.load %arg4[%c0_40, %c0_41, %c0_42, %c0_43] : memref<1x5x5x16xbf16, #tpu.memory_space<vmem>>, vector<1x4x4x16xbf16>
    %41 = vector.shape_cast %40 : vector<1x4x4x16xbf16> to vector<4x4x16xbf16>
    %42 = vector.shape_cast %41 : vector<4x4x16xbf16> to vector<16x16xbf16>
    %cst_44 = arith.constant dense<0.000000e+00> : vector<16x32xf32>
    %43 = tpu.matmul %42, %9, %cst_44 {dimension_numbers = #tpu.dot_dimension_numbers<[1], [0], [0], [1], [0, 0, 1, 1], [], []>} : vector<16x16xbf16>, vector<16x32xbf16>, vector<16x32xf32> -> vector<16x32xf32>
    %44 = arith.addf %39, %43 : vector<16x32xf32>
    %c0_45 = arith.constant 0 : index
    %c0_46 = arith.constant 0 : index
    %c1_47 = arith.constant 1 : index
    %c0_48 = arith.constant 0 : index
    %45 = vector.load %arg3[%c0_45, %c0_46, %c1_47, %c0_48] : memref<1x5x5x16xbf16, #tpu.memory_space<vmem>>, vector<1x4x4x16xbf16>
    %46 = vector.shape_cast %45 : vector<1x4x4x16xbf16> to vector<4x4x16xbf16>
    %47 = vector.shape_cast %46 : vector<4x4x16xbf16> to vector<16x16xbf16>
    %cst_49 = arith.constant dense<0.000000e+00> : vector<16x32xf32>
    %48 = tpu.matmul %47, %11, %cst_49 {dimension_numbers = #tpu.dot_dimension_numbers<[1], [0], [0], [1], [0, 0, 1, 1], [], []>} : vector<16x16xbf16>, vector<16x32xbf16>, vector<16x32xf32> -> vector<16x32xf32>
    %49 = arith.addf %44, %48 : vector<16x32xf32>
    %c0_50 = arith.constant 0 : index
    %c1_51 = arith.constant 1 : index
    %c0_52 = arith.constant 0 : index
    %c0_53 = arith.constant 0 : index
    %50 = vector.load %arg1[%c0_50, %c1_51, %c0_52, %c0_53] : memref<1x5x5x16xbf16, #tpu.memory_space<vmem>>, vector<1x4x4x16xbf16>
    %51 = vector.shape_cast %50 : vector<1x4x4x16xbf16> to vector<4x4x16xbf16>
    %52 = vector.shape_cast %51 : vector<4x4x16xbf16> to vector<16x16xbf16>
    %cst_54 = arith.constant dense<0.000000e+00> : vector<16x32xf32>
    %53 = tpu.matmul %52, %13, %cst_54 {dimension_numbers = #tpu.dot_dimension_numbers<[1], [0], [0], [1], [0, 0, 1, 1], [], []>} : vector<16x16xbf16>, vector<16x32xbf16>, vector<16x32xf32> -> vector<16x32xf32>
    %54 = arith.addf %49, %53 : vector<16x32xf32>
    %c0_55 = arith.constant 0 : index
    %c1_56 = arith.constant 1 : index
    %c0_57 = arith.constant 0 : index
    %c0_58 = arith.constant 0 : index
    %55 = vector.load %arg2[%c0_55, %c1_56, %c0_57, %c0_58] : memref<1x5x5x16xbf16, #tpu.memory_space<vmem>>, vector<1x4x4x16xbf16>
    %56 = vector.shape_cast %55 : vector<1x4x4x16xbf16> to vector<4x4x16xbf16>
    %57 = vector.shape_cast %56 : vector<4x4x16xbf16> to vector<16x16xbf16>
    %cst_59 = arith.constant dense<0.000000e+00> : vector<16x32xf32>
    %58 = tpu.matmul %57, %15, %cst_59 {dimension_numbers = #tpu.dot_dimension_numbers<[1], [0], [0], [1], [0, 0, 1, 1], [], []>} : vector<16x16xbf16>, vector<16x32xbf16>, vector<16x32xf32> -> vector<16x32xf32>
    %59 = arith.addf %54, %58 : vector<16x32xf32>
    %c0_60 = arith.constant 0 : index
    %c1_61 = arith.constant 1 : index
    %c1_62 = arith.constant 1 : index
    %c0_63 = arith.constant 0 : index
    %60 = vector.load %arg1[%c0_60, %c1_61, %c1_62, %c0_63] : memref<1x5x5x16xbf16, #tpu.memory_space<vmem>>, vector<1x4x4x16xbf16>
    %61 = vector.shape_cast %60 : vector<1x4x4x16xbf16> to vector<4x4x16xbf16>
    %62 = vector.shape_cast %61 : vector<4x4x16xbf16> to vector<16x16xbf16>
    %cst_64 = arith.constant dense<0.000000e+00> : vector<16x32xf32>
    %63 = tpu.matmul %62, %17, %cst_64 {dimension_numbers = #tpu.dot_dimension_numbers<[1], [0], [0], [1], [0, 0, 1, 1], [], []>} : vector<16x16xbf16>, vector<16x32xbf16>, vector<16x32xf32> -> vector<16x32xf32>
    %64 = arith.addf %59, %63 : vector<16x32xf32>
    %65 = vector.broadcast %18 : vector<1x32xf32> to vector<16x32xf32>
    %66 = arith.addf %64, %65 : vector<16x32xf32>
    %cst_65 = arith.constant 0.000000e+00 : f32
    %67 = vector.broadcast %cst_65 : f32 to vector<16x32xf32>
    %68 = arith.maximumf %66, %67 : vector<16x32xf32>
    %69 = arith.truncf %68 : vector<16x32xf32> to vector<16x32xbf16>
    %70 = vector.shape_cast %69 : vector<16x32xbf16> to vector<4x4x32xbf16>
    %c0_66 = arith.constant 0 : index
    %c0_67 = arith.constant 0 : index
    %c0_68 = arith.constant 0 : index
    %c0_69 = arith.constant 0 : index
    %71 = vector.load %arg7[%c0_66, %c0_67, %c0_68, %c0_69] : memref<1x4x4x32xbf16, #tpu.memory_space<vmem>>, vector<1x4x4x32xbf16>
    %72 = vector.shape_cast %71 : vector<1x4x4x32xbf16> to vector<4x4x32xbf16>
    %73 = vector.shape_cast %70 : vector<4x4x32xbf16> to vector<1x4x4x32xbf16>
    tpu.vector_store %arg7[%c0_66, %c0_67, %c0_68, %c0_69], %73 {strides = array<i32>} : memref<1x4x4x32xbf16, #tpu.memory_space<vmem>>, vector<1x4x4x32xbf16>,
    return
  }
  func.func @transform_0(%arg0: i32) -> (i32, i32, i32, i32) {
    %c0_i32 = arith.constant 0 : i32
    %c0_i32_0 = arith.constant 0 : i32
    %c0_i32_1 = arith.constant 0 : i32
    %c0_i32_2 = arith.constant 0 : i32
    return %arg0, %c0_i32, %c0_i32_0, %c0_i32_1 : i32, i32, i32, i32
  }
  func.func @transform_1(%arg0: i32) -> (i32, i32, i32, i32) {
    %c0_i32 = arith.constant 0 : i32
    %c0_i32_0 = arith.constant 0 : i32
    %c0_i32_1 = arith.constant 0 : i32
    %c0_i32_2 = arith.constant 0 : i32
    return %arg0, %c0_i32, %c0_i32_0, %c0_i32_1 : i32, i32, i32, i32
  }
  func.func @transform_2(%arg0: i32) -> (i32, i32, i32, i32) {
    %c0_i32 = arith.constant 0 : i32
    %c0_i32_0 = arith.constant 0 : i32
    %c0_i32_1 = arith.constant 0 : i32
    %c0_i32_2 = arith.constant 0 : i32
    return %arg0, %c0_i32, %c0_i32_0, %c0_i32_1 : i32, i32, i32, i32
  }
  func.func @transform_3(%arg0: i32) -> (i32, i32, i32, i32) {
    %c0_i32 = arith.constant 0 : i32
    %c0_i32_0 = arith.constant 0 : i32
    %c0_i32_1 = arith.constant 0 : i32
    %c0_i32_2 = arith.constant 0 : i32
    return %arg0, %c0_i32, %c0_i32_0, %c0_i32_1 : i32, i32, i32, i32
  }
  func.func @transform_4(%arg0: i32) -> (i32, i32, i32) {
    %c0_i32 = arith.constant 0 : i32
    %c0_i32_0 = arith.constant 0 : i32
    %c0_i32_1 = arith.constant 0 : i32
    %c0_i32_2 = arith.constant 0 : i32
    return %c0_i32, %c0_i32_0, %c0_i32_1 : i32, i32, i32
  }
  func.func @transform_5(%arg0: i32) -> (i32, i32) {
    %c0_i32 = arith.constant 0 : i32
    %c0_i32_0 = arith.constant 0 : i32
    %c0_i32_1 = arith.constant 0 : i32
    return %c0_i32, %c0_i32_0 : i32, i32
  }
  func.func @transform_6(%arg0: i32) -> (i32, i32, i32, i32) {
    %c0_i32 = arith.constant 0 : i32
    %c0_i32_0 = arith.constant 0 : i32
    %c0_i32_1 = arith.constant 0 : i32
    %c0_i32_2 = arith.constant 0 : i32
    return %arg0, %c0_i32, %c0_i32_0, %c0_i32_1 : i32, i32, i32, i32
  }
}

module attributes {stable_mosaic.version = 11 : i64} {
  func.func @_upsample_softmax_kernel(%arg0: i32, %arg1: i32, %arg2: memref<1x8x4x4xbf16, #tpu.memory_space<vmem>>, %arg3: memref<16x4xbf16, #tpu.memory_space<vmem>>, %arg4: memref<4x16xbf16, #tpu.memory_space<vmem>>, %arg5: memref<1x8x16x16xf32, #tpu.memory_space<vmem>>, %arg6: memref<8x16x16xf32, #tpu.memory_space<vmem>>, %arg7: memref<16x16xf32, #tpu.memory_space<vmem>>, %arg8: memref<16x16xf32, #tpu.memory_space<vmem>>) attributes {dimension_semantics = [#tpu.dimension_semantics<parallel>, #tpu.dimension_semantics<parallel>], iteration_bounds = array<i64: 2, 1>, scalar_prefetch = 0 : i64, scratch_operands = 3 : i64, tpu.core_type = #tpu.core_type<tc>, window_params = [{transform_indices = @transform_0, window_bounds = array<i64: 1, 8, 4, 4>}, {transform_indices = @transform_1, window_bounds = array<i64: 16, 4>}, {pipeline_mode = #tpu.pipeline_mode<synchronous>, transform_indices = @transform_2, window_bounds = array<i64: 4, 16>}, {transform_indices = @transform_3, window_bounds = array<i64: 1, 8, 16, 16>}]} {
    %c0 = arith.constant 0 : index
    %c0_0 = arith.constant 0 : index
    %0 = vector.load %arg3[%c0, %c0_0] : memref<16x4xbf16, #tpu.memory_space<vmem>>, vector<16x4xbf16>
    %c0_1 = arith.constant 0 : index
    %c0_2 = arith.constant 0 : index
    %1 = vector.load %arg4[%c0_1, %c0_2] : memref<4x16xbf16, #tpu.memory_space<vmem>>, vector<4x16xbf16>
    %cst = arith.constant 0xFF800000 : f32
    %2 = vector.broadcast %cst : f32 to vector<16x16xf32>
    %c0_3 = arith.constant 0 : index
    %c0_4 = arith.constant 0 : index
    %3 = vector.load %arg7[%c0_3, %c0_4] : memref<16x16xf32, #tpu.memory_space<vmem>>, vector<16x16xf32>
    tpu.vector_store %arg7[%c0_3, %c0_4], %2 {strides = array<i32>} : memref<16x16xf32, #tpu.memory_space<vmem>>, vector<16x16xf32>,
    %c0_i32 = arith.constant 0 : i32
    %c8_i32 = arith.constant 8 : i32
    %4 = arith.addi %c0_i32, %c8_i32 : i32
    %c1_i32 = arith.constant 1 : i32
    scf.for %arg9 = %c0_i32 to %4 step %c1_i32  : i32 {
      %c0_20 = arith.constant 0 : index
      %12 = arith.index_cast %arg9 : i32 to index
      %c0_21 = arith.constant 0 : index
      %c0_22 = arith.constant 0 : index
      %13 = vector.load %arg2[%c0_20, %12, %c0_21, %c0_22] : memref<1x8x4x4xbf16, #tpu.memory_space<vmem>>, vector<1x1x4x4xbf16>
      %14 = vector.shape_cast %13 : vector<1x1x4x4xbf16> to vector<4x4xbf16>
      %cst_23 = arith.constant dense<0.000000e+00> : vector<16x4xf32>
      %15 = tpu.matmul %0, %14, %cst_23 {dimension_numbers = #tpu.dot_dimension_numbers<[1], [0], [0], [1], [0, 0, 1, 1], [], []>} : vector<16x4xbf16>, vector<4x4xbf16>, vector<16x4xf32> -> vector<16x4xf32>
      %16 = arith.truncf %15 : vector<16x4xf32> to vector<16x4xbf16>
      %cst_24 = arith.constant dense<0.000000e+00> : vector<16x16xf32>
      %17 = tpu.matmul %16, %1, %cst_24 {dimension_numbers = #tpu.dot_dimension_numbers<[1], [0], [0], [1], [0, 0, 1, 1], [], []>} : vector<16x4xbf16>, vector<4x16xbf16>, vector<16x16xf32> -> vector<16x16xf32>
      %18 = arith.index_cast %arg9 : i32 to index
      %c0_25 = arith.constant 0 : index
      %c0_26 = arith.constant 0 : index
      %19 = vector.load %arg6[%18, %c0_25, %c0_26] : memref<8x16x16xf32, #tpu.memory_space<vmem>>, vector<1x16x16xf32>
      %20 = vector.shape_cast %19 : vector<1x16x16xf32> to vector<16x16xf32>
      %21 = vector.shape_cast %17 : vector<16x16xf32> to vector<1x16x16xf32>
      tpu.vector_store %arg6[%18, %c0_25, %c0_26], %21 {strides = array<i32>} : memref<8x16x16xf32, #tpu.memory_space<vmem>>, vector<1x16x16xf32>,
      %c0_27 = arith.constant 0 : index
      %c0_28 = arith.constant 0 : index
      %22 = vector.load %arg7[%c0_27, %c0_28] : memref<16x16xf32, #tpu.memory_space<vmem>>, vector<16x16xf32>
      %23 = arith.maximumf %22, %17 : vector<16x16xf32>
      %c0_29 = arith.constant 0 : index
      %c0_30 = arith.constant 0 : index
      %24 = vector.load %arg7[%c0_29, %c0_30] : memref<16x16xf32, #tpu.memory_space<vmem>>, vector<16x16xf32>
      tpu.vector_store %arg7[%c0_29, %c0_30], %23 {strides = array<i32>} : memref<16x16xf32, #tpu.memory_space<vmem>>, vector<16x16xf32>,
    }
    %c8_i32_5 = arith.constant 8 : i32
    %cst_6 = arith.constant 0.000000e+00 : f32
    %5 = vector.broadcast %cst_6 : f32 to vector<16x16xf32>
    %c0_7 = arith.constant 0 : index
    %c0_8 = arith.constant 0 : index
    %6 = vector.load %arg8[%c0_7, %c0_8] : memref<16x16xf32, #tpu.memory_space<vmem>>, vector<16x16xf32>
    tpu.vector_store %arg8[%c0_7, %c0_8], %5 {strides = array<i32>} : memref<16x16xf32, #tpu.memory_space<vmem>>, vector<16x16xf32>,
    %c0_i32_9 = arith.constant 0 : i32
    %c8_i32_10 = arith.constant 8 : i32
    %7 = arith.addi %c0_i32_9, %c8_i32_10 : i32
    %c1_i32_11 = arith.constant 1 : i32
    scf.for %arg9 = %c0_i32_9 to %7 step %c1_i32_11  : i32 {
      %12 = arith.index_cast %arg9 : i32 to index
      %c0_20 = arith.constant 0 : index
      %c0_21 = arith.constant 0 : index
      %13 = vector.load %arg6[%12, %c0_20, %c0_21] : memref<8x16x16xf32, #tpu.memory_space<vmem>>, vector<1x16x16xf32>
      %14 = vector.shape_cast %13 : vector<1x16x16xf32> to vector<16x16xf32>
      %c0_22 = arith.constant 0 : index
      %c0_23 = arith.constant 0 : index
      %15 = vector.load %arg7[%c0_22, %c0_23] : memref<16x16xf32, #tpu.memory_space<vmem>>, vector<16x16xf32>
      %16 = arith.subf %14, %15 : vector<16x16xf32>
      %17 = math.exp %16 : vector<16x16xf32>
      %18 = arith.index_cast %arg9 : i32 to index
      %c0_24 = arith.constant 0 : index
      %c0_25 = arith.constant 0 : index
      %19 = vector.load %arg6[%18, %c0_24, %c0_25] : memref<8x16x16xf32, #tpu.memory_space<vmem>>, vector<1x16x16xf32>
      %20 = vector.shape_cast %19 : vector<1x16x16xf32> to vector<16x16xf32>
      %21 = vector.shape_cast %17 : vector<16x16xf32> to vector<1x16x16xf32>
      tpu.vector_store %arg6[%18, %c0_24, %c0_25], %21 {strides = array<i32>} : memref<8x16x16xf32, #tpu.memory_space<vmem>>, vector<1x16x16xf32>,
      %c0_26 = arith.constant 0 : index
      %c0_27 = arith.constant 0 : index
      %22 = vector.load %arg8[%c0_26, %c0_27] : memref<16x16xf32, #tpu.memory_space<vmem>>, vector<16x16xf32>
      %23 = arith.addf %22, %17 : vector<16x16xf32>
      %c0_28 = arith.constant 0 : index
      %c0_29 = arith.constant 0 : index
      %24 = vector.load %arg8[%c0_28, %c0_29] : memref<16x16xf32, #tpu.memory_space<vmem>>, vector<16x16xf32>
      tpu.vector_store %arg8[%c0_28, %c0_29], %23 {strides = array<i32>} : memref<16x16xf32, #tpu.memory_space<vmem>>, vector<16x16xf32>,
    }
    %c8_i32_12 = arith.constant 8 : i32
    %c0_13 = arith.constant 0 : index
    %c0_14 = arith.constant 0 : index
    %8 = vector.load %arg8[%c0_13, %c0_14] : memref<16x16xf32, #tpu.memory_space<vmem>>, vector<16x16xf32>
    %cst_15 = arith.constant 1.000000e+00 : f32
    %9 = vector.broadcast %cst_15 : f32 to vector<16x16xf32>
    %10 = arith.divf %9, %8 : vector<16x16xf32>
    %c0_i32_16 = arith.constant 0 : i32
    %c8_i32_17 = arith.constant 8 : i32
    %11 = arith.addi %c0_i32_16, %c8_i32_17 : i32
    %c1_i32_18 = arith.constant 1 : i32
    scf.for %arg9 = %c0_i32_16 to %11 step %c1_i32_18  : i32 {
      %12 = arith.index_cast %arg9 : i32 to index
      %c0_20 = arith.constant 0 : index
      %c0_21 = arith.constant 0 : index
      %13 = vector.load %arg6[%12, %c0_20, %c0_21] : memref<8x16x16xf32, #tpu.memory_space<vmem>>, vector<1x16x16xf32>
      %14 = vector.shape_cast %13 : vector<1x16x16xf32> to vector<16x16xf32>
      %15 = arith.mulf %14, %10 : vector<16x16xf32>
      %c0_22 = arith.constant 0 : index
      %16 = arith.index_cast %arg9 : i32 to index
      %c0_23 = arith.constant 0 : index
      %c0_24 = arith.constant 0 : index
      %17 = vector.load %arg5[%c0_22, %16, %c0_23, %c0_24] : memref<1x8x16x16xf32, #tpu.memory_space<vmem>>, vector<1x1x16x16xf32>
      %18 = vector.shape_cast %17 : vector<1x1x16x16xf32> to vector<16x16xf32>
      %19 = vector.shape_cast %15 : vector<16x16xf32> to vector<1x1x16x16xf32>
      tpu.vector_store %arg5[%c0_22, %16, %c0_23, %c0_24], %19 {strides = array<i32>} : memref<1x8x16x16xf32, #tpu.memory_space<vmem>>, vector<1x1x16x16xf32>,
    }
    %c8_i32_19 = arith.constant 8 : i32
    return
  }
  func.func @transform_0(%arg0: i32, %arg1: i32) -> (i32, i32, i32, i32) {
    %c0_i32 = arith.constant 0 : i32
    %c0_i32_0 = arith.constant 0 : i32
    %c0_i32_1 = arith.constant 0 : i32
    %c0_i32_2 = arith.constant 0 : i32
    return %arg0, %c0_i32, %c0_i32_0, %c0_i32_1 : i32, i32, i32, i32
  }
  func.func @transform_1(%arg0: i32, %arg1: i32) -> (i32, i32) {
    %c0_i32 = arith.constant 0 : i32
    %c0_i32_0 = arith.constant 0 : i32
    return %arg1, %c0_i32 : i32, i32
  }
  func.func @transform_2(%arg0: i32, %arg1: i32) -> (i32, i32) {
    %c0_i32 = arith.constant 0 : i32
    %c0_i32_0 = arith.constant 0 : i32
    %c0_i32_1 = arith.constant 0 : i32
    return %c0_i32, %c0_i32_0 : i32, i32
  }
  func.func @transform_3(%arg0: i32, %arg1: i32) -> (i32, i32, i32, i32) {
    %c0_i32 = arith.constant 0 : i32
    %c0_i32_0 = arith.constant 0 : i32
    %c0_i32_1 = arith.constant 0 : i32
    return %arg0, %c0_i32, %arg1, %c0_i32_0 : i32, i32, i32, i32
  }
}

</mosaic_0001>

<bundles_post_ra>
// kernel: generalized_semseg_forward.5
= control target key start
LH: loop header
LB: loop body
LE: loop exit
PB: predicated region body
PF: predicated region fallthrough
CT: control target
= control target key end

     0   :  { %s1669_s21 = smov 0   ;;  %s1857_s0 = inlined_call_operand.vmem [shape: bf16[2,5,5,16], index: 0, kind: input, shape index: {}]   ;;  %s1858_s1 = inlined_call_operand.vmem [shape: bf16[2,5,5,16], index: 1, kind: input, shape index: {}]   ;;  %s1859_s2 = inlined_call_operand.vmem [shape: bf16[2,5,5,16], index: 2, kind: input, shape index: {}]   ;;  %s1860_s3 = inlined_call_operand.vmem [shape: bf16[2,5,5,16], index: 3, kind: input, shape index: {}]   ;;  %s1861_s4 = inlined_call_operand.vmem [shape: bf16[9,16,32], index: 4, kind: input, shape index: {}]   ;;  %s1862_s5 = inlined_call_operand.vmem [shape: f32[1,32], index: 5, kind: input, shape index: {}]   ;;  %s1863_s6 = inlined_call_operand.vmem [shape: bf16[2,4,4,32], index: 6, kind: output, shape index: {}]  }
   0x1 LB: > { %s1432_s22 = sadd.s32 4294967295, %s1629_s21   ;;  %p1436_p0 = scmp.ge.s32.totalorder %s1629_s21, 1  ;;  %s1629_s21 = sphi %s1669_s21, %s16_s21  }
   0x2   : > { %p242_p1 = scmp.lt.s32.totalorder %s1629_s21, 3 }
   0x4   : > { %p243_p2 = pnand %p1436_p0, %p242_p1 }
   0x5   : > { %p287_p3 = scmp.lt.s32.totalorder (!%p243_p2), %s1432_s22, 1 }
   0x6   : > { %246 = sbr.rel (%p243_p2) target bundleno = 276 (0x114), region = 44 }
   0xb   : > { %v1590_v0 = vld [vmem:[%s1861_s4 + $0x8] sm:$0xff]   ;;  %v357_v1 = vlaneseq  ;;  %v1631_v2 = vmov 0.0   ;;  %v1591_v3 = vld [vmem:[%s1861_s4] sm:$0xff]   ;;  %vm1632_vm0 = vmmov 0   ;;  %v1633_v4 = vmov 1983009808  }
   0xc   : > { %1524 = vmatprep.subr.bf16.mxu0 %v1631_v2  ;;  %1530 = vmatprep.subr.bf16.mxu1 %v1631_v2  ;;  %v355_v5 = vunpack.c.l.s4 %v1633_v4  ;;  %s1869_s22 = smov (!%p287_p3, %s1432_s22), 1  ;;  %vm375_vm1 = vcmask 130048   ;;  %vm531_vm2 = vsmask.f32 1280  ;;  %vm532_vm3 = vsmask.f32 3336 }
   0xd   : > { %1525 = vmatpush3.bf16.msra.mxu0 %v1590_v0  ;;  %1526 = vmatprep.mubr.msk.bf16.mxu0 %vm1632_vm0, %v1631_v2  ;;  %v358_v6 = vshrl.u32 %v357_v1, 7  ;;  %s1694_s27 = smul.u32 20, %s1869_s22  ;;  %vm534_vm4 = vsmask.f32 5392  ;;  %vm536_vm5 = vsmask.f32 7448  ;;  %vm533_vm6 = vmor %vm531_vm2, %vm532_vm3 }
   0xe   : > { %1531 = vmatpush3.bf16.msra.mxu1 %v1591_v3  ;;  %1532 = vmatprep.mubr.msk.bf16.mxu1 %vm1632_vm0, %v1631_v2  ;;  %v356_v7 = vunpack.c.0.s8 %v355_v5  ;;  %v1596_v11 = vld [vmem:[%s1861_s4 + $0x10] sm:$0xff]   ;;  %v1597_v14 = vld [vmem:[%s1861_s4 + $0x18] sm:$0xff]   ;;  %vm1736_vm7 = vmor %vm533_vm6, %vm534_vm4  ;;  %s1505_s10 = sshll.u32 %s1869_s22, 3  ;;  %vm1336_vm9 = vcmask 254976  }
   0xf   : > { %1536 = vmatprep.subr.bf16.mxu0 %v1631_v2  ;;  %1542 = vmatprep.subr.bf16.mxu1 %v1631_v2  ;;  %s1700_s30 = scalar_lea.vmem %s1858_s1, %s1694_s27  ;;  %s1708_s9 = scalar_lea.vmem %s1857_s0, %s1694_s27  ;;  %vm1748_vm8 = vmor %vm1736_vm7, %vm536_vm5  ;;  %v1601_v60 = vld [vmem:[%s1861_s4 + $0x28] sm:$0xff]   ;;  %v1600_v29 = vld [vmem:[%s1861_s4 + $0x20] sm:$0xff]  }
  0x10   : > { %v1702_v8 = vsub.s32 %v356_v7, %v358_v6  ;;  %v1611_v9 = vld.sshfl [vmem:[%s1700_s30] sm:$0xf pattern:$0x76325410]  ;;  %s1721_s14 = scalar_lea.vmem %s1859_s2, %s1694_s27  ;;  %s1758_s19 = scalar_lea.vmem %s1860_s3, %s1694_s27 }
  0x11   : > { %v1612_v10 = vld.sshfl [vmem:[%s1700_s30 + $0x8] sm:$0xf pattern:$0x76325410]  ;;  %s311_s13 = scalar_lea.vmem %s1863_s6, %s1505_s10 }
  0x12   : > { %v1613_v12 = vld.sshfl [vmem:[%s1708_s9] sm:$0xf pattern:$0x76325410]  ;;  %v368_v16 = vcombine.low %v1611_v9, %v1612_v10 }
  0x13   : > { %v1614_v13 = vld.sshfl [vmem:[%s1708_s9 + $0x8] sm:$0xf pattern:$0x76325410] }
  0x14   : > { %v1463_v15 = vld.sshfl [vmem:[%s1708_s9] sm:$0x13 pattern:$0x76325410]  ;;  %1527 = vmatmul.mubr.msk.bf16.vlgmr.msra.gmra.mxu0 %vm375_vm1, %v368_v16  ;;  %v440_v23 = vcombine.low %v1613_v12, %v1614_v13 }
  0x15   : > { %v1464_v17 = vld.sshfl [vmem:[%s1708_s9 + $0x4] sm:$0x13 pattern:$0x76325410]  ;;  %v506_v18 = vcombine.high %v1463_v15, %v1463_v15  ;;  %v539_v21 = vshrl.u32 %v1463_v15, 16  ;;  %v542_v22 = vshll.u32 %v1463_v15, 16  ;;  %1537 = vmatpush3.bf16.msra.mxu0 %v1596_v11  ;;  %1538 = vmatprep.mubr.msk.bf16.mxu0 %vm1632_vm0, %v1631_v2 }
  0x16   : > { %v1465_v19 = vld.sshfl [vmem:[%s1708_s9 + $0x8] sm:$0x13 pattern:$0x76325410]  ;;  %v514_v20 = vcombine.high %v1464_v17, %v1464_v17  ;;  %v553_v27 = vshrl.u32 %v1464_v17, 16  ;;  %v556_v32 = vshll.u32 %v1464_v17, 16  ;;  %1533 = vmatmul.mubr.msk.bf16.vlgmr.msra.gmra.mxu1 %vm375_vm1, %v440_v23  ;;  %1548 = vmatprep.subr.bf16.mxu0 %v1631_v2 }
  0x17   : > { %v1466_v24 = vld.sshfl [vmem:[%s1708_s9 + $0xc] sm:$0x13 pattern:$0x76325410]  ;;  %v522_v25 = vcombine.high %v1465_v19, %v1465_v19  ;;  %v548_v26 = vshll.u32 %v506_v18, 16  ;;  %v541_v30 = vrot.slane %v539_v21, 6  ;;  %1543 = vmatpush3.bf16.msra.mxu1 %v1597_v14  ;;  %1544 = vmatprep.mubr.msk.bf16.mxu1 %vm1632_vm0, %v1631_v2 }
  0x18   : > { %v530_v28 = vcombine.high %v1466_v24, %v1466_v24  ;;  %v544_v31 = vrot.slane %v542_v22, 7  ;;  %v555_v34 = vrot.slane %v553_v27, 6  ;;  %v562_v35 = vshll.u32 %v514_v20, 16  ;;  %1554 = vmatprep.subr.bf16.mxu1 %v1631_v2 }
  0x19   : > { %v550_v33 = vrot.slane %v548_v26, 7  ;;  %v567_v36 = vshrl.u32 %v1465_v19, 16  ;;  %v558_v38 = vrot.slane %v556_v32, 7  ;;  %v570_v39 = vshll.u32 %v1465_v19, 16 }
  0x1a   : > { %v545_v37 = vor.u32 %v544_v31, %v541_v30  ;;  %v576_v40 = vshll.u32 %v522_v25, 16  ;;  %v1615_v41 = vld.sshfl [vmem:[%s1721_s14] sm:$0xf pattern:$0x76325410]  ;;  %v564_v43 = vrot.slane %v562_v35, 7 }
  0x1b   : > { %v569_v44 = vrot.slane %v567_v36, 6  ;;  %v581_v45 = vshrl.u32 %v1466_v24, 16  ;;  %v584_v46 = vshll.u32 %v1466_v24, 16  ;;  %v559_v49 = vor.u32 %v558_v38, %v555_v34 }
  0x1c   : > { %v1616_v47 = vld.sshfl [vmem:[%s1721_s14 + $0x8] sm:$0xf pattern:$0x76325410]  ;;  %v546_v48 = vrot.slane %v545_v37, 2  ;;  %v572_v50 = vrot.slane %v570_v39, 7 }
  0x1d   : > { %v578_v51 = vrot.slane %v576_v40, 7  ;;  %v583_v52 = vrot.slane %v581_v45, 6  ;;  %v586_v53 = vrot.slane %v584_v46, 7  ;;  %v590_v54 = vshll.u32 %v530_v28, 16 }
  0x1e   : > { %v551_v55 = vsel %vm1748_vm8, %v546_v48, %v550_v33  ;;  %v560_v56 = vrot.slane %v559_v49, 2  ;;  %v573_v57 = vor.u32 %v572_v50, %v569_v44  ;;  %v1766_v61 = vld.sshfl [vmem:[%s1758_s19] sm:$0xf pattern:$0x76325410]  ;;  %v687_v0 = vcombine.low %v1615_v41, %v1616_v47 }
  0x1f   : > { %v587_v58 = vor.u32 %v586_v53, %v583_v52  ;;  %v592_v59 = vrot.slane %v590_v54, 7  ;;  %v1473_v1 = vld.sshfl [vmem:[%s1721_s14] sm:$0x13 pattern:$0x76325410] }
  0x20   : > { %v1770_v62 = vsel %vm1748_vm8, %v560_v56, %v564_v43  ;;  %v574_v63 = vrot.slane %v573_v57, 2  ;;  %v1474_v5 = vld.sshfl [vmem:[%s1721_s14 + $0x4] sm:$0x13 pattern:$0x76325410]  ;;  %1545 = vmatmul.mubr.msk.bf16.vlgmr.msra.gmra.mxu1 %vm375_vm1, %v687_v0  ;;  %v832_v9 = vcombine.high %v1473_v1, %v1473_v1  ;;  %v858_v11 = vshrl.u32 %v1473_v1, 16 }
  0x21   : > { %v588_v3 = vrot.slane %v587_v58, 2  ;;  %v594_v4 = vcombine.low %v551_v55, %v1770_v62  ;;  %v1475_v7 = vld.sshfl [vmem:[%s1721_s14 + $0x8] sm:$0x13 pattern:$0x76325410]  ;;  %v840_v10 = vcombine.high %v1474_v5, %v1474_v5  ;;  %1555 = vmatpush3.bf16.msra.mxu1 %v1601_v60  ;;  %1556 = vmatprep.mubr.msk.bf16.mxu1 %vm1632_vm0, %v1631_v2  ;;  %v861_v15 = vshll.u32 %v1473_v1, 16 }
  0x22   : > { %v1777_v6 = vsel %vm1748_vm8, %v574_v63, %v578_v51  ;;  %v1476_v14 = vld.sshfl [vmem:[%s1721_s14 + $0xc] sm:$0x13 pattern:$0x76325410]  ;;  %v848_v18 = vcombine.high %v1475_v7, %v1475_v7  ;;  %v860_v20 = vrot.slane %v858_v11, 6  ;;  %1566 = vmatprep.subr.bf16.mxu1 %v1631_v2  ;;  %v867_v22 = vshll.u32 %v832_v9, 16 }
  0x23   : > { %v1783_v12 = vsel %vm1748_vm8, %v588_v3, %v592_v59  ;;  %v602_v13 = vrot.slane %v594_v4, %v1702_v8  ;;  %v1618_v17 = vld.sshfl [vmem:[%s1758_s19 + $0x8] sm:$0xf pattern:$0x76325410]  ;;  %v856_v19 = vcombine.high %v1476_v14, %v1476_v14  ;;  %v863_v21 = vrot.slane %v861_v15, 7  ;;  %v1604_v58 = vld [vmem:[%s1861_s4 + $0x30] sm:$0xff]  }
  0x24   : > { %v595_v16 = vcombine.low %v1777_v6, %v1783_v12  ;;  %v872_v23 = vshrl.u32 %v1474_v5, 16  ;;  %v875_v24 = vshll.u32 %v1474_v5, 16  ;;  %v881_v26 = vshll.u32 %v840_v10, 16 }
  0x25   : > { %v886_v27 = vshrl.u32 %v1475_v7, 16  ;;  %v889_v28 = vshll.u32 %v1475_v7, 16  ;;  %v864_v30 = vor.u32 %v863_v21, %v860_v20  ;;  %v869_v31 = vrot.slane %v867_v22, 7 }
  0x26   : > { %v609_v25 = vrot.slane %v595_v16, %v1702_v8  ;;  %v874_v32 = vrot.slane %v872_v23, 6  ;;  %v877_v33 = vrot.slane %v875_v24, 7  ;;  %v883_v35 = vrot.slane %v881_v26, 7  ;;  %v1610_v23 = vld [vmem:[%s1861_s4 + $0x40] sm:$0xff]  }
  0x27   : > { %v888_v36 = vrot.slane %v886_v27, 6  ;;  %v891_v37 = vrot.slane %v889_v28, 7  ;;  %v865_v38 = vrot.slane %v864_v30, 2  ;;  %v895_v40 = vshll.u32 %v848_v18, 16  ;;  %v1605_v18 = vld [vmem:[%s1861_s4 + $0x38] sm:$0xff]  }
  0x28   : > { %v610_v34 = vcombine.low %v602_v13, %v609_v25  ;;  %v878_v39 = vor.u32 %v877_v33, %v874_v32  ;;  %v900_v41 = vshrl.u32 %v1476_v14, 16  ;;  %v903_v44 = vshll.u32 %v1476_v14, 16  ;;  %v1619_v52 = vld.sshfl [vmem:[%s1708_s9 + $0x4] sm:$0xf pattern:$0x76325410] }
  0x29   : > { %v892_v43 = vor.u32 %v891_v37, %v888_v36  ;;  %v909_v45 = vshll.u32 %v856_v19, 16  ;;  %v870_v46 = vsel %vm1748_vm8, %v865_v38, %v869_v31  ;;  %v897_v50 = vrot.slane %v895_v40, 7  ;;  %v1620_v59 = vld.sshfl [vmem:[%s1708_s9 + $0xc] sm:$0xf pattern:$0x76325410] }
  0x2a   : > { %1539 = vmatmul.mubr.msk.bf16.vlgmr.msra.gmra.mxu0 %vm375_vm1, %v610_v34  ;;  %v879_v47 = vrot.slane %v878_v39, 2  ;;  %v902_v48 = vrot.slane %v900_v41, 6  ;;  %v905_v51 = vrot.slane %v903_v44, 7  ;;  %v764_v54 = vcombine.low %v1766_v61, %v1618_v17 }
  0x2b   : > { %1549 = vmatpush3.bf16.msra.mxu0 %v1600_v29  ;;  %1550 = vmatprep.mubr.msk.bf16.mxu0 %vm1632_vm0, %v1631_v2  ;;  %v893_v49 = vrot.slane %v892_v43, 2  ;;  %v911_v56 = vrot.slane %v909_v45, 7  ;;  %v1498_v60 = vld.sshfl [vmem:[%s1708_s9 + $0x10] sm:$0x13 pattern:$0x76325410]  ;;  %v1007_v20 = vcombine.low %v1619_v52, %v1620_v59  ;;  %v1234_v22 = vcombine.low %v1770_v62, %v1777_v6 }
  0x2c   : > { %1560 = vmatprep.subr.bf16.mxu0 %v1631_v2  ;;  %v884_v53 = vsel %vm1748_vm8, %v879_v47, %v883_v35  ;;  %v906_v55 = vor.u32 %v905_v51, %v902_v48  ;;  %v1177_v1 = vcombine.high %v1498_v60, %v1498_v60  ;;  %v1221_v3 = vshrl.u32 %v1498_v60, 16  ;;  %v1621_v14 = vld.sshfl [vmem:[%s1700_s30 + $0x4] sm:$0xf pattern:$0x76325410] }
  0x2d   : > { %v913_v57 = vcombine.low %v870_v46, %v884_v53  ;;  %v898_v63 = vsel %vm1748_vm8, %v893_v49, %v897_v50  ;;  %v1224_v4 = vshll.u32 %v1498_v60, 16  ;;  %v1622_v15 = vld.sshfl [vmem:[%s1700_s30 + $0xc] sm:$0xf pattern:$0x76325410]  ;;  %v1242_v26 = vrot.slane %v1234_v22, %v1702_v8 }
  0x2e   : > { %v907_v0 = vrot.slane %v906_v55, 2  ;;  %v1223_v9 = vrot.slane %v1221_v3, 6  ;;  %v1230_v11 = vshll.u32 %v1177_v1, 16  ;;  %v1085_v6 = vcombine.low %v1621_v14, %v1622_v15 }
  0x2f   : > { %v921_v5 = vrot.slane %v913_v57, %v1702_v8  ;;  %v1226_v10 = vrot.slane %v1224_v4, 7 }
  0x30   : > { %v912_v61 = vsel %vm1748_vm8, %v907_v0, %v911_v56  ;;  %v1232_v17 = vrot.slane %v1230_v11, 7 }
  0x31   : > { %v914_v7 = vcombine.low %v898_v63, %v912_v61  ;;  %v1227_v16 = vor.u32 %v1226_v10, %v1223_v9 }
  0x32   : > { %1551 = vmatmul.mubr.msk.bf16.vlgmr.msra.gmra.mxu0 %vm375_vm1, %v764_v54 }
  0x33   : > { %1561 = vmatpush3.bf16.msra.mxu0 %v1604_v58  ;;  %1562 = vmatprep.mubr.msk.bf16.mxu0 %vm1632_vm0, %v1631_v2  ;;  %v928_v13 = vrot.slane %v914_v7, %v1702_v8  ;;  %v1228_v21 = vrot.slane %v1227_v16, 2 }
  0x34   : > { %1572 = vmatprep.subr.bf16.mxu0 %v1631_v2 }
  0x35   : > { %v929_v19 = vcombine.low %v921_v5, %v928_v13  ;;  %v1233_v24 = vsel %vm1748_vm8, %v1228_v21, %v1232_v17  ;;  %v1501_v13 = vld [vmem:[%s1862_s5] ss:$0 sm:$0xff] }
  0x36   : > { %v1235_v25 = vcombine.low %v1783_v12, %v1233_v24 }
  0x37   : > { %1557 = vmatmul.mubr.msk.bf16.vlgmr.msra.gmra.mxu1 %vm375_vm1, %v929_v19 }
  0x38   : > { %1567 = vmatpush3.bf16.msra.mxu1 %v1605_v18  ;;  %1568 = vmatprep.mubr.msk.bf16.mxu1 %vm1632_vm0, %v1631_v2  ;;  %v1249_v62 = vrot.slane %v1235_v25, %v1702_v8 }
  0x3a   : > { %1563 = vmatmul.mubr.msk.bf16.vlgmr.msra.gmra.mxu0 %vm375_vm1, %v1007_v20  ;;  %v1250_v27 = vcombine.low %v1242_v26, %v1249_v62 }
  0x3b   : > { %1573 = vmatpush3.bf16.msra.mxu0 %v1610_v23  ;;  %1574 = vmatprep.mubr.msk.bf16.mxu0 %vm1632_vm0, %v1631_v2 }
  0x3f   : > { %1569 = vmatmul.mubr.msk.bf16.vlgmr.msra.gmra.mxu1 %vm375_vm1, %v1085_v6 }
  0x42   : > { %1575 = vmatmul.mubr.msk.bf16.vlgmr.msra.gmra.mxu0 %vm375_vm1, %v1250_v27 }
  0xd4   : > { %v413_v42 = vpop.f32.mrf.mxu0 }
  0xd6   : > { %v484_v28 = vpop.f32.mrf.mxu1  ;;  %v1528_v29 = vpop.f32.mrf.mxu0 }
  0xd7   : > { %v485_v40 = vadd.f32 %v484_v28, %v413_v42 }
  0xd8   : > { %v1534_v12 = vpop.f32.mrf.mxu1  ;;  %v416_v30 = vpop.f32.mrf.mxu0 }
  0xda   : > { %v487_v31 = vpop.f32.mrf.mxu1  ;;  %v1529_v32 = vpop.f32.mrf.mxu0 }
  0xdb   : > { %v488_v45 = vadd.f32 %v487_v31, %v416_v30 }
  0xdc   : > { %v1535_v33 = vpop.f32.mrf.mxu1 }
  0xe0   : > { %v731_v34 = vpop.f32.mrf.mxu1 }
  0xe2   : > { %v1546_v35 = vpop.f32.mrf.mxu1 }
  0xe4   : > { %v734_v36 = vpop.f32.mrf.mxu1 }
  0xe6   : > { %v1547_v2 = vpop.f32.mrf.mxu1 }
  0xea   : > { %v654_v37 = vpop.f32.mrf.mxu0 }
  0xeb   : > { %v661_v43 = vadd.f32 %v654_v37, %v485_v40 }
  0xec   : > { %v1540_v38 = vpop.f32.mrf.mxu0 }
  0xed   : > { %v738_v47 = vadd.f32 %v731_v34, %v661_v43 }
  0xee   : > { %v657_v39 = vpop.f32.mrf.mxu0 }
  0xef   : > { %v662_v48 = vadd.f32 %v657_v39, %v488_v45 }
  0xf0   : > { %v1541_v41 = vpop.f32.mrf.mxu0 }
  0xf1   : > { %v739_v53 = vadd.f32 %v734_v36, %v662_v48 }
  0xf2   : > { %v808_v44 = vpop.f32.mrf.mxu0 }
  0xf3   : > { %v815_v50 = vadd.f32 %v808_v44, %v738_v47 }
  0xf4   : > { %v1552_v46 = vpop.f32.mrf.mxu0 }
  0xf6   : > { %v811_v49 = vpop.f32.mrf.mxu0 }
  0xf7   : > { %v973_v52 = vpop.f32.mrf.mxu1  ;;  %v816_v57 = vadd.f32 %v811_v49, %v739_v53 }
  0xf8   : > { %v1553_v51 = vpop.f32.mrf.mxu0  ;;  %v980_v56 = vadd.f32 %v973_v52, %v815_v50 }
  0xf9   : > { %v1558_v54 = vpop.f32.mrf.mxu1 }
  0xfa   : > { %v1051_v55 = vpop.f32.mrf.mxu0 }
  0xfb   : > { %v976_v58 = vpop.f32.mrf.mxu1  ;;  %v1058_v60 = vadd.f32 %v1051_v55, %v980_v56 }
  0xfc   : > { %v1564_v59 = vpop.f32.mrf.mxu0  ;;  %v981_v1 = vadd.f32 %v976_v58, %v816_v57 }
  0xfd   : > { %v1559_v63 = vpop.f32.mrf.mxu1 }
  0xfe   : > { %v1054_v0 = vpop.f32.mrf.mxu0 }
  0xff   : > { %v1129_v3 = vpop.f32.mrf.mxu1  ;;  %v1059_v5 = vadd.f32 %v1054_v0, %v981_v1 }
 0x100   : > { %v1565_v4 = vpop.f32.mrf.mxu0  ;;  %v1136_v61 = vadd.f32 %v1129_v3, %v1058_v60 }
 0x101   : > { %v1570_v7 = vpop.f32.mrf.mxu1 }
 0x102   : > { %v1294_v9 = vpop.f32.mrf.mxu0 }
 0x103   : > { %v1301_v10 = vadd.f32 %v1294_v9, %v1136_v61  ;;  %v1132_v11 = vpop.f32.mrf.mxu1 }
 0x104   : > { %v1576_v14 = vpop.f32.mrf.mxu0  ;;  %v1137_v15 = vadd.f32 %v1132_v11, %v1059_v5 }
 0x105   : > { %v1571_v16 = vpop.f32.mrf.mxu1  ;;  %v1309_v18 = vadd.f32 %v1501_v13, %v1301_v10 }
 0x106   : > { %v1297_v17 = vpop.f32.mrf.mxu0 }
 0x107   : > { %v1302_v19 = vadd.f32 %v1297_v17, %v1137_v15  ;;  %v1311_v22 = vmax.f32 %v1309_v18, 0.0 }
 0x108   : > { %v1577_v20 = vpop.f32.mrf.mxu0 }
 0x109   : > { %v1310_v21 = vadd.f32 %v1501_v13, %v1302_v19 }
 0x10b   : > { %v1312_v23 = vmax.f32 %v1310_v21, 0.0 }
 0x10d   : > { %v1313_v24 = vpack.c.bf16 %v1312_v23, %v1311_v22  ;;  %v1502_v25 = vpack.c.bf16 %v1312_v23, %v1312_v23 }
 0x10f   : > { %v1322_v26 = vrot.slane %v1313_v24, %v1702_v8  ;;  %v1329_v62 = vrot.slane %v1502_v25, %v1702_v8 }
 0x111   : > { %v1330_v6 = vcombine.high %v1322_v26, %v1322_v26  ;;  %v1331_v27 = vcombine.high %v1329_v62, %v1329_v62  ;;  %1337 = vst.msk [vmem:[%s311_s13] sm:$0x3] %vm1336_vm9, %v1322_v26  ;;  %1339 = vst.msk [vmem:[%s311_s13 + $0x4] sm:$0x3] %vm1336_vm9, %v1329_v62 }
 0x113   : > { %1338 = vst.msk [vmem:[%s311_s13 + $0x2] sm:$0x3] %vm1336_vm9, %v1330_v6  ;;  %1340 = vst.msk [vmem:[%s311_s13 + $0x6] sm:$0x3] %vm1336_vm9, %v1331_v27 }
 0x114 PF: > { %s16_s21 = sadd.s32 1, %s1629_s21  }
 0x115   : > { %p13_p4 = scmp.ge.s32.totalorder %s16_s21, 4  }
 0x117   :  { %15 = sbr.rel (!%p13_p4) target bundleno = 1 (0x1), region = 93 }

// kernel: generalized_semseg_forward.6
= control target key start
LH: loop header
LB: loop body
LE: loop exit
PB: predicated region body
PF: predicated region fallthrough
CT: control target
= control target key end

     0   :  { %s1917_s18 = smov 0   ;;  %s2150_s0 = inlined_call_operand.vmem [shape: bf16[2,6,6,32], index: 0, kind: input, shape index: {}]   ;;  %s2151_s1 = inlined_call_operand.vmem [shape: bf16[9,32,32], index: 1, kind: input, shape index: {}]   ;;  %s2152_s2 = inlined_call_operand.vmem [shape: f32[1,32], index: 2, kind: input, shape index: {}]   ;;  %s2153_s3 = inlined_call_operand.vmem [shape: bf16[32,8], index: 3, kind: input, shape index: {}]   ;;  %s2154_s4 = inlined_call_operand.vmem [shape: f32[1,8], index: 4, kind: input, shape index: {}]   ;;  %s2155_s5 = inlined_call_operand.vmem [shape: bf16[2,4,4,8], index: 5, kind: output, shape index: {}]  }
   0x1 LB: > { %s1587_s19 = sadd.s32 4294967295, %s1882_s18   ;;  %p1591_p0 = scmp.ge.s32.totalorder %s1882_s18, 1  ;;  %s1882_s18 = sphi %s1917_s18, %s15_s18  }
   0x2   : > { %p187_p1 = scmp.lt.s32.totalorder %s1882_s18, 3 }
   0x4   : > { %p188_p2 = pnand %p1591_p0, %p187_p1 }
   0x5   : > { %p215_p3 = scmp.lt.s32.totalorder (!%p188_p2), %s1587_s19, 1 }
   0x6   : > { %191 = sbr.rel (%p188_p2) target bundleno = 480 (0x1e0), region = 40 }
   0xb   : > { %v1844_v0 = vld [vmem:[%s2151_s1 + $0x18] sm:$0xff]   ;;  %v1884_v1 = vmov 0.0   ;;  %v1845_v2 = vld [vmem:[%s2151_s1 + $0x8] sm:$0xff]   ;;  %v1846_v3 = vld [vmem:[%s2151_s1 + $0x10] sm:$0xff]   ;;  %vm1885_vm0 = vmmov 0   ;;  %v388_v5 = vlaneseq  ;;  %s2161_s19 = smov (!%p215_p3, %s1587_s19), 1 }
   0xc   : > { %1752 = vmatprep.subr.bf16.mxu0 %v1884_v1  ;;  %1760 = vmatprep.subr.bf16.mxu1 %v1884_v1  ;;  %v1847_v4 = vld [vmem:[%s2151_s1] sm:$0xff]   ;;  %vm320_vm1 = vsmask.f32 1280  ;;  %vm321_vm2 = vsmask.f32 3336  ;;  %s1832_s28 = smul.u32 24, %s2161_s19 }
   0xd   : > { %1753 = vmatpush3.bf16.msra.mxu0 %v1844_v0  ;;  %1756 = vmatprep.mubr.msk.bf16.mxu0 %vm1885_vm0, %v1884_v1  ;;  %vm323_vm3 = vsmask.f32 5392  ;;  %v1886_v6 = vmov 1983009808   ;;  %vm325_vm4 = vsmask.f32 7448  ;;  %vm322_vm8 = vmor %vm320_vm1, %vm321_vm2 }
   0xe   : > { %1761 = vmatpush3.bf16.msra.mxu1 %v1845_v2  ;;  %1754 = vmatprep.subr.bf16.mxu0 %v1884_v1  ;;  %v386_v7 = vunpack.c.l.s4 %v1886_v6  ;;  %v389_v8 = vshrl.u32 %v388_v5, 7  ;;  %vm574_vm5 = vcmask 1040384   ;;  %s1952_s6 = scalar_lea.vmem %s2150_s0, %s1832_s28  ;;  %vm575_vm6 = vcmask 1042434   ;;  %vm324_vm9 = vmor %vm322_vm8, %vm323_vm3  ;;  %v1851_v49 = vld [vmem:[%s2151_s1 + $0x38] sm:$0xff]   ;;  %s1721_s22 = sshll.u32 %s2161_s19, 3 }
   0xf   : > { %1762 = vmatprep.subr.bf16.mxu1 %v1884_v1  ;;  %1764 = vmatprep.mubr.msk.bf16.mxu1 %vm1885_vm0, %v1884_v1  ;;  %vm577_vm7 = vcmask 1044484   ;;  %v1627_v10 = vld.sshfl [vmem:[%s1952_s6] sm:$0x13 pattern:$0x76325410]  ;;  %vm412_vm10 = vcmask 261120   ;;  %vm1965_vm11 = vmor %vm324_vm9, %vm325_vm4  ;;  %s224_s25 = scalar_lea.vmem %s2155_s5, %s1721_s22 }
  0x10   : > { %v387_v9 = vunpack.c.0.s8 %v386_v7  ;;  %v1628_v11 = vld.sshfl [vmem:[%s1952_s6 + $0x4] sm:$0x13 pattern:$0x76325410]  ;;  %v295_v12 = vcombine.high %v1627_v10, %v1627_v10  ;;  %v328_v13 = vshrl.u32 %v1627_v10, 16  ;;  %v331_v14 = vshll.u32 %v1627_v10, 16  ;;  %vm576_vm12 = vmor %vm574_vm5, %vm575_vm6 }
  0x11   : > { %1755 = vmatpush3.bf16.msra.mxu0 %v1846_v3  ;;  %v1629_v15 = vld.sshfl [vmem:[%s1952_s6 + $0x8] sm:$0x13 pattern:$0x76325410]  ;;  %v303_v16 = vcombine.high %v1628_v11, %v1628_v11  ;;  %v342_v17 = vshrl.u32 %v1628_v11, 16  ;;  %v345_v18 = vshll.u32 %v1628_v11, 16  ;;  %vm578_vm14 = vmor %vm576_vm12, %vm577_vm7 }
  0x12   : > { %1763 = vmatpush3.bf16.msra.mxu1 %v1847_v4  ;;  %1768 = vmatprep.subr.bf16.mxu0 %v1884_v1  ;;  %v1630_v19 = vld.sshfl [vmem:[%s1952_s6 + $0xc] sm:$0x13 pattern:$0x76325410]  ;;  %v311_v20 = vcombine.high %v1629_v15, %v1629_v15  ;;  %v330_v21 = vrot.slane %v328_v13, 6  ;;  %v333_v22 = vrot.slane %v331_v14, 7  ;;  %v1962_v23 = vsub.s32 %v387_v9, %v389_v8 }
  0x13   : > { %1776 = vmatprep.subr.bf16.mxu1 %v1884_v1  ;;  %v319_v24 = vcombine.high %v1630_v19, %v1630_v19  ;;  %v337_v25 = vshll.u32 %v295_v12, 16  ;;  %v344_v26 = vrot.slane %v342_v17, 6  ;;  %v347_v27 = vrot.slane %v345_v18, 7  ;;  %v1853_v8 = vld [vmem:[%s2151_s1 + $0x30] sm:$0xff]  }
  0x14   : > { %v334_v28 = vor.u32 %v333_v22, %v330_v21  ;;  %v351_v29 = vshll.u32 %v303_v16, 16  ;;  %v356_v30 = vshrl.u32 %v1629_v15, 16  ;;  %v359_v31 = vshll.u32 %v1629_v15, 16  ;;  %v1850_v22 = vld [vmem:[%s2151_s1 + $0x28] sm:$0xff]  }
  0x15   : > { %v339_v33 = vrot.slane %v337_v25, 7  ;;  %v348_v34 = vor.u32 %v347_v27, %v344_v26  ;;  %v365_v35 = vshll.u32 %v311_v20, 16  ;;  %v370_v36 = vshrl.u32 %v1630_v19, 16 }
  0x16   : > { %v335_v37 = vrot.slane %v334_v28, 2  ;;  %v353_v38 = vrot.slane %v351_v29, 7  ;;  %v358_v39 = vrot.slane %v356_v30, 6  ;;  %v361_v40 = vrot.slane %v359_v31, 7  ;;  %v1857_v28 = vld [vmem:[%s2151_s1 + $0x58] sm:$0xff]  }
  0x17   : > { %v1870_v41 = vld.sshfl [vmem:[%s1952_s6] sm:$0xf pattern:$0x76325410]  ;;  %v349_v42 = vrot.slane %v348_v34, 2  ;;  %v372_v43 = vrot.slane %v370_v36, 6 }
  0x18   : > { %v373_v44 = vshll.u32 %v1630_v19, 16  ;;  %v1871_v45 = vld.sshfl [vmem:[%s1952_s6 + $0x8] sm:$0xf pattern:$0x76325410]  ;;  %vm579_vm13 = vcmask 1046534   ;;  %v362_v46 = vor.u32 %v361_v40, %v358_v39  ;;  %v340_v50 = vsel %vm1965_vm11, %v335_v37, %v339_v33 }
  0x19   : > { %v367_v47 = vrot.slane %v365_v35, 7  ;;  %v379_v48 = vshll.u32 %v319_v24, 16  ;;  %v1980_v51 = vsel %vm1965_vm11, %v349_v42, %v353_v38  ;;  %v1637_v55 = vld.sshfl [vmem:[%s1952_s6] sm:$0x12 pattern:$0x76325410]  ;;  %v477_v57 = vcombine.low %v1870_v41, %v1871_v45  ;;  %vm1988_vm15 = vmor %vm578_vm14, %vm579_vm13 }
  0x1a   : > { %v375_v52 = vrot.slane %v373_v44, 7  ;;  %v363_v53 = vrot.slane %v362_v46, 2  ;;  %v1638_v58 = vld.sshfl [vmem:[%s1952_s6 + $0x4] sm:$0x12 pattern:$0x76325410]  ;;  %v549_v59 = vcombine.high %v1637_v55, %v1637_v55  ;;  %v383_v61 = vcombine.low %v340_v50, %v1980_v51 }
  0x1b   : > { %v381_v54 = vrot.slane %v379_v48, 7  ;;  %v1641_v60 = vrot.slane %v1637_v55, 9  ;;  %v1639_v62 = vld.sshfl [vmem:[%s1952_s6 + $0x8] sm:$0x12 pattern:$0x76325410]  ;;  %v557_v63 = vcombine.high %v1638_v58, %v1638_v58  ;;  %1765 = vmatmul.mubr.msk.bf16.vlgmr.msra.gmra.mxu1 %vm412_vm10, %v477_v57 }
  0x1c   : > { %v376_v56 = vor.u32 %v375_v52, %v372_v43  ;;  %v1642_v2 = vrot.slane %v1638_v58, 9  ;;  %v1994_v3 = vsel %vm1965_vm11, %v363_v53, %v367_v47  ;;  %v1640_v5 = vld.sshfl [vmem:[%s1952_s6 + $0xc] sm:$0x12 pattern:$0x76325410]  ;;  %v565_v6 = vcombine.high %v1639_v62, %v1639_v62  ;;  %1777 = vmatpush3.bf16.msra.mxu1 %v1851_v49  ;;  %1780 = vmatprep.mubr.msk.bf16.mxu1 %vm1885_vm0, %v1884_v1  ;;  %v1852_v42 = vld [vmem:[%s2151_s1 + $0x20] sm:$0xff]  }
  0x1d   : > { %v583_v7 = vrot.slane %v549_v59, 7  ;;  %v573_v9 = vcombine.high %v1640_v5, %v1640_v5  ;;  %v587_v10 = vrot.slane %v557_v63, 7  ;;  %v1643_v11 = vrot.slane %v1639_v62, 9  ;;  %1778 = vmatprep.subr.bf16.mxu1 %v1884_v1  ;;  %v1859_v47 = vld [vmem:[%s2151_s1 + $0x50] sm:$0xff]   ;;  %v1856_v55 = vld [vmem:[%s2151_s1 + $0x48] sm:$0xff]  }
  0x1e   : > { %v377_v4 = vrot.slane %v376_v56, 2  ;;  %v1644_v12 = vrot.slane %v1640_v5, 9  ;;  %v591_v15 = vrot.slane %v565_v6, 7  ;;  %v391_v17 = vrot.slane %v383_v61, %v1962_v23  ;;  %v1858_v6 = vld [vmem:[%s2151_s1 + $0x40] sm:$0xff]  }
  0x1f   : > { %v584_v14 = vsel %vm1988_vm15, %v1641_v60, %v583_v7  ;;  %v588_v18 = vsel %vm1988_vm15, %v1642_v2, %v587_v10  ;;  %v595_v19 = vrot.slane %v573_v9, 7  ;;  %v1872_v20 = vld.sshfl [vmem:[%s1952_s6 + $0x4] sm:$0xf pattern:$0x76325410]  ;;  %v852_v52 = vcombine.low %v1980_v51, %v1994_v3  ;;  %v1861_v51 = vld [vmem:[%s2151_s1 + $0x78] sm:$0xff]  }
  0x20   : > { %v2005_v13 = vsel %vm1965_vm11, %v377_v4, %v381_v54  ;;  %v1873_v21 = vld.sshfl [vmem:[%s1952_s6 + $0xc] sm:$0xf pattern:$0x76325410]  ;;  %v592_v24 = vsel %vm1988_vm15, %v1643_v11, %v591_v15  ;;  %v597_v25 = vcombine.low %v584_v14, %v588_v18  ;;  %1779 = vmatpush3.bf16.msra.mxu1 %v1853_v8 }
  0x21   : > { %v384_v16 = vcombine.low %v1994_v3, %v2005_v13  ;;  %v596_v27 = vsel %vm1988_vm15, %v1644_v12, %v595_v19  ;;  %1792 = vmatprep.subr.bf16.mxu1 %v1884_v1  ;;  %v697_v31 = vcombine.low %v1872_v20, %v1873_v21  ;;  %v1662_v33 = vld.sshfl [vmem:[%s1952_s6 + $0x10] sm:$0x13 pattern:$0x76325410]  ;;  %v983_v46 = vcombine.low %v588_v18, %v592_v24  ;;  %v1860_v19 = vld [vmem:[%s2151_s1 + $0x68] sm:$0xff]  }
  0x22   : > { %v598_v29 = vcombine.low %v592_v24, %v596_v27  ;;  %v795_v34 = vcombine.high %v1662_v33, %v1662_v33  ;;  %v839_v35 = vshrl.u32 %v1662_v33, 16  ;;  %v842_v36 = vshll.u32 %v1662_v33, 16  ;;  %v1673_v37 = vld.sshfl [vmem:[%s1952_s6 + $0x10] sm:$0x12 pattern:$0x76325410] }
  0x23   : > { %v2023_v26 = vrot.slane %v384_v16, %v1962_v23  ;;  %v605_v38 = vrot.slane %v597_v25, %v1962_v23  ;;  %1781 = vmatmul.mubr.msk.bf16.vlgmr.msra.gmra.mxu1 %vm412_vm10, %v697_v31  ;;  %v966_v40 = vcombine.high %v1673_v37, %v1673_v37  ;;  %v1677_v41 = vrot.slane %v1673_v37, 9  ;;  %v1695_v59 = vld.sshfl [vmem:[%s1952_s6 + $0x14] sm:$0x13 pattern:$0x76325410]  ;;  %v1862_v25 = vld [vmem:[%s2151_s1 + $0x60] sm:$0xff]  }
  0x24   : > { %v2037_v39 = vrot.slane %v598_v29, %v1962_v23  ;;  %v841_v43 = vrot.slane %v839_v35, 6  ;;  %v844_v44 = vrot.slane %v842_v36, 7  ;;  %v848_v45 = vshll.u32 %v795_v34, 16  ;;  %1793 = vmatpush3.bf16.msra.mxu1 %v1857_v28  ;;  %1796 = vmatprep.mubr.msk.bf16.mxu1 %vm1885_vm0, %v1884_v1  ;;  %v1863_v14 = vld [vmem:[%s2151_s1 + $0x70] sm:$0xff]   ;;  %v1866_v33 = vld [vmem:[%s2151_s1 + $0x88] sm:$0xff]   ;;  %v1869_v35 = vld [vmem:[%s2153_s3] sm:$0xff]  }
  0x25   : > { %v399_v30 = vcombine.low %v391_v17, %v2023_v26  ;;  %v981_v48 = vrot.slane %v966_v40, 7  ;;  %1794 = vmatprep.subr.bf16.mxu1 %v1884_v1  ;;  %v991_v58 = vrot.slane %v983_v46, %v1962_v23  ;;  %v860_v61 = vrot.slane %v852_v52, %v1962_v23  ;;  %v1706_v5 = vld.sshfl [vmem:[%s1952_s6 + $0x14] sm:$0x12 pattern:$0x76325410] }
  0x26   : > { %v845_v49 = vor.u32 %v844_v44, %v841_v43  ;;  %v850_v50 = vrot.slane %v848_v45, 7  ;;  %v613_v53 = vcombine.low %v605_v38, %v2037_v39  ;;  %v1181_v2 = vcombine.high %v1695_v59, %v1695_v59  ;;  %v1874_v15 = vld.sshfl [vmem:[%s1952_s6 + $0x8] sm:$0xf pattern:$0x76325410] }
  0x27   : > { %1757 = vmatmul.mubr.msk.bf16.vlgmr.msra.gmra.mxu0 %vm412_vm10, %v399_v30  ;;  %v2057_v54 = vsel %vm1988_vm15, %v1677_v41, %v981_v48  ;;  %v1225_v3 = vshrl.u32 %v1695_v59, 16  ;;  %v1228_v4 = vshll.u32 %v1695_v59, 16  ;;  %v1352_v8 = vcombine.high %v1706_v5, %v1706_v5  ;;  %v1875_v16 = vld.sshfl [vmem:[%s1952_s6 + $0x10] sm:$0xf pattern:$0x76325410] }
  0x28   : > { %1769 = vmatpush3.bf16.msra.mxu0 %v1850_v22  ;;  %1772 = vmatprep.mubr.msk.bf16.mxu0 %vm1885_vm0, %v1884_v1  ;;  %v846_v56 = vrot.slane %v845_v49, 2  ;;  %v984_v57 = vcombine.low %v596_v27, %v2057_v54  ;;  %v1234_v12 = vshll.u32 %v1181_v2, 16  ;;  %v1710_v20 = vrot.slane %v1706_v5, 9 }
  0x29   : > { %1770 = vmatprep.subr.bf16.mxu0 %v1884_v1  ;;  %1795 = vmatpush3.bf16.msra.mxu1 %v1859_v47  ;;  %v1227_v10 = vrot.slane %v1225_v3, 6  ;;  %v1230_v11 = vrot.slane %v1228_v4, 7  ;;  %v1367_v21 = vrot.slane %v1352_v8, 7  ;;  %v1083_v32 = vcombine.low %v1874_v15, %v1875_v16 }
  0x2a   : > { %v851_v60 = vsel %vm1965_vm11, %v846_v56, %v850_v50  ;;  %v998_v62 = vrot.slane %v984_v57, %v1962_v23  ;;  %1808 = vmatprep.subr.bf16.mxu1 %v1884_v1  ;;  %v1236_v18 = vrot.slane %v1234_v12, 7 }
  0x2b   : > { %v853_v63 = vcombine.low %v2005_v13, %v851_v60  ;;  %v1231_v17 = vor.u32 %v1230_v11, %v1227_v10  ;;  %v1368_v28 = vsel %vm1988_vm15, %v1710_v20, %v1367_v21  ;;  %v1714_v20 = vld [vmem:[%s2152_s2] ss:$0 sm:$0xff] }
  0x2c   : > { %1771 = vmatpush3.bf16.msra.mxu0 %v1852_v42  ;;  %v999_v7 = vcombine.low %v991_v58, %v998_v62  ;;  %v1370_v30 = vcombine.low %v2057_v54, %v1368_v28 }
  0x2d   : > { %1784 = vmatprep.subr.bf16.mxu0 %v1884_v1  ;;  %v867_v9 = vrot.slane %v853_v63, %v1962_v23  ;;  %v1232_v22 = vrot.slane %v1231_v17, 2 }
  0x2e   : > { %1797 = vmatmul.mubr.msk.bf16.vlgmr.msra.gmra.mxu1 %vm412_vm10, %v999_v7  ;;  %v1384_v0 = vrot.slane %v1370_v30, %v1962_v23 }
  0x2f   : > { %1773 = vmatmul.mubr.msk.bf16.vlgmr.msra.gmra.mxu0 %vm412_vm10, %v613_v53  ;;  %v868_v13 = vcombine.low %v860_v61, %v867_v9  ;;  %1809 = vmatpush3.bf16.msra.mxu1 %v1861_v51  ;;  %v1237_v24 = vsel %vm1965_vm11, %v1232_v22, %v1236_v18 }
  0x30   : > { %1785 = vmatpush3.bf16.msra.mxu0 %v1856_v55  ;;  %1788 = vmatprep.mubr.msk.bf16.mxu0 %vm1885_vm0, %v1884_v1  ;;  %v1239_v27 = vcombine.low %v851_v60, %v1237_v24  ;;  %v1385_v34 = vcombine.low %v2037_v39, %v1384_v0 }
  0x31   : > { %1786 = vmatprep.subr.bf16.mxu0 %v1884_v1  ;;  %1812 = vmatprep.mubr.msk.bf16.mxu1 %vm1885_vm0, %v1884_v1 }
  0x32   : > { %1810 = vmatprep.subr.bf16.mxu1 %v1884_v1  ;;  %v1253_v29 = vrot.slane %v1239_v27, %v1962_v23  ;;  %v1868_v23 = vld [vmem:[%s2153_s3 + $0x8] sm:$0xff]  }
  0x33   : > { %1811 = vmatpush3.bf16.msra.mxu1 %v1863_v14 }
  0x34   : > { %1787 = vmatpush3.bf16.msra.mxu0 %v1858_v6  ;;  %1824 = vmatprep.subr.bf16.mxu1 %v1884_v1  ;;  %v1254_v31 = vcombine.low %v2023_v26, %v1253_v29  ;;  %v1867_v26 = vld [vmem:[%s2151_s1 + $0x80] sm:$0xff]  }
  0x35   : > { %1800 = vmatprep.subr.bf16.mxu0 %v1884_v1 }
  0x36   : > { %1813 = vmatmul.mubr.msk.bf16.vlgmr.msra.gmra.mxu1 %vm412_vm10, %v1254_v31 }
  0x37   : > { %1789 = vmatmul.mubr.msk.bf16.vlgmr.msra.gmra.mxu0 %vm412_vm10, %v868_v13  ;;  %1828 = vmatprep.mubr.msk.bf16.mxu1 %vm1885_vm0, %v1884_v1 }
  0x38   : > { %1801 = vmatpush3.bf16.msra.mxu0 %v1860_v19  ;;  %1804 = vmatprep.mubr.msk.bf16.mxu0 %vm1885_vm0, %v1884_v1 }
  0x39   : > { %1802 = vmatprep.subr.bf16.mxu0 %v1884_v1  ;;  %1825 = vmatpush3.bf16.msra.mxu1 %v1868_v23 }
  0x3a   : > { %1826 = vmatprep.subr.bf16.mxu1 %v1884_v1 }
  0x3c   : > { %1803 = vmatpush3.bf16.msra.mxu0 %v1862_v25 }
  0x3d   : > { %1816 = vmatprep.subr.bf16.mxu0 %v1884_v1  ;;  %1827 = vmatpush3.bf16.msra.mxu1 %v1869_v35 }
  0x3f   : > { %1805 = vmatmul.mubr.msk.bf16.vlgmr.msra.gmra.mxu0 %vm412_vm10, %v1083_v32 }
  0x40   : > { %1817 = vmatpush3.bf16.msra.mxu0 %v1866_v33  ;;  %1820 = vmatprep.mubr.msk.bf16.mxu0 %vm1885_vm0, %v1884_v1  ;;  %v1715_v33 = vld [vmem:[%s2154_s4] ss:$0 sm:$0xff]  ;;  %vm1527_vm0 = vcmask 58368  }
  0x41   : > { %1818 = vmatprep.subr.bf16.mxu0 %v1884_v1 }
  0x44   : > { %1819 = vmatpush3.bf16.msra.mxu0 %v1867_v26 }
  0x47   : > { %1821 = vmatmul.mubr.msk.bf16.vlgmr.msra.gmra.mxu0 %vm412_vm10, %v1385_v34 }
  0xdb   : > { %v527_v36 = vpop.f32.mrf.mxu1 }
  0xdd   : > { %v1766_v37 = vpop.f32.mrf.mxu1 }
  0xdf   : > { %v530_v38 = vpop.f32.mrf.mxu1 }
  0xe1   : > { %v1767_v40 = vpop.f32.mrf.mxu1 }
  0xe3   : > { %v747_v41 = vpop.f32.mrf.mxu1 }
  0xe5   : > { %v1782_v43 = vpop.f32.mrf.mxu1 }
  0xe7   : > { %v450_v39 = vpop.f32.mrf.mxu0  ;;  %v750_v45 = vpop.f32.mrf.mxu1 }
  0xe8   : > { %v528_v52 = vadd.f32 %v527_v36, %v450_v39 }
  0xe9   : > { %v1758_v42 = vpop.f32.mrf.mxu0  ;;  %v1783_v47 = vpop.f32.mrf.mxu1 }
  0xeb   : > { %v453_v44 = vpop.f32.mrf.mxu0 }
  0xec   : > { %v531_v58 = vadd.f32 %v530_v38, %v453_v44 }
  0xed   : > { %v1759_v46 = vpop.f32.mrf.mxu0 }
  0xee   : > { %v1049_v1 = vpop.f32.mrf.mxu1 }
  0xef   : > { %v663_v48 = vpop.f32.mrf.mxu0 }
  0xf0   : > { %v1798_v53 = vpop.f32.mrf.mxu1  ;;  %v670_v55 = vadd.f32 %v663_v48, %v528_v52 }
  0xf1   : > { %v1774_v49 = vpop.f32.mrf.mxu0 }
  0xf2   : > { %v1052_v56 = vpop.f32.mrf.mxu1  ;;  %v754_v60 = vadd.f32 %v747_v41, %v670_v55 }
  0xf3   : > { %v666_v50 = vpop.f32.mrf.mxu0 }
  0xf4   : > { %v1799_v51 = vpop.f32.mrf.mxu1  ;;  %v671_v61 = vadd.f32 %v666_v50, %v531_v58 }
  0xf5   : > { %v1775_v54 = vpop.f32.mrf.mxu0 }
  0xf6   : > { %v755_v3 = vadd.f32 %v750_v45, %v671_v61  ;;  %v1304_v4 = vpop.f32.mrf.mxu1 }
  0xf7   : > { %v918_v57 = vpop.f32.mrf.mxu0 }
  0xf8   : > { %v925_v63 = vadd.f32 %v918_v57, %v754_v60  ;;  %v1814_v8 = vpop.f32.mrf.mxu1 }
  0xf9   : > { %v1790_v59 = vpop.f32.mrf.mxu0 }
  0xfa   : > { %v1056_v6 = vadd.f32 %v1049_v1, %v925_v63  ;;  %v1307_v11 = vpop.f32.mrf.mxu1 }
  0xfb   : > { %v921_v62 = vpop.f32.mrf.mxu0 }
  0xfc   : > { %v926_v7 = vadd.f32 %v921_v62, %v755_v3  ;;  %v1815_v14 = vpop.f32.mrf.mxu1 }
  0xfd   : > { %v1791_v2 = vpop.f32.mrf.mxu0 }
  0xfe   : > { %v1057_v13 = vadd.f32 %v1052_v56, %v926_v7 }
  0xff   : > { %v1133_v5 = vpop.f32.mrf.mxu0 }
 0x100   : > { %v1140_v10 = vadd.f32 %v1133_v5, %v1056_v6 }
 0x101   : > { %v1806_v9 = vpop.f32.mrf.mxu0 }
 0x102   : > { %v1311_v16 = vadd.f32 %v1304_v4, %v1140_v10 }
 0x103   : > { %v1136_v12 = vpop.f32.mrf.mxu0 }
 0x104   : > { %v1141_v17 = vadd.f32 %v1136_v12, %v1057_v13 }
 0x105   : > { %v1807_v15 = vpop.f32.mrf.mxu0 }
 0x106   : > { %v1312_v22 = vadd.f32 %v1307_v11, %v1141_v17 }
 0x107   : > { %v1435_v18 = vpop.f32.mrf.mxu0 }
 0x108   : > { %v1442_v19 = vadd.f32 %v1435_v18, %v1311_v16 }
 0x109   : > { %v1822_v21 = vpop.f32.mrf.mxu0 }
 0x10a   : > { %v1450_v25 = vadd.f32 %v1714_v20, %v1442_v19 }
 0x10b   : > { %v1438_v24 = vpop.f32.mrf.mxu0 }
 0x10c   : > { %v1443_v27 = vadd.f32 %v1438_v24, %v1312_v22  ;;  %v1452_v32 = vmax.f32 %v1450_v25, 0.0 }
 0x10d   : > { %v1823_v28 = vpop.f32.mrf.mxu0 }
 0x10e   : > { %v1451_v29 = vadd.f32 %v1714_v20, %v1443_v27 }
 0x110   : > { %v1453_v30 = vmax.f32 %v1451_v29, 0.0 }
 0x112   : > { %v1454_v31 = vpack.c.bf16 %v1453_v30, %v1452_v32 }
 0x114   : > { %1829 = vmatmul.mubr.msk.bf16.vlgmr.msra.gmra.mxu1 %vm412_vm10, %v1454_v31 }
 0x1d4   : > { %v1510_v0 = vpop.f32.mrf.mxu1 }
 0x1d5   : > { %v1511_v26 = vadd.f32 %v1715_v33, %v1510_v0 }
 0x1d6   : > { %v1830_v34 = vpop.f32.mrf.mxu1 }
 0x1d7   : > { %v1519_v23 = vcombine.high %v1511_v26, %v1511_v26  ;;  %v1523_v35 = vpack.c.bf16 %v1511_v26, %v1511_v26 }
 0x1d8   : > { %v1513_v36 = vpop.f32.mrf.mxu1 }
 0x1d9   : > { %v1524_v37 = vpack.c.bf16 %v1519_v23, %v1519_v23  ;;  %1528 = vst.msk [vmem:[%s224_s25] sm:$0x3] %vm1527_vm0, %v1523_v35  ;;  %v1514_v38 = vadd.f32 %v1715_v33, %v1513_v36 }
 0x1da   : > { %v1831_v40 = vpop.f32.mrf.mxu1 }
 0x1db   : > { %1529 = vst.msk [vmem:[%s224_s25 + $0x2] sm:$0x3] %vm1527_vm0, %v1524_v37  ;;  %v1520_v39 = vcombine.high %v1514_v38, %v1514_v38  ;;  %v1525_v41 = vpack.c.bf16 %v1514_v38, %v1514_v38 }
 0x1dd   : > { %v1526_v42 = vpack.c.bf16 %v1520_v39, %v1520_v39  ;;  %1530 = vst.msk [vmem:[%s224_s25 + $0x4] sm:$0x3] %vm1527_vm0, %v1525_v41 }
 0x1df   : > { %1531 = vst.msk [vmem:[%s224_s25 + $0x6] sm:$0x3] %vm1527_vm0, %v1526_v42 }
 0x1e0 PF: > { %s15_s18 = sadd.s32 1, %s1882_s18  }
 0x1e1   : > { %p12_p4 = scmp.ge.s32.totalorder %s15_s18, 4  }
 0x1e3   :  { %14 = sbr.rel (!%p12_p4) target bundleno = 1 (0x1), region = 80 }

// kernel: generalized_semseg_forward.7
= control target key start
LH: loop header
LB: loop body
LE: loop exit
PB: predicated region body
PF: predicated region fallthrough
CT: control target
= control target key end

     0   :  { %8 = vsyncpa [#allocation6], 0  ;;  %s934_s0 = inlined_call_operand.vmem [shape: bf16[2,8,4,4], index: 0, kind: input, shape index: {}]   ;;  %s935_s1 = inlined_call_operand.vmem [shape: bf16[16,4], index: 1, kind: input, shape index: {}]   ;;  %s936_s2 = inlined_call_operand.vmem [shape: bf16[4,16], index: 2, kind: input, shape index: {}]   ;;  %s937_s3 = inlined_call_operand.hbm [shape: f32[2,8,16,16], index: 3, kind: output, shape index: {}]  }
   0x1   :  { %10 = vsyncpa [#allocation6 + $0x1], 0  ;;  %s773_s12 = smov 0   ;;  %s775_s13 = smov 0  }
   0x2   :  { %s777_s14 = smov 0   ;;  %s779_s15 = smov 0  }
   0x3   :  { %s781_s16 = smov 0   ;;  %s783_s17 = smov 0  }
   0x4 LB: > { %s512_s18 = sadd.s32 4294967295, %s732_s17   ;;  %s513_s19 = sadd.s32 4294967294, %s732_s17   ;;  %s732_s17 = sphi %s783_s17, %s16_s17   ;;  %s728_s16 = sphi %s781_s16, %s944_s16   ;;  %s724_s15 = sphi %s779_s15, %s943_s15   ;;  %s720_s14 = sphi %s777_s14, %s942_s14   ;;  %s716_s13 = sphi %s775_s13, %s941_s13   ;;  %s712_s12 = sphi %s773_s12, %s940_s12  }
   0x5   : > { %s28_s20 = sadd.s32 1, %s728_s16  ;;  %s110_s21 = sadd.s32 1, %s720_s14 }
   0x6   : > { %p30_p0 = scmp.ge.s32.totalorder %s28_s20, 2  ;;  %p120_p1 = scmp.ne.s32.totalorder %s720_s14, %s716_s13 }
   0x7   : > { %p121_p2 = scmp.eq.s32.totalorder %s512_s18, 1  ;;  %p126_p3 = scmp.ne.s32.totalorder %s716_s13, %s712_s12 }
   0x8   : > { %s946_s20 = smov (%p30_p0, %s28_s20), 0  ;;  %p127_p5 = scmp.eq.s32.totalorder %s513_s19, 1 }
   0x9   : > { %p813_p4 = por %p121_p2, %p120_p1  ;;  %s105_s23 = ssub.s32 %s728_s16, %s946_s20 }
   0xa   : > { %p517_p6 = scmp.ge.s32.totalorder %s732_s17, 1  ;;  %p108_p7 = scmp.eq.s32.totalorder %s105_s23, 0 }
   0xb   : > { %p820_p8 = por %p127_p5, %p126_p3  ;;  %p165_p9 = scmp.lt.s32.totalorder %s732_s17, 3 }
   0xc   : > { %s826_s25 = scalar_select %p108_p7, %s720_s14, %s110_s21  }
   0xd   : > { %p166_p10 = pnand %p517_p6, %p165_p9 }
   0xe   : > { %s191_s26 = sand.u32 (!%p166_p10), 1, %s716_s13   ;;  %p194_p11 = scmp.lt.s32.totalorder (!%p166_p10), %s724_s15, 1 }
   0xf   : > { %169 = sbr.rel (%p166_p10) target bundleno = 508 (0x1fc), region = 32  ;;  %s838_s4 = sshll.u32 (!%p166_p10), %s191_s26, 7 }
  0x10   : > { %s193_s18 = scalar_lea.vmem (!%p166_p10), [#allocation5], %s838_s4  ;;  %s852_s19 = smov (!%p166_p10), 0  }
  0x14   : > { %v207_v0 = vld [vmem:[%s935_s1] sm:$0xf]  ;;  %v208_v1 = vld [vmem:[%s935_s1 + $0x4] sm:$0xf]  ;;  %vm210_vm0 = vcmask 130048   ;;  %v746_v3 = vmov -inf  }
  0x15   : > { %v209_v2 = vld [vmem:[%s936_s2] sm:$0x3]  ;;  %211 = vst.msk [vmem:[#allocation3] sm:$0xff] %vm210_vm0, %v746_v3  ;;  %212 = vst.msk [vmem:[#allocation3 + $0x8] sm:$0xff] %vm210_vm0, %v746_v3  ;;  %s195_s7 = scalar_select %p194_p11, %s724_s15, 1 }
  0x17   : > { %s533_s8 = sshll.u32 %s195_s7, 4 }
  0x18   : > { %s849_s11 = scalar_lea.vmem %s934_s0, %s533_s8 }
  0x19 LB: >> { %v747_v4 = vmov 0.0   ;;  %vm748_vm1 = vmmov 0   ;;  %s521_s21 = sshll.u32 %s736_s19, 1  ;;  %vm231_vm2 = vcmask 1041408   ;;  %v522_v7 = vcombine.low %v207_v0, %v208_v1  ;;  %s525_s27 = sshll.u32 %s736_s19, 4  ;;  %s736_s19 = sphi %s852_s19, %s218_s19  }
  0x1a   : >> { %539 = vmatprep.subr.bf16.mxu0 %v747_v4  ;;  %541 = vmatprep.mubr.msk.bf16.mxu0 %vm748_vm1, %v747_v4  ;;  %s220_s23 = scalar_lea.vmem %s849_s11, %s521_s21  ;;  %vm227_vm3 = vcmask 31744   ;;  %v281_v8 = vsel %vm231_vm2, %v209_v2, 0  ;;  %s325_s28 = scalar_lea.vmem [#allocation2], %s525_s27 }
  0x1b   : >> { %545 = vmatprep.subr.bf16.mxu1 %v747_v4  ;;  %547 = vmatprep.mubr.msk.bf16.mxu1 %vm748_vm1, %v747_v4  ;;  %v221_v5 = vld [vmem:[%s220_s23] sm:$0x3]  ;;  %s218_s19 = sadd.s32 1, %s736_s19  }
  0x1c   : >> { %v233_v6 = vsel %vm231_vm2, %v221_v5, 0  ;;  %546 = vmatpush3.bf16.msra.mxu1 %v281_v8  ;;  %v328_v14 = vld [vmem:[#allocation3] sm:$0xff]  ;;  %v329_v18 = vld [vmem:[#allocation3 + $0x8] sm:$0xff]  ;;  %p215_p12 = scmp.ge.s32.totalorder %s218_s19, 8  }
  0x1d   : >> { %540 = vmatpush3.bf16.msra.mxu0 %v233_v6  ;;  %v749_v22 = vmov (%p215_p12), 0.0   ;;  %s738_s29 = smov (%p215_p12), 0  }
  0x1e   : > { %334 = vst.msk [vmem:[#allocation4] sm:$0xff] (%p215_p12), %vm210_vm0, %v749_v22  ;;  %335 = vst.msk [vmem:[#allocation4 + $0x8] sm:$0xff] (%p215_p12), %vm210_vm0, %v749_v22 }
  0x20   : >> { %542 = vmatmul.mubr.msk.bf16.vlgmr.msra.gmra.mxu0 %vm227_vm3, %v522_v7 }
  0xe0   : >> { %v269_v9 = vpop.f32.mrf.mxu0 }
  0xe2   : >> { %v543_v10 = vpop.f32.mrf.mxu0 }
  0xe4   : >> { %v272_v11 = vpop.f32.mrf.mxu0 }
  0xe5   : >> { %v276_v12 = vpack.c.bf16 %v272_v11, %v269_v9 }
  0xe6   : >> { %v544_v13 = vpop.f32.mrf.mxu0 }
  0xe7   : >> { %548 = vmatmul.mubr.msk.bf16.vlgmr.msra.gmra.mxu1 %vm227_vm3, %v276_v12 }
 0x1a7   : >> { %v317_v15 = vpop.f32.mrf.mxu1 }
 0x1a8   : >> { %326 = vst.msk [vmem:[%s325_s28] sm:$0xff] %vm210_vm0, %v317_v15  ;;  %v330_v16 = vmax.f32 %v328_v14, %v317_v15 }
 0x1a9   : >> { %v549_v17 = vpop.f32.mrf.mxu1 }
 0x1aa   : >> { %332 = vst.msk [vmem:[#allocation3] sm:$0xff] %vm210_vm0, %v330_v16 }
 0x1ab   : >> { %v320_v19 = vpop.f32.mrf.mxu1 }
 0x1ac   : >> { %327 = vst.msk [vmem:[%s325_s28 + $0x8] sm:$0xff] %vm210_vm0, %v320_v19  ;;  %v331_v20 = vmax.f32 %v329_v18, %v320_v19  ;;  %217 = sbr.rel (!%p215_p12) target bundleno = 25 (0x19), region = 96 }
 0x1ad   : >> { %v550_v21 = vpop.f32.mrf.mxu1 }
 0x1ae   : >> { %333 = vst.msk [vmem:[#allocation3 + $0x8] sm:$0xff] %vm210_vm0, %v331_v20 }
 0x1b1 LB: >> { %s526_s30 = sshll.u32 %s740_s29, 4  ;;  %v346_v23 = vld [vmem:[#allocation3] sm:$0xff]  ;;  %v356_v31 = vld [vmem:[#allocation4] sm:$0xff]  ;;  %v357_v32 = vld [vmem:[#allocation4 + $0x8] sm:$0xff]  ;;  %s341_s29 = sadd.s32 1, %s740_s29   ;;  %s740_s29 = sphi %s738_s29, %s341_s29  }
 0x1b2   : >> { %s343_s5 = scalar_lea.vmem [#allocation2], %s526_s30  ;;  %p338_p13 = scmp.ge.s32.totalorder %s341_s29, 8  }
 0x1b3   : >> { %v344_v25 = vld [vmem:[%s343_s5] sm:$0xff]  ;;  %v345_v26 = vld [vmem:[%s343_s5 + $0x8] sm:$0xff]  ;;  %s742_s6 = smov (%p338_p13), 0  }
 0x1b4   : >> { %v348_v27 = vsub.f32 %v344_v25, %v346_v23 }
 0x1b5   : >> { %v347_v24 = vld [vmem:[#allocation3 + $0x8] sm:$0xff] }
 0x1b6   : >> { %v349_v28 = vsub.f32 %v345_v26, %v347_v24  ;;  %v350_v29 = vmul.f32 1.442695, %v348_v27 }
 0x1b8   : >> { %v352_v30 = vmul.f32 1.442695, %v349_v28  ;;  %636 = vpow2.f32 %v350_v29 }
 0x1ba   : >> { %638 = vpow2.f32 %v352_v30 }
 0x1c5   : >> { %v637_v33 = vpop.eup %636 }
 0x1c6   : >> { %354 = vst.msk [vmem:[%s343_s5] sm:$0xff] %vm210_vm0, %v637_v33  ;;  %v358_v35 = vadd.f32 %v637_v33, %v356_v31 }
 0x1c7   : >> { %v639_v34 = vpop.eup %638 }
 0x1c8   : >> { %355 = vst.msk [vmem:[%s343_s5 + $0x8] sm:$0xff] %vm210_vm0, %v639_v34  ;;  %v359_v36 = vadd.f32 %v639_v34, %v357_v32  ;;  %360 = vst.msk [vmem:[#allocation4] sm:$0xff] %vm210_vm0, %v358_v35 }
 0x1c9   : > { %340 = sbr.rel (!%p338_p13) target bundleno = 433 (0x1b1), region = 107 }
 0x1ca   : >> { %361 = vst.msk [vmem:[#allocation4 + $0x8] sm:$0xff] %vm210_vm0, %v359_v36 }
 0x1cf   : > { %v362_v37 = vld [vmem:[#allocation4] sm:$0xff] }
 0x1d0   : > { %640 = vrcp.f32 %v362_v37 }
 0x1d1   : > { %v363_v38 = vld [vmem:[#allocation4 + $0x8] sm:$0xff] }
 0x1d2   : > { %642 = vrcp.f32 %v363_v38 }
 0x1dd   : > { %v641_v39 = vpop.eup %640 }
 0x1df   : > { %v643_v40 = vpop.eup %642 }
 0x1e0 LB: >> { %s527_s7 = sshll.u32 %s744_s6, 4  ;;  %s373_s6 = sadd.s32 1, %s744_s6   ;;  %s744_s6 = sphi %s742_s6, %s373_s6  }
 0x1e1   : >> { %s375_s8 = scalar_lea.vmem [#allocation2], %s527_s7  ;;  %s380_s9 = scalar_lea.vmem %s193_s18, %s527_s7 [#allocation5] }
 0x1e2   : >> { %v376_v41 = vld [vmem:[%s375_s8] sm:$0xff]  ;;  %v377_v42 = vld [vmem:[%s375_s8 + $0x8] sm:$0xff]  ;;  %p370_p0 = scmp.ge.s32.totalorder %s373_s6, 8  }
 0x1e3   : >> { %v378_v43 = vmul.f32 %v641_v39, %v376_v41  ;;  %v379_v44 = vmul.f32 %v643_v40, %v377_v42  ;;  %s534_s10 = sshll.u32 (%p370_p0), %s724_s15, 11  ;;  %s399_s23 = sshll.u32 (%p370_p0), %s193_s18, 4  ;;  %s885_s23 = int_to_ptr.vmem [resolvable:$true] %s399_s23 }
 0x1e4   : > { %372 = sbr.rel (!%p370_p0) target bundleno = 480 (0x1e0), region = 118  ;;  %s881_s21 = scalar_lea.hbm (%p370_p0), %s937_s3, %s534_s10 }
 0x1e5   : >> { %381 = vst.msk [vmem:[%s380_s9] sm:$0xff] %vm210_vm0, %v378_v43  ;;  %382 = vst.msk [vmem:[%s380_s9 + $0x8] sm:$0xff] %vm210_vm0, %v379_v44  ;;  %s889_s27 = scalar_lea.sflag (%p370_p0), [#allocation6], %s191_s26  ;;  %s644_s28 = scalar_lea.vmem (%p370_p0), %s885_s23, 2048 }
 0x1e6   : > { %p645_p1 = scmp.ne.s32.totalorder (%p370_p0), %s885_s23, %s644_s28  ;;  %s750_s15 = smov (%p370_p0), [#allocation5]  }
 0x1e7   : > { %s648_s29 = sshll.u32 (%p370_p0), %s750_s15, 4  ;;  %s649_s29 = int_to_ptr.vmem [resolvable:$false] %s648_s29 }
 0x1e8   : > { %p646_p2 = pnand (%p370_p0), %p645_p1, %p813_p4  ;;  %s650_s30 = scalar_lea.vmem (%p370_p0), %s649_s29, 4096 }
 0x1e9   : > { %p651_p5 = scmp.lt.s32.totalorder %s885_s23, %s649_s29  ;;  %p652_p6 = scmp.lt.s32.totalorder %s650_s30, %s644_s28 }
 0x1ea   : > { %p647_p3 = pneg %p646_p2 }
 0x1eb   : > { %p653_p7 = por %p652_p6, %p651_p5 }
 0x1ed   : > { %p654_p9 = pnand %p653_p7, %p647_p3 }
 0x1ef   : > { %657 = shalt.err (!%p654_p9)
}
 0x1f0   : > { %s658_s26 = scalar_lea.hbm %s881_s21, 2048  ;;  %s662_s5 = scalar_lea.hbm %s937_s3, 4096 }
 0x1f1   : > { %p659_p10 = scmp.ne.s32.totalorder %s881_s21, %s658_s26  ;;  %p663_p13 = scmp.lt.s32.totalorder %s881_s21, %s937_s3 }
 0x1f2   : > { %p664_p0 = scmp.lt.s32.totalorder %s662_s5, %s658_s26 }
 0x1f3   : > { %p660_p11 = pnand %p659_p10, %p813_p4 }
 0x1f4   : > { %p665_p1 = por %p664_p0, %p663_p13 }
 0x1f5   : > { %p661_p12 = pneg %p660_p11 }
 0x1f7   : > { %p666_p2 = pnand %p665_p1, %p661_p12 }
 0x1f9   : > { %669 = shalt.err (!%p666_p2)
}
 0x1fa   : > { %s751_s8 = smov 128   ;;  %s752_s9 = smov 8  }
 0x1fb   : > { %551 = dma.vmem_to_hbm [thread:$0]  (%p813_p4), %s885_s23, 2048, %s881_s21, %s889_s27, %s751_s8, %s751_s8, %s752_s9  }
 0x1fc PF: > { %p557_p3 = scmp.ge.s32.totalorder %s732_s17, 2  ;;  %s414_s10 = sand.u32 1, %s712_s12  }
 0x1fd   : > { %s415_s11 = scalar_lea.sflag [#allocation6], %s414_s10 }
 0x1fe   : > { %p554_p5 = pnand %p557_p3, %p820_p8 }
 0x200   : > { %p555_p6 = pneg %p554_p5 }
 0x202   : > { %707 = dma.done.wait (%p555_p6), %s415_s11, 2048  }
 0x203   : > { %709 = vsyncadd (%p555_p6), %s415_s11, 4294965248  ;;  %s16_s17 = sadd.s32 1, %s732_s17   ;;  %s940_s12 = smov %s716_s13 }
 0x204   : > { %p13_p7 = scmp.ge.s32.totalorder %s16_s17, 4   ;;  %s941_s13 = smov %s720_s14 }
 0x205   : > { %s942_s14 = smov %s826_s25  ;;  %s943_s15 = smov %s728_s16 }
 0x206   : > { %s944_s16 = smov %s946_s20  ;;  %15 = sbr.rel (!%p13_p7) target bundleno = 4 (0x4), region = 129 }
 0x20b   :  { %420 = vsyncpa [#allocation6], 1 }
 0x20c   :  { %422 = vsyncpa [#allocation6 + $0x1], 1 }

// kernel: generalized_semseg_forward.4
= control target key start
LH: loop header
LB: loop body
LE: loop exit
PB: predicated region body
PF: predicated region fallthrough
CT: control target
= control target key end

     0   :  { %s2217_s21 = smov 0   ;;  %s2527_s0 = inlined_call_operand.vmem [shape: bf16[2,9,9,3], index: 0, kind: input, shape index: {}]   ;;  %s2528_s1 = inlined_call_operand.vmem [shape: bf16[2,9,9,3], index: 1, kind: input, shape index: {}]   ;;  %s2529_s2 = inlined_call_operand.vmem [shape: bf16[2,9,9,3], index: 2, kind: input, shape index: {}]   ;;  %s2530_s3 = inlined_call_operand.vmem [shape: bf16[2,9,9,3], index: 3, kind: input, shape index: {}]   ;;  %s2531_s4 = inlined_call_operand.vmem [shape: bf16[9,3,16], index: 4, kind: input, shape index: {}]   ;;  %s2532_s5 = inlined_call_operand.vmem [shape: f32[1,16], index: 5, kind: input, shape index: {}]   ;;  %s2533_s6 = inlined_call_operand.vmem [shape: bf16[2,8,8,16], index: 6, kind: output, shape index: {}]  }
   0x1 LB: > { %s1859_s22 = sadd.s32 4294967295, %s2179_s21   ;;  %p1863_p0 = scmp.ge.s32.totalorder %s2179_s21, 1  ;;  %s2179_s21 = sphi %s2217_s21, %s16_s21  }
   0x2   : > { %p242_p1 = scmp.lt.s32.totalorder %s2179_s21, 3 }
   0x4   : > { %p243_p2 = pnand %p1863_p0, %p242_p1 }
   0x5   : > { %p287_p3 = scmp.lt.s32.totalorder (!%p243_p2), %s1859_s22, 1 }
   0x6   : > { %246 = sbr.rel (%p243_p2) target bundleno = 300 (0x12c), region = 44 }
   0xb   : > { %v1870_v0 = vld [vmem:[%s2531_s4 + $0x2] sm:$0x3]  ;;  %vm380_vm0 = vcmask 1040384   ;;  %vm381_vm1 = vcmask 1041408   ;;  %v2181_v1 = vmov 65535   ;;  %s2537_s22 = smov (!%p287_p3, %s1859_s22), 1 }
   0xc   : > { %v382_v2 = vsel %vm380_vm0, 4294967295, %v2181_v1  ;;  %v313_v3 = vld [vmem:[%s2531_s4] sm:$0x3]  ;;  %v1871_v4 = vld [vmem:[%s2531_s4 + $0x4] sm:$0x3]  ;;  %s2242_s29 = smul.u32 72, %s2537_s22 }
   0xd   : > { %v2234_v5 = vsel %vm381_vm1, %v382_v2, 0  ;;  %vm367_vm2 = vcmask 23552   ;;  %v1872_v9 = vld [vmem:[%s2531_s4 + $0x6] sm:$0x3]  ;;  %v1873_v10 = vld [vmem:[%s2531_s4 + $0x8] sm:$0x3] }
   0xe   : > { %v385_v6 = vand.u32 %v1870_v0, %v2234_v5  ;;  %v485_v7 = vand.u32 %v2234_v5, %v313_v3  ;;  %v708_v8 = vand.u32 %v1871_v4, %v2234_v5  ;;  %s2248_s8 = scalar_lea.vmem %s2528_s1, %s2242_s29  ;;  %vm568_vm3 = vsmask.f32 3328  ;;  %s2264_s15 = scalar_lea.vmem %s2527_s0, %s2242_s29  ;;  %v1874_v17 = vld [vmem:[%s2531_s4 + $0xa] sm:$0x3]  ;;  %v1875_v47 = vld [vmem:[%s2531_s4 + $0xc] sm:$0x3] }
   0xf   : > { %v2149_v11 = vld [vmem:[%s2248_s8] ss:$8 sps:$4 sm:$0xff]   ;;  %v2151_v13 = vld [vmem:[%s2248_s8 + $0x10] ss:$8 sps:$4 sm:$0xff]   ;;  %v824_v15 = vand.u32 %v1872_v9, %v2234_v5  ;;  %v2270_v16 = vand.u32 %v1873_v10, %v2234_v5  ;;  %vm569_vm4 = vsmask.f32 7440  ;;  %v2288_v32 = vand.u32 %v1874_v17, %v2234_v5  ;;  %s2329_s24 = scalar_lea.vmem %s2529_s2, %s2242_s29  ;;  %s2348_s30 = scalar_lea.vmem %s2530_s3, %s2242_s29 }
  0x10   : > { %2137 = vmatprep.subr.bf16.mxu1 %v385_v6  ;;  %2047 = vmatprep.subr.bf16.mxu0 %v385_v6  ;;  %v2150_v12 = vld [vmem:[%s2248_s8 + $0x20] ss:$8 sps:$4 sm:$0xff]   ;;  %v2152_v14 = vld [vmem:[%s2248_s8 + $0x30] ss:$8 sps:$4 sm:$0xff]   ;;  %v553_v20 = vld [vmem:[%s2264_s15 + $0x4] sm:$0x1] }
  0x11   : > { %2138 = vmatpush3.bf16.msra.mxu1 %v385_v6  ;;  %2048 = vmatpush3.bf16.msra.mxu0 %v385_v6  ;;  %v2153_v18 = vld [vmem:[%s2264_s15] ss:$8 sps:$4 sm:$0xff]   ;;  %v2154_v22 = vld [vmem:[%s2264_s15 + $0x10] ss:$8 sps:$4 sm:$0xff]   ;;  %v555_v23 = vld [vmem:[%s2264_s15 + $0xc] sm:$0x1] }
  0x12   : > { %2057 = vmatprep.subr.bf16.mxu1 %v485_v7  ;;  %2067 = vmatprep.subr.bf16.mxu0 %v708_v8  ;;  %v552_v19 = vld [vmem:[%s2264_s15] sm:$0xf]  ;;  %v554_v21 = vld [vmem:[%s2264_s15 + $0x8] sm:$0xf]  ;;  %v581_v26 = vshll.u32 %v553_v20, 16  ;;  %v595_v29 = vshll.u32 %v555_v23, 16  ;;  %vm2297_vm5 = vmor %vm568_vm3, %vm569_vm4 }
  0x13   : > { %2049 = vmatprep.mubr.msk.bf16.mxu0 %vm367_vm2, %v2149_v11  ;;  %2053 = vmatprep.mubr.msk.bf16.mxu1 %vm367_vm2, %v2150_v12  ;;  %v572_v24 = vshrl.u32 %v552_v19, 16  ;;  %v575_v25 = vshll.u32 %v552_v19, 16  ;;  %v586_v27 = vshrl.u32 %v554_v21, 16  ;;  %v589_v28 = vshll.u32 %v554_v21, 16  ;;  %v556_v30 = vld [vmem:[%s2264_s15 + $0x10] sm:$0xf] }
  0x14   : > { %2050 = vmatmul.mubr.msk.bf16.vlgmr.msra.gmra.mxu0 %vm367_vm2, %v2151_v13  ;;  %2054 = vmatmul.mubr.msk.bf16.vlgmr.msra.gmra.mxu1 %vm367_vm2, %v2152_v14  ;;  %v557_v31 = vld [vmem:[%s2264_s15 + $0x14] sm:$0x1]  ;;  %v583_v35 = vrot.slane %v581_v26, 5  ;;  %v558_v37 = vld [vmem:[%s2264_s15 + $0x18] sm:$0xf]  ;;  %v597_v39 = vrot.slane %v595_v29, 5 }
  0x15   : > { %2068 = vmatpush3.bf16.msra.mxu0 %v708_v8  ;;  %2058 = vmatpush3.bf16.msra.mxu1 %v485_v7  ;;  %v574_v33 = vrot.slane %v572_v24, 4  ;;  %v577_v34 = vrot.slane %v575_v25, 5  ;;  %v588_v36 = vrot.slane %v586_v27, 4  ;;  %v591_v38 = vrot.slane %v589_v28, 5  ;;  %v559_v40 = vld [vmem:[%s2264_s15 + $0x1c] sm:$0x1] }
  0x16   : > { %2059 = vmatprep.mubr.msk.bf16.mxu1 %vm367_vm2, %v2153_v18  ;;  %2077 = vmatprep.subr.bf16.mxu1 %v824_v15  ;;  %v600_v41 = vshrl.u32 %v556_v30, 16  ;;  %v603_v42 = vshll.u32 %v556_v30, 16  ;;  %v609_v44 = vshll.u32 %v557_v31, 16  ;;  %v614_v45 = vshrl.u32 %v558_v37, 16  ;;  %v2155_v57 = vld [vmem:[%s2264_s15 + $0x20] ss:$8 sps:$4 sm:$0xff]  }
  0x17   : > { %2087 = vmatprep.subr.bf16.mxu0 %v2270_v16  ;;  %v578_v43 = vor.u32 %v577_v34, %v574_v33  ;;  %v617_v46 = vshll.u32 %v558_v37, 16  ;;  %v592_v49 = vor.u32 %v591_v38, %v588_v36  ;;  %v623_v52 = vshll.u32 %v559_v40, 16  ;;  %v2156_v63 = vld [vmem:[%s2264_s15 + $0x30] ss:$8 sps:$4 sm:$0xff]   ;;  %v560_v0 = vld [vmem:[%s2264_s15 + $0x20] sm:$0xf] }
  0x18   : > { %v602_v50 = vrot.slane %v600_v41, 4  ;;  %v605_v51 = vrot.slane %v603_v42, 5  ;;  %v611_v54 = vrot.slane %v609_v44, 5  ;;  %v616_v55 = vrot.slane %v614_v45, 4  ;;  %v561_v1 = vld [vmem:[%s2264_s15 + $0x24] sm:$0x1] }
  0x19   : > { %v579_v53 = vrot.slane %v578_v43, 4  ;;  %v619_v56 = vrot.slane %v617_v46, 5  ;;  %v593_v58 = vrot.slane %v592_v49, 4  ;;  %v625_v60 = vrot.slane %v623_v52, 5  ;;  %v562_v4 = vld [vmem:[%s2264_s15 + $0x28] sm:$0xf] }
  0x1a   : > { %v606_v59 = vor.u32 %v605_v51, %v602_v50  ;;  %v563_v6 = vld [vmem:[%s2264_s15 + $0x2c] sm:$0x1]  ;;  %v628_v7 = vshrl.u32 %v560_v0, 16  ;;  %v2315_v8 = vand.u32 %v1875_v47, %v2234_v5  ;;  %v631_v11 = vshll.u32 %v560_v0, 16  ;;  %v564_v13 = vld [vmem:[%s2264_s15 + $0x30] sm:$0xf] }
  0x1b   : > { %v584_v61 = vsel %vm2297_vm5, %v579_v53, %v583_v35  ;;  %v620_v62 = vor.u32 %v619_v56, %v616_v55  ;;  %v598_v2 = vsel %vm2297_vm5, %v593_v58, %v597_v39  ;;  %v637_v12 = vshll.u32 %v561_v1, 16  ;;  %v565_v19 = vld [vmem:[%s2264_s15 + $0x34] sm:$0x1]  ;;  %v566_v24 = vld [vmem:[%s2264_s15 + $0x38] sm:$0xf]  ;;  %s1993_s10 = sshll.u32 %s2537_s22, 5 }
  0x1c   : > { %2060 = vmatmul.mubr.msk.bf16.vlgmr.msra.gmra.mxu1 %vm367_vm2, %v2154_v22  ;;  %v607_v3 = vrot.slane %v606_v59, 4  ;;  %v1894_v9 = vcombine.low %v584_v61, %v598_v2  ;;  %v642_v17 = vshrl.u32 %v562_v4, 16  ;;  %v645_v18 = vshll.u32 %v562_v4, 16  ;;  %v567_v28 = vld [vmem:[%s2264_s15 + $0x3c] sm:$0x1]  ;;  %s2500_s22 = scalar_lea.vmem %s2533_s6, %s1993_s10 }
  0x1d   : > { %2078 = vmatpush3.bf16.msra.mxu1 %v824_v15  ;;  %2063 = vmatprep.mubr.msk.bf16.mxu1 %vm367_vm2, %v2155_v57  ;;  %v621_v10 = vrot.slane %v620_v62, 4  ;;  %v630_v15 = vrot.slane %v628_v7, 4  ;;  %v633_v21 = vrot.slane %v631_v11, 5  ;;  %v639_v22 = vrot.slane %v637_v12, 5  ;;  %v1876_v39 = vld [vmem:[%s2531_s4 + $0xe] sm:$0x3] }
  0x1e   : > { %2097 = vmatprep.subr.bf16.mxu1 %v2288_v32  ;;  %v612_v14 = vsel %vm2297_vm5, %v607_v3, %v611_v54  ;;  %2069 = vmatprep.mubr.msk.bf16.mxu0 %vm367_vm2, %v1894_v9  ;;  %v651_v23 = vshll.u32 %v563_v6, 16  ;;  %v644_v26 = vrot.slane %v642_v17, 4  ;;  %v647_v27 = vrot.slane %v645_v18, 5  ;;  %v2157_v43 = vld [vmem:[%s2329_s24] ss:$8 sps:$4 sm:$0xff]  }
  0x1f   : > { %v626_v20 = vsel %vm2297_vm5, %v621_v10, %v625_v60  ;;  %v656_v29 = vshrl.u32 %v564_v13, 16  ;;  %v634_v30 = vor.u32 %v633_v21, %v630_v15  ;;  %v659_v33 = vshll.u32 %v564_v13, 16  ;;  %v2158_v51 = vld [vmem:[%s2329_s24 + $0x10] ss:$8 sps:$4 sm:$0xff]   ;;  %v2161_v59 = vld [vmem:[%s2329_s24 + $0x20] ss:$8 sps:$4 sm:$0xff]  }
  0x20   : > { %v1895_v25 = vcombine.low %v612_v14, %v626_v20  ;;  %v653_v31 = vrot.slane %v651_v23, 5  ;;  %v665_v34 = vshll.u32 %v565_v19, 16  ;;  %v648_v35 = vor.u32 %v647_v27, %v644_v26  ;;  %v2159_v61 = vld [vmem:[%s2348_s30] ss:$8 sps:$4 sm:$0xff]   ;;  %v2162_v0 = vld [vmem:[%s2329_s24 + $0x30] ss:$8 sps:$4 sm:$0xff]  }
  0x21   : > { %v658_v36 = vrot.slane %v656_v29, 4  ;;  %v670_v37 = vshrl.u32 %v566_v24, 16  ;;  %v673_v38 = vshll.u32 %v566_v24, 16  ;;  %v635_v40 = vrot.slane %v634_v30, 4  ;;  %v1015_v1 = vld [vmem:[%s2329_s24] sm:$0xf] }
  0x22   : > { %2070 = vmatmul.mubr.msk.bf16.vlgmr.msra.gmra.mxu0 %vm367_vm2, %v1895_v25  ;;  %v661_v41 = vrot.slane %v659_v33, 5  ;;  %v679_v42 = vshll.u32 %v567_v28, 16  ;;  %v649_v44 = vrot.slane %v648_v35, 4  ;;  %v667_v50 = vrot.slane %v665_v34, 5  ;;  %v1016_v2 = vld [vmem:[%s2329_s24 + $0x4] sm:$0x1] }
  0x23   : > { %2088 = vmatpush3.bf16.msra.mxu0 %v2270_v16  ;;  %v672_v45 = vrot.slane %v670_v37, 4  ;;  %v675_v46 = vrot.slane %v673_v38, 5  ;;  %v640_v47 = vsel %vm2297_vm5, %v635_v40, %v639_v22  ;;  %v2353_v56 = vand.u32 %v1876_v39, %v2234_v5  ;;  %v1018_v3 = vld [vmem:[%s2329_s24 + $0xc] sm:$0x1]  ;;  %v1019_v10 = vld [vmem:[%s2329_s24 + $0x10] sm:$0xf] }
  0x24   : > { %2064 = vmatmul.mubr.msk.bf16.gmra.mxu1 %vm367_vm2, %v2156_v63  ;;  %2107 = vmatprep.subr.bf16.mxu0 %v2315_v8  ;;  %v662_v49 = vor.u32 %v661_v41, %v658_v36  ;;  %v654_v16 = vsel %vm2297_vm5, %v649_v44, %v653_v31  ;;  %v681_v53 = vrot.slane %v679_v42, 5  ;;  %v1877_v63 = vld [vmem:[%s2531_s4 + $0x10] sm:$0x3]  ;;  %v1032_v4 = vshrl.u32 %v1015_v1, 16  ;;  %v1020_v14 = vld [vmem:[%s2329_s24 + $0x14] sm:$0x1] }
  0x25   : > { %2079 = vmatprep.mubr.msk.bf16.mxu1 %vm367_vm2, %v2157_v43  ;;  %v676_v52 = vor.u32 %v675_v46, %v672_v45  ;;  %v1896_v54 = vcombine.low %v640_v47, %v654_v16  ;;  %v1035_v6 = vshll.u32 %v1015_v1, 16  ;;  %v1041_v7 = vshll.u32 %v1016_v2, 16  ;;  %v2160_v11 = vld [vmem:[%s2348_s30 + $0x10] ss:$8 sps:$4 sm:$0xff]   ;;  %v2163_v18 = vld [vmem:[%s2348_s30 + $0x20] ss:$8 sps:$4 sm:$0xff]  }
  0x26   : > { %v663_v55 = vrot.slane %v662_v49, 4  ;;  %v1055_v13 = vshll.u32 %v1018_v3, 16  ;;  %v1021_v15 = vld [vmem:[%s2329_s24 + $0x18] sm:$0xf]  ;;  %v2381_v17 = vand.u32 %v1877_v63, %v2234_v5  ;;  %v1034_v19 = vrot.slane %v1032_v4, 4 }
  0x27   : > { %v677_v57 = vrot.slane %v676_v52, 4  ;;  %2073 = vmatprep.mubr.msk.bf16.mxu0 %vm367_vm2, %v1896_v54  ;;  %v1037_v20 = vrot.slane %v1035_v6, 5  ;;  %v1043_v21 = vrot.slane %v1041_v7, 5  ;;  %v1022_v23 = vld [vmem:[%s2329_s24 + $0x1c] sm:$0x1]  ;;  %v1060_v26 = vshrl.u32 %v1019_v10, 16 }
  0x28   : > { %v668_v58 = vsel %vm2297_vm5, %v663_v55, %v667_v50  ;;  %v1057_v25 = vrot.slane %v1055_v13, 5  ;;  %v1063_v27 = vshll.u32 %v1019_v10, 16  ;;  %v1069_v29 = vshll.u32 %v1020_v14, 16  ;;  %v1023_v45 = vld [vmem:[%s2329_s24 + $0x20] sm:$0xf] }
  0x29   : > { %v682_v60 = vsel %vm2297_vm5, %v677_v57, %v681_v53  ;;  %v1038_v28 = vor.u32 %v1037_v20, %v1034_v19  ;;  %v1074_v30 = vshrl.u32 %v1021_v15, 16  ;;  %v1077_v31 = vshll.u32 %v1021_v15, 16  ;;  %v1024_v46 = vld [vmem:[%s2329_s24 + $0x24] sm:$0x1]  ;;  %v1025_v47 = vld [vmem:[%s2329_s24 + $0x28] sm:$0xf] }
  0x2a   : > { %v1897_v62 = vcombine.low %v668_v58, %v682_v60  ;;  %v1062_v5 = vrot.slane %v1060_v26, 4  ;;  %v1065_v34 = vrot.slane %v1063_v27, 5  ;;  %v1083_v35 = vshll.u32 %v1022_v23, 16  ;;  %v2164_v49 = vld [vmem:[%s2348_s30 + $0x30] ss:$8 sps:$4 sm:$0xff]  }
  0x2b   : > { %v1039_v36 = vrot.slane %v1038_v28, 4  ;;  %v1076_v37 = vrot.slane %v1074_v30, 4  ;;  %v1079_v38 = vrot.slane %v1077_v31, 5  ;;  %v1071_v41 = vrot.slane %v1069_v29, 5  ;;  %v2165_v55 = vld [vmem:[%s2264_s15 + $0x8] ss:$8 sps:$4 sm:$0xff]  }
  0x2c   : > { %2080 = vmatmul.mubr.msk.bf16.vlgmr.msra.gmra.mxu1 %vm367_vm2, %v2158_v51  ;;  %2074 = vmatmul.mubr.msk.bf16.gmra.mxu0 %vm367_vm2, %v1897_v62  ;;  %v1066_v40 = vor.u32 %v1065_v34, %v1062_v5  ;;  %v1085_v42 = vrot.slane %v1083_v35, 5  ;;  %v1088_v16 = vshrl.u32 %v1023_v45, 16  ;;  %v1091_v52 = vshll.u32 %v1023_v45, 16  ;;  %v1029_v4 = vld [vmem:[%s2329_s24 + $0x38] sm:$0xf] }
  0x2d   : > { %2098 = vmatpush3.bf16.msra.mxu1 %v2288_v32  ;;  %2083 = vmatprep.mubr.msk.bf16.mxu1 %vm367_vm2, %v2161_v59  ;;  %v1017_v32 = vld [vmem:[%s2329_s24 + $0x8] sm:$0xf]  ;;  %v1044_v43 = vsel %vm2297_vm5, %v1039_v36, %v1043_v21  ;;  %v1080_v44 = vor.u32 %v1079_v38, %v1076_v37  ;;  %v1097_v57 = vshll.u32 %v1024_v46, 16  ;;  %v1102_v58 = vshrl.u32 %v1025_v47, 16  ;;  %v1027_v59 = vld [vmem:[%s2329_s24 + $0x30] sm:$0xf] }
  0x2e   : > { %2117 = vmatprep.subr.bf16.mxu1 %v2353_v56  ;;  %2089 = vmatprep.mubr.msk.bf16.mxu0 %vm367_vm2, %v2159_v61  ;;  %v1046_v9 = vshrl.u32 %v1017_v32, 16  ;;  %v1049_v12 = vshll.u32 %v1017_v32, 16  ;;  %v1067_v51 = vrot.slane %v1066_v40, 4  ;;  %v1090_v61 = vrot.slane %v1088_v16, 4  ;;  %v1030_v10 = vld [vmem:[%s2329_s24 + $0x3c] sm:$0x1] }
  0x2f   : > { %v1081_v54 = vrot.slane %v1080_v44, 4  ;;  %v1093_v62 = vrot.slane %v1091_v52, 5  ;;  %v1105_v63 = vshll.u32 %v1025_v47, 16  ;;  %v1099_v2 = vrot.slane %v1097_v57, 5  ;;  %v2167_v35 = vld [vmem:[%s2264_s15 + $0x28] ss:$8 sps:$4 sm:$0xff]  }
  0x30   : > { %v1048_v22 = vrot.slane %v1046_v9, 4  ;;  %v1051_v24 = vrot.slane %v1049_v12, 5  ;;  %v1072_v60 = vsel %vm2297_vm5, %v1067_v51, %v1071_v41  ;;  %v1104_v32 = vrot.slane %v1102_v58, 4  ;;  %v1958_v36 = vld [vmem:[%s2264_s15 + $0x8] sm:$0xf] }
  0x31   : > { %v1086_v1 = vsel %vm2297_vm5, %v1081_v54, %v1085_v42  ;;  %v1094_v7 = vor.u32 %v1093_v62, %v1090_v61  ;;  %v1107_v9 = vrot.slane %v1105_v63, 5  ;;  %v1119_v13 = vshll.u32 %v1027_v59, 16  ;;  %v2169_v38 = vld [vmem:[%s2248_s8 + $0x8] ss:$8 sps:$4 sm:$0xff]   ;;  %v2168_v57 = vld [vmem:[%s2264_s15 + $0x38] ss:$8 sps:$4 sm:$0xff]  }
  0x32   : > { %v1052_v33 = vor.u32 %v1051_v24, %v1048_v22  ;;  %v1919_v6 = vcombine.low %v1072_v60, %v1086_v1  ;;  %v1130_v15 = vshrl.u32 %v1029_v4, 16  ;;  %v1133_v21 = vshll.u32 %v1029_v4, 16  ;;  %v1960_v40 = vld [vmem:[%s2264_s15 + $0x10] sm:$0xf]  ;;  %v1964_v60 = vld [vmem:[%s2264_s15 + $0x20] sm:$0xf] }
  0x33   : > { %v1108_v19 = vor.u32 %v1107_v9, %v1104_v32  ;;  %v1121_v22 = vrot.slane %v1119_v13, 5  ;;  %v1139_v24 = vshll.u32 %v1030_v10, 16  ;;  %v1494_v41 = vshrl.u32 %v1958_v36, 16  ;;  %v1965_v61 = vld [vmem:[%s2264_s15 + $0x24] sm:$0x1] }
  0x34   : > { %2084 = vmatmul.mubr.msk.bf16.gmra.mxu1 %vm367_vm2, %v2162_v0  ;;  %2090 = vmatmul.mubr.msk.bf16.vlgmr.msra.gmra.mxu0 %vm367_vm2, %v2160_v11  ;;  %v1053_v39 = vrot.slane %v1052_v33, 4  ;;  %v1028_v0 = vld [vmem:[%s2329_s24 + $0x34] sm:$0x1]  ;;  %v1116_v11 = vshrl.u32 %v1027_v59, 16  ;;  %v1132_v23 = vrot.slane %v1130_v15, 4  ;;  %v1135_v28 = vrot.slane %v1133_v21, 5 }
  0x35   : > { %2108 = vmatpush3.bf16.msra.mxu0 %v2315_v8  ;;  %2093 = vmatprep.mubr.msk.bf16.mxu0 %vm367_vm2, %v2163_v18  ;;  %v1026_v8 = vld [vmem:[%s2329_s24 + $0x2c] sm:$0x1]  ;;  %v1125_v14 = vshll.u32 %v1028_v0, 16  ;;  %v1095_v18 = vrot.slane %v1094_v7, 4  ;;  %v1109_v27 = vrot.slane %v1108_v19, 4  ;;  %v1141_v33 = vrot.slane %v1139_v24, 5 }
  0x36   : > { %v1058_v50 = vsel %vm2297_vm5, %v1053_v39, %v1057_v25  ;;  %2127 = vmatprep.subr.bf16.mxu0 %v2381_v17  ;;  %v1111_v3 = vshll.u32 %v1026_v8, 16  ;;  %v1118_v20 = vrot.slane %v1116_v11, 4  ;;  %v2166_v25 = vld [vmem:[%s2264_s15 + $0x18] ss:$8 sps:$4 sm:$0xff]   ;;  %v1959_v39 = vld [vmem:[%s2264_s15 + $0xc] sm:$0x1] }
  0x37   : > { %v1918_v53 = vcombine.low %v1044_v43, %v1058_v50  ;;  %v1100_v26 = vsel %vm2297_vm5, %v1095_v18, %v1099_v2  ;;  %v1127_v30 = vrot.slane %v1125_v14, 5  ;;  %v1961_v43 = vld [vmem:[%s2264_s15 + $0x14] sm:$0x1]  ;;  %v1497_v44 = vshll.u32 %v1958_v36, 16  ;;  %v1962_v8 = vld [vmem:[%s2264_s15 + $0x18] sm:$0xf] }
  0x38   : > { %v1113_v12 = vrot.slane %v1111_v3, 5  ;;  %v1122_v29 = vor.u32 %v1121_v22, %v1118_v20  ;;  %v1503_v45 = vshll.u32 %v1959_v39, 16  ;;  %v1508_v46 = vshrl.u32 %v1960_v40, 16  ;;  %v2170_v4 = vld [vmem:[%s2248_s8 + $0x18] ss:$8 sps:$4 sm:$0xff]  }
  0x39   : > { %2099 = vmatprep.mubr.msk.bf16.mxu1 %vm367_vm2, %v1918_v53  ;;  %v1511_v50 = vshll.u32 %v1960_v40, 16  ;;  %v1517_v51 = vshll.u32 %v1961_v43, 16  ;;  %v1499_v52 = vrot.slane %v1497_v44, 5  ;;  %v1522_v63 = vshrl.u32 %v1962_v8, 16  ;;  %v2171_v13 = vld [vmem:[%s2248_s8 + $0x28] ss:$8 sps:$4 sm:$0xff]  }
  0x3a   : > { %v1114_v31 = vsel %vm2297_vm5, %v1109_v27, %v1113_v12  ;;  %v1123_v34 = vrot.slane %v1122_v29, 4  ;;  %v1505_v53 = vrot.slane %v1503_v45, 5  ;;  %v1510_v54 = vrot.slane %v1508_v46, 4  ;;  %v1966_v20 = vld [vmem:[%s2264_s15 + $0x28] sm:$0xf] }
  0x3b   : > { %v1920_v5 = vcombine.low %v1100_v26, %v1114_v31  ;;  %v1513_v58 = vrot.slane %v1511_v50, 5  ;;  %v1519_v59 = vrot.slane %v1517_v51, 5  ;;  %v1525_v0 = vshll.u32 %v1962_v8, 16  ;;  %v1968_v24 = vld [vmem:[%s2264_s15 + $0x30] sm:$0xf] }
  0x3c   : > { %2094 = vmatmul.mubr.msk.bf16.gmra.mxu0 %vm367_vm2, %v2164_v49  ;;  %2100 = vmatmul.mubr.msk.bf16.vlgmr.msra.gmra.mxu1 %vm367_vm2, %v1919_v6  ;;  %v1128_v42 = vsel %vm2297_vm5, %v1123_v34, %v1127_v30  ;;  %v1496_v49 = vrot.slane %v1494_v41, 4  ;;  %v1536_v2 = vshrl.u32 %v1964_v60, 16  ;;  %v1539_v32 = vshll.u32 %v1964_v60, 16  ;;  %v1970_v30 = vld [vmem:[%s2264_s15 + $0x38] sm:$0xf] }
  0x3d   : > { %2109 = vmatprep.mubr.msk.bf16.mxu0 %vm367_vm2, %v2165_v55  ;;  %2118 = vmatpush3.bf16.msra.mxu1 %v2353_v56  ;;  %v1136_v56 = vor.u32 %v1135_v28, %v1132_v23  ;;  %v1963_v55 = vld [vmem:[%s2264_s15 + $0x1c] sm:$0x1]  ;;  %v1514_v1 = vor.u32 %v1513_v58, %v1510_v54  ;;  %v1545_v3 = vshll.u32 %v1965_v61, 16  ;;  %v1524_v7 = vrot.slane %v1522_v63, 4  ;;  %v1967_v23 = vld [vmem:[%s2264_s15 + $0x2c] sm:$0x1] }
  0x3e   : > { %2103 = vmatprep.mubr.msk.bf16.mxu1 %vm367_vm2, %v1920_v5  ;;  %v1500_v62 = vor.u32 %v1499_v52, %v1496_v49  ;;  %v1527_v9 = vrot.slane %v1525_v0, 5  ;;  %v1538_v11 = vrot.slane %v1536_v2, 4  ;;  %v1541_v12 = vrot.slane %v1539_v32, 5  ;;  %v1971_v34 = vld [vmem:[%s2264_s15 + $0x3c] sm:$0x1] }
  0x3f   : > { %v1137_v37 = vrot.slane %v1136_v56, 4  ;;  %v1515_v10 = vrot.slane %v1514_v1, 4  ;;  %v1547_v19 = vrot.slane %v1545_v3, 5  ;;  %v1550_v28 = vshrl.u32 %v1966_v20, 16  ;;  %v1972_v39 = vld [vmem:[%s2264_s15 + $0x40] sm:$0xf] }
  0x40   : > { %v1501_v6 = vrot.slane %v1500_v62, 4  ;;  %v1528_v15 = vor.u32 %v1527_v9, %v1524_v7  ;;  %v1542_v22 = vor.u32 %v1541_v12, %v1538_v11  ;;  %v1553_v29 = vshll.u32 %v1966_v20, 16  ;;  %v1973_v44 = vld [vmem:[%s2264_s15 + $0x44] sm:$0x1]  ;;  %v2172_v52 = vld [vmem:[%s2248_s8 + $0x38] ss:$8 sps:$4 sm:$0xff]  }
  0x41   : > { %v1142_v47 = vsel %vm2297_vm5, %v1137_v37, %v1141_v33  ;;  %v1520_v21 = vsel %vm2297_vm5, %v1515_v10, %v1519_v59  ;;  %v1559_v56 = vshll.u32 %v1967_v23, 16  ;;  %v1564_v33 = vshrl.u32 %v1968_v24, 16 }
  0x42   : > { %v1921_v16 = vcombine.low %v1128_v42, %v1142_v47  ;;  %v1506_v14 = vsel %vm2297_vm5, %v1501_v6, %v1505_v53  ;;  %v1529_v27 = vrot.slane %v1528_v15, 4  ;;  %v1543_v31 = vrot.slane %v1542_v22, 4 }
  0x43   : > { %v1974_v26 = vcombine.low %v1506_v14, %v1520_v21  ;;  %v1567_v5 = vshll.u32 %v1968_v24, 16  ;;  %v1552_v36 = vrot.slane %v1550_v28, 4  ;;  %v1555_v37 = vrot.slane %v1553_v29, 5 }
  0x44   : > { %2110 = vmatmul.mubr.msk.bf16.vlgmr.msra.gmra.mxu0 %vm367_vm2, %v2166_v25  ;;  %2104 = vmatmul.mubr.msk.bf16.gmra.mxu1 %vm367_vm2, %v1921_v16  ;;  %v1969_v25 = vld [vmem:[%s2264_s15 + $0x34] sm:$0x1]  ;;  %v1548_v40 = vsel %vm2297_vm5, %v1543_v31, %v1547_v19  ;;  %v1561_v41 = vrot.slane %v1559_v56, 5  ;;  %v1566_v42 = vrot.slane %v1564_v33, 4  ;;  %v1578_v49 = vshrl.u32 %v1970_v30, 16 }
  0x45   : > { %2128 = vmatpush3.bf16.msra.mxu0 %v2381_v17  ;;  %2113 = vmatprep.mubr.msk.bf16.mxu0 %vm367_vm2, %v2167_v35  ;;  %v1531_v17 = vshll.u32 %v1963_v55, 16  ;;  %v1569_v43 = vrot.slane %v1567_v5, 5  ;;  %v1556_v46 = vor.u32 %v1555_v37, %v1552_v36  ;;  %v1581_v51 = vshll.u32 %v1970_v30, 16 }
  0x46   : > { %2119 = vmatprep.mubr.msk.bf16.mxu1 %vm367_vm2, %v2169_v38  ;;  %v1573_v38 = vshll.u32 %v1969_v25, 16  ;;  %v1587_v8 = vshll.u32 %v1971_v34, 16  ;;  %v1592_v16 = vshrl.u32 %v1972_v39, 16  ;;  %v1580_v54 = vrot.slane %v1578_v49, 4 }
  0x47   : > { %v1533_v18 = vrot.slane %v1531_v17, 5  ;;  %v1570_v50 = vor.u32 %v1569_v43, %v1566_v42  ;;  %v1557_v53 = vrot.slane %v1556_v46, 4  ;;  %v1595_v55 = vshll.u32 %v1972_v39, 16 }
  0x48   : > { %v1575_v47 = vrot.slane %v1573_v38, 5  ;;  %v1583_v59 = vrot.slane %v1581_v51, 5  ;;  %v1594_v60 = vrot.slane %v1592_v16, 4  ;;  %v1589_v17 = vrot.slane %v1587_v8, 5 }
  0x49   : > { %v1534_v35 = vsel %vm2297_vm5, %v1529_v27, %v1533_v18  ;;  %v1571_v58 = vrot.slane %v1570_v50, 4  ;;  %v1562_v61 = vsel %vm2297_vm5, %v1557_v53, %v1561_v41  ;;  %v1597_v62 = vrot.slane %v1595_v55, 5 }
  0x4a   : > { %v1975_v45 = vcombine.low %v1534_v35, %v1548_v40  ;;  %v1584_v0 = vor.u32 %v1583_v59, %v1580_v54  ;;  %vm1759_vm6 = vcmask 125952  }
  0x4b   : > { %v1576_v63 = vsel %vm2297_vm5, %v1571_v58, %v1575_v47  ;;  %v1598_v2 = vor.u32 %v1597_v62, %v1594_v60 }
  0x4c   : > { %2114 = vmatmul.mubr.msk.bf16.gmra.mxu0 %vm367_vm2, %v2168_v57  ;;  %2120 = vmatmul.mubr.msk.bf16.vlgmr.msra.gmra.mxu1 %vm367_vm2, %v2170_v4  ;;  %v1601_v57 = vshll.u32 %v1973_v44, 16  ;;  %v1976_v1 = vcombine.low %v1562_v61, %v1576_v63  ;;  %v1585_v3 = vrot.slane %v1584_v0, 4 }
  0x4d   : > { %2129 = vmatprep.mubr.msk.bf16.mxu0 %vm367_vm2, %v1974_v26  ;;  %2123 = vmatprep.mubr.msk.bf16.mxu1 %vm367_vm2, %v2171_v13  ;;  %v1599_v4 = vrot.slane %v1598_v2, 4 }
  0x4e   : > { %v1603_v32 = vrot.slane %v1601_v57, 5  ;;  %v1590_v6 = vsel %vm2297_vm5, %v1585_v3, %v1589_v17 }
  0x50   : > { %v1604_v7 = vsel %vm2297_vm5, %v1599_v4, %v1603_v32 }
  0x51   : > { %v1977_v9 = vcombine.low %v1590_v6, %v1604_v7 }
  0x54   : > { %2130 = vmatmul.mubr.msk.bf16.vlgmr.msra.gmra.mxu0 %vm367_vm2, %v1975_v45  ;;  %2124 = vmatmul.mubr.msk.bf16.gmra.mxu1 %vm367_vm2, %v2172_v52 }
  0x55   : > { %2133 = vmatprep.mubr.msk.bf16.mxu0 %vm367_vm2, %v1976_v1 }
  0x5c   : > { %2134 = vmatmul.mubr.msk.bf16.gmra.mxu0 %vm367_vm2, %v1977_v9 }
  0xd4   : > { %v2055_v10 = vpop.f32.mrf.mxu1  ;;  %v2051_v12 = vpop.f32.mrf.mxu0 }
  0xd6   : > { %v437_v11 = vpop.f32.mrf.mxu1  ;;  %v421_v15 = vpop.f32.mrf.mxu0 }
  0xd8   : > { %v2474_v13 = vpop.f32.mrf.mxu1  ;;  %v2052_v20 = vpop.f32.mrf.mxu0 }
  0xda   : > { %v2476_v14 = vpop.f32.mrf.mxu1  ;;  %v424_v23 = vpop.f32.mrf.mxu0 }
  0xdc   : > { %v2061_v18 = vpop.f32.mrf.mxu1 }
  0xdd   : > { %v530_v51 = vadd.f32 %v2061_v18, %v2051_v12 }
  0xde   : > { %v521_v19 = vpop.f32.mrf.mxu1 }
  0xdf   : > { %v522_v52 = vadd.f32 %v521_v19, %v421_v15 }
  0xe0   : > { %v2062_v21 = vpop.f32.mrf.mxu1 }
  0xe1   : > { %v533_v55 = vadd.f32 %v2062_v21, %v2052_v20 }
  0xe2   : > { %v524_v22 = vpop.f32.mrf.mxu1  ;;  %v2071_v48 = vpop.f32.mrf.mxu0 }
  0xe3   : > { %v777_v54 = vadd.f32 %v2071_v48, %v530_v51  ;;  %v525_v60 = vadd.f32 %v524_v22, %v424_v23 }
  0xe4   : > { %v2065_v24 = vpop.f32.mrf.mxu1  ;;  %v744_v26 = vpop.f32.mrf.mxu0 }
  0xe5   : > { %v775_v59 = vadd.f32 %v744_v26, %v522_v52  ;;  %v546_v1 = vadd.f32 %v2065_v24, %v2055_v10 }
  0xe6   : > { %v537_v25 = vpop.f32.mrf.mxu1  ;;  %v2072_v28 = vpop.f32.mrf.mxu0 }
  0xe7   : > { %v778_v63 = vadd.f32 %v2072_v28, %v533_v55  ;;  %v538_v7 = vadd.f32 %v537_v25, %v437_v11 }
  0xe8   : > { %v2066_v27 = vpop.f32.mrf.mxu1  ;;  %v747_v30 = vpop.f32.mrf.mxu0 }
  0xe9   : > { %v776_v32 = vadd.f32 %v747_v30, %v525_v60  ;;  %v549_v21 = vadd.f32 %v2066_v27, %v2474_v13 }
  0xea   : > { %v540_v29 = vpop.f32.mrf.mxu1 }
  0xeb   : > { %v541_v10 = vadd.f32 %v540_v29, %v2476_v14 }
  0xec   : > { %v2081_v31 = vpop.f32.mrf.mxu1  ;;  %v2075_v33 = vpop.f32.mrf.mxu0 }
  0xed   : > { %v893_v61 = vadd.f32 %v2081_v31, %v777_v54  ;;  %v781_v20 = vadd.f32 %v2075_v33, %v546_v1 }
  0xee   : > { %v860_v56 = vpop.f32.mrf.mxu1  ;;  %v760_v34 = vpop.f32.mrf.mxu0 }
  0xef   : > { %v891_v0 = vadd.f32 %v860_v56, %v775_v59  ;;  %v779_v28 = vadd.f32 %v760_v34, %v538_v7 }
  0xf0   : > { %v2082_v5 = vpop.f32.mrf.mxu1  ;;  %v2076_v36 = vpop.f32.mrf.mxu0 }
  0xf1   : > { %v894_v4 = vadd.f32 %v2082_v5, %v778_v63  ;;  %v782_v5 = vadd.f32 %v2076_v36, %v549_v21  ;;  %v2490_v36 = vld [vmem:[%s2532_s5] ss:$0 sm:$0xff] }
  0xf2   : > { %v863_v35 = vpop.f32.mrf.mxu1  ;;  %v763_v38 = vpop.f32.mrf.mxu0 }
  0xf3   : > { %v892_v15 = vadd.f32 %v863_v35, %v776_v32  ;;  %v780_v27 = vadd.f32 %v763_v38, %v541_v10 }
  0xf4   : > { %v2085_v37 = vpop.f32.mrf.mxu1  ;;  %v2091_v40 = vpop.f32.mrf.mxu0 }
  0xf5   : > { %v1009_v3 = vadd.f32 %v2091_v40, %v893_v61  ;;  %v897_v24 = vadd.f32 %v2085_v37, %v781_v20 }
  0xf6   : > { %v876_v39 = vpop.f32.mrf.mxu1  ;;  %v976_v42 = vpop.f32.mrf.mxu0 }
  0xf7   : > { %v1007_v12 = vadd.f32 %v976_v42, %v891_v0  ;;  %v895_v35 = vadd.f32 %v876_v39, %v779_v28 }
  0xf8   : > { %v2086_v41 = vpop.f32.mrf.mxu1  ;;  %v2092_v43 = vpop.f32.mrf.mxu0 }
  0xf9   : > { %v1010_v23 = vadd.f32 %v2092_v43, %v894_v4 }
  0xfa   : > { %v2478_v44 = vpop.f32.mrf.mxu1  ;;  %v979_v45 = vpop.f32.mrf.mxu0 }
  0xfb   : > { %v1008_v31 = vadd.f32 %v979_v45, %v892_v15  ;;  %v896_v45 = vadd.f32 %v2478_v44, %v780_v27 }
  0xfc   : > { %v2095_v46 = vpop.f32.mrf.mxu0  ;;  %v2101_v47 = vpop.f32.mrf.mxu1 }
  0xfd   : > { %v1237_v18 = vadd.f32 %v2101_v47, %v1009_v3  ;;  %v1013_v43 = vadd.f32 %v2095_v46, %v897_v24 }
  0xfe   : > { %v992_v49 = vpop.f32.mrf.mxu0  ;;  %v1204_v50 = vpop.f32.mrf.mxu1 }
  0xff   : > { %v1235_v48 = vadd.f32 %v1204_v50, %v1007_v12  ;;  %v898_v50 = vadd.f32 %v2086_v41, %v782_v5  ;;  %v1011_v37 = vadd.f32 %v992_v49, %v895_v35 }
 0x100   : > { %v2480_v8 = vpop.f32.mrf.mxu0  ;;  %v2102_v16 = vpop.f32.mrf.mxu1 }
 0x101   : > { %v1238_v11 = vadd.f32 %v2102_v16, %v1010_v23  ;;  %v1014_v41 = vadd.f32 %v2480_v8, %v898_v50 }
 0x102   : > { %v2482_v53 = vpop.f32.mrf.mxu0  ;;  %v1207_v57 = vpop.f32.mrf.mxu1 }
 0x103   : > { %v1236_v33 = vadd.f32 %v1207_v57, %v1008_v31  ;;  %v1012_v60 = vadd.f32 %v2482_v53, %v896_v45 }
 0x104   : > { %v2111_v58 = vpop.f32.mrf.mxu0  ;;  %v2105_v17 = vpop.f32.mrf.mxu1 }
 0x105   : > { %v1354_v56 = vadd.f32 %v2111_v58, %v1237_v18  ;;  %v1241_v16 = vadd.f32 %v2105_v17, %v1013_v43 }
 0x106   : > { %v1321_v62 = vpop.f32.mrf.mxu0  ;;  %v1220_v6 = vpop.f32.mrf.mxu1 }
 0x107   : > { %v1352_v42 = vadd.f32 %v1321_v62, %v1235_v48  ;;  %v1239_v55 = vadd.f32 %v1220_v6, %v1011_v37 }
 0x108   : > { %v2112_v2 = vpop.f32.mrf.mxu0  ;;  %v2106_v19 = vpop.f32.mrf.mxu1 }
 0x109   : > { %v1355_v34 = vadd.f32 %v2112_v2, %v1238_v11  ;;  %v1242_v62 = vadd.f32 %v2106_v19, %v1014_v41 }
 0x10a   : > { %v1324_v9 = vpop.f32.mrf.mxu0  ;;  %v1223_v26 = vpop.f32.mrf.mxu1 }
 0x10b   : > { %v1353_v52 = vadd.f32 %v1324_v9, %v1236_v33  ;;  %v1240_v8 = vadd.f32 %v1223_v26, %v1012_v60 }
 0x10c   : > { %v2115_v22 = vpop.f32.mrf.mxu0  ;;  %v2121_v25 = vpop.f32.mrf.mxu1 }
 0x10d   : > { %v1471_v47 = vadd.f32 %v2121_v25, %v1354_v56  ;;  %v1358_v61 = vadd.f32 %v2115_v22, %v1241_v16 }
 0x10e   : > { %v1337_v30 = vpop.f32.mrf.mxu0  ;;  %v1438_v13 = vpop.f32.mrf.mxu1 }
 0x10f   : > { %v1469_v14 = vadd.f32 %v1438_v13, %v1352_v42  ;;  %v1356_v32 = vadd.f32 %v1337_v30, %v1239_v55 }
 0x110   : > { %v2116_v40 = vpop.f32.mrf.mxu0  ;;  %v2122_v29 = vpop.f32.mrf.mxu1 }
 0x111   : > { %v1472_v38 = vadd.f32 %v2122_v29, %v1355_v34  ;;  %v1359_v15 = vadd.f32 %v2116_v40, %v1242_v62 }
 0x112   : > { %v1340_v51 = vpop.f32.mrf.mxu0  ;;  %v1441_v46 = vpop.f32.mrf.mxu1 }
 0x113   : > { %v1470_v44 = vadd.f32 %v1441_v46, %v1353_v52  ;;  %v1357_v22 = vadd.f32 %v1340_v51, %v1240_v8 }
 0x114   : > { %v2131_v39 = vpop.f32.mrf.mxu0  ;;  %v2125_v59 = vpop.f32.mrf.mxu1 }
 0x115   : > { %v1699_v54 = vadd.f32 %v2131_v39, %v1471_v47  ;;  %v1475_v53 = vadd.f32 %v2125_v59, %v1358_v61 }
 0x116   : > { %v1666_v57 = vpop.f32.mrf.mxu0  ;;  %v1454_v2 = vpop.f32.mrf.mxu1 }
 0x117   : > { %v1713_v49 = vadd.f32 %v2490_v36, %v1699_v54  ;;  %v1697_v58 = vadd.f32 %v1666_v57, %v1469_v14  ;;  %v1473_v21 = vadd.f32 %v1454_v2, %v1356_v32 }
 0x118   : > { %v2132_v63 = vpop.f32.mrf.mxu0  ;;  %v2126_v12 = vpop.f32.mrf.mxu1 }
 0x119   : > { %v1721_v0 = vmax.f32 %v1713_v49, 0.0  ;;  %v1711_v17 = vadd.f32 %v2490_v36, %v1697_v58  ;;  %v1700_v1 = vadd.f32 %v2132_v63, %v1472_v38  ;;  %v1476_v24 = vadd.f32 %v2126_v12, %v1359_v15 }
 0x11a   : > { %v1669_v3 = vpop.f32.mrf.mxu0  ;;  %v1457_v48 = vpop.f32.mrf.mxu1 }
 0x11b   : > { %v1996_v4 = vpack.c.bf16 %v1721_v0, %v1721_v0  ;;  %v1719_v6 = vmax.f32 %v1711_v17, 0.0  ;;  %v1714_v7 = vadd.f32 %v2490_v36, %v1700_v1  ;;  %v1698_v9 = vadd.f32 %v1669_v3, %v1470_v44 }
 0x11c   : > { %v2135_v23 = vpop.f32.mrf.mxu0  ;;  %v1474_v25 = vadd.f32 %v1457_v48, %v1357_v22 }
 0x11d   : > { %1762 = vst.msk [vmem:[%s2500_s22 + $0x8] sm:$0xf] %vm1759_vm6, %v1996_v4  ;;  %v1994_v18 = vpack.c.bf16 %v1719_v6, %v1719_v6  ;;  %v1722_v19 = vmax.f32 %v1714_v7, 0.0  ;;  %v1712_v20 = vadd.f32 %v2490_v36, %v1698_v9  ;;  %v1703_v10 = vadd.f32 %v2135_v23, %v1475_v53 }
 0x11e   : > { %v1682_v30 = vpop.f32.mrf.mxu0 }
 0x11f   : > { %1760 = vst.msk [vmem:[%s2500_s22] sm:$0xf] %vm1759_vm6, %v1994_v18  ;;  %v1997_v26 = vpack.c.bf16 %v1722_v19, %v1722_v19  ;;  %v1720_v28 = vmax.f32 %v1712_v20, 0.0  ;;  %v1717_v56 = vadd.f32 %v2490_v36, %v1703_v10  ;;  %v1701_v11 = vadd.f32 %v1682_v30, %v1473_v21 }
 0x120   : > { %v2136_v5 = vpop.f32.mrf.mxu0 }
 0x121   : > { %1763 = vst.msk [vmem:[%s2500_s22 + $0xc] sm:$0xf] %vm1759_vm6, %v1997_v26  ;;  %v1995_v31 = vpack.c.bf16 %v1720_v28, %v1720_v28  ;;  %v1725_v35 = vmax.f32 %v1717_v56, 0.0  ;;  %v1715_v40 = vadd.f32 %v2490_v36, %v1701_v11  ;;  %v1704_v42 = vadd.f32 %v2136_v5, %v1476_v24 }
 0x122   : > { %v1685_v33 = vpop.f32.mrf.mxu0 }
 0x123   : > { %1761 = vst.msk [vmem:[%s2500_s22 + $0x4] sm:$0xf] %vm1759_vm6, %v1995_v31  ;;  %v2000_v47 = vpack.c.bf16 %v1725_v35, %v1725_v35  ;;  %v1723_v13 = vmax.f32 %v1715_v40, 0.0  ;;  %v1718_v27 = vadd.f32 %v2490_v36, %v1704_v42  ;;  %v1702_v43 = vadd.f32 %v1685_v33, %v1474_v25 }
 0x125   : > { %1766 = vst.msk [vmem:[%s2500_s22 + $0x18] sm:$0xf] %vm1759_vm6, %v2000_v47  ;;  %v1998_v50 = vpack.c.bf16 %v1723_v13, %v1723_v13  ;;  %v1726_v51 = vmax.f32 %v1718_v27, 0.0  ;;  %v1716_v34 = vadd.f32 %v2490_v36, %v1702_v43 }
 0x127   : > { %1764 = vst.msk [vmem:[%s2500_s22 + $0x10] sm:$0xf] %vm1759_vm6, %v1998_v50  ;;  %v2001_v14 = vpack.c.bf16 %v1726_v51, %v1726_v51  ;;  %v1724_v29 = vmax.f32 %v1716_v34, 0.0 }
 0x129   : > { %1767 = vst.msk [vmem:[%s2500_s22 + $0x1c] sm:$0xf] %vm1759_vm6, %v2001_v14  ;;  %v1999_v37 = vpack.c.bf16 %v1724_v29, %v1724_v29 }
 0x12b   : > { %1765 = vst.msk [vmem:[%s2500_s22 + $0x14] sm:$0xf] %vm1759_vm6, %v1999_v37 }
 0x12c PF: > { %s16_s21 = sadd.s32 1, %s2179_s21  }
 0x12d   : > { %p13_p4 = scmp.ge.s32.totalorder %s16_s21, 4  }
 0x12f   :  { %15 = sbr.rel (!%p13_p4) target bundleno = 1 (0x1), region = 93 }

</bundles_post_ra>
